<compile_context>
chip_gen: v5e
topology: v5e:2x2
jax: 0.10.0
libtpu: 0.0.40
codegen_flags: <defaults>
</compile_context>

<pallas_src>
import jax
import jax.numpy as jnp
from jax.experimental import pallas as pl
from jax.experimental.pallas import tpu as pltpu


# ----------------------------------------------------------------------------
# Kernel
# ----------------------------------------------------------------------------
def _conv3x3_im2col(pad_ref, w_ref):
    """3x3 stride-1 conv over a zero-padded VMEM scratch as one MXU matmul.

    pad_ref : (H+2, W+2, Cin)  zero-padded activations (VMEM scratch)
    w_ref   : (9*Cin, Cout)    taps flattened (ky, kx, cin) row-major
    returns : (H*W, Cout) float32
    """
    hp, wp, cin = pad_ref.shape
    h, w = hp - 2, wp - 2
    taps = []
    for ky in range(3):
        for kx in range(3):
            taps.append(pad_ref[ky:ky + h, kx:kx + w, :].reshape(h * w, cin))
    patches = jnp.concatenate(taps, axis=-1)                     # (H*W, 9*Cin)
    return jnp.dot(patches.astype(w_ref.dtype), w_ref[...],
                   preferred_element_type=jnp.float32)


def basic_block_kernel(x_ref, w1_ref, s1_ref, b1_ref, w2_ref, s2_ref, b2_ref,
                       out_ref, xpad_ref, h1pad_ref):
    """Fused BasicBlock forward for one image of the batch grid."""
    _, h, w, cin = x_ref.shape
    cp = w1_ref.shape[-1]

    x = x_ref[0]                                                 # (H, W, Cin)

    # conv1 halo: zero the padded scratch, drop the image into the interior.
    xpad_ref[...] = jnp.zeros_like(xpad_ref)
    xpad_ref[1:h + 1, 1:w + 1, :] = x.astype(xpad_ref.dtype)

    # conv1 + folded-bn1 + relu
    y1 = _conv3x3_im2col(xpad_ref, w1_ref)                       # (H*W, Cp) f32
    y1 = jnp.maximum(y1 * s1_ref[...] + b1_ref[...], 0.0)

    # Intermediate activation stays in VMEM (never written to HBM).
    h1pad_ref[...] = jnp.zeros_like(h1pad_ref)
    h1pad_ref[1:h + 1, 1:w + 1, :] = y1.reshape(h, w, cp).astype(h1pad_ref.dtype)

    # conv2 + folded-bn2 + residual + relu
    y2 = _conv3x3_im2col(h1pad_ref, w2_ref)                      # (H*W, Cp) f32
    y2 = y2 * s2_ref[...] + b2_ref[...]
    y2 = y2 + x.reshape(h * w, cin).astype(jnp.float32)          # Cin == Cp
    y2 = jnp.maximum(y2, 0.0)

    out_ref[0] = y2.reshape(h, w, cp).astype(out_ref.dtype)


# ----------------------------------------------------------------------------
# Wrapper
# ----------------------------------------------------------------------------
def _fold_bn(gamma, beta, mean, var, eps=1e-5):
    scale = gamma / jnp.sqrt(var + eps)
    bias = beta - mean * scale
    return (scale.reshape(1, -1).astype(jnp.float32),
            bias.reshape(1, -1).astype(jnp.float32))


@jax.jit
def basic_block_forward(x_nchw, params):
    """BasicBlock forward (stride=1, no downsample). Input/output are NCHW."""
    x = jnp.transpose(x_nchw, (0, 2, 3, 1))                      # -> NHWC
    n, h, w, cin = x.shape
    w1 = params["w1"]                                            # (9*Cin, Cp)
    w2 = params["w2"]                                            # (9*Cp,  Cp)
    cp = w1.shape[-1]
    assert cin == cp, "stride=1 / no-downsample path requires Cin == Cout"
    s1, b1 = _fold_bn(params["g1"], params["be1"], params["m1"], params["v1"])
    s2, b2 = _fold_bn(params["g2"], params["be2"], params["m2"], params["v2"])

    const2d = lambda i: (0, 0)
    flops = 2 * 2 * n * h * w * (9 * cin) * cp                   # two 3x3 convs
    bytes_accessed = (x.dtype.itemsize * (x.size + n * h * w * cp)
                      + w1.dtype.itemsize * (w1.size + w2.size))

    out = pl.pallas_call(
        basic_block_kernel,
        out_shape=jax.ShapeDtypeStruct((n, h, w, cp), x.dtype),
        grid_spec=pltpu.PrefetchScalarGridSpec(
            num_scalar_prefetch=0,
            grid=(n,),
            in_specs=[
                pl.BlockSpec((1, h, w, cin), lambda i: (i, 0, 0, 0)),
                pl.BlockSpec((9 * cin, cp), const2d),            # weights stay
                pl.BlockSpec((1, cp), const2d),                  # resident (no
                pl.BlockSpec((1, cp), const2d),                  # re-DMA per
                pl.BlockSpec((9 * cp, cp), const2d),             # grid step)
                pl.BlockSpec((1, cp), const2d),
                pl.BlockSpec((1, cp), const2d),
            ],
            out_specs=pl.BlockSpec((1, h, w, cp), lambda i: (i, 0, 0, 0)),
            scratch_shapes=[
                pltpu.VMEM((h + 2, w + 2, cin), x.dtype),        # padded x
                pltpu.VMEM((h + 2, w + 2, cp), x.dtype),         # padded h1
            ]),
        compiler_params=pltpu.CompilerParams(
            dimension_semantics=("parallel",),
            vmem_limit_bytes=32 * 1024 * 1024),
        cost_estimate=pl.CostEstimate(
            flops=flops, transcendentals=0, bytes_accessed=bytes_accessed),
    )(x, w1, s1, b1, w2, s2, b2)

    return jnp.transpose(out, (0, 3, 1, 2))                      # -> NCHW


# ----------------------------------------------------------------------------
# Pure-JAX reference (for correctness check)
# ----------------------------------------------------------------------------
def _conv_ref(x_nhwc, w_hwio):
    return jax.lax.conv_general_dilated(
        x_nhwc, w_hwio, window_strides=(1, 1), padding="SAME",
        dimension_numbers=("NHWC", "HWIO", "NHWC"))


def reference_forward(x_nchw, params):
    x = jnp.transpose(x_nchw, (0, 2, 3, 1))
    cin = x.shape[-1]
    cp = params["w1"].shape[-1]
    w1 = params["w1"].reshape(3, 3, cin, cp)
    w2 = params["w2"].reshape(3, 3, cp, cp)
    s1, b1 = _fold_bn(params["g1"], params["be1"], params["m1"], params["v1"])
    s2, b2 = _fold_bn(params["g2"], params["be2"], params["m2"], params["v2"])

    out = _conv_ref(x, w1) * s1.reshape(1, 1, 1, -1) + b1.reshape(1, 1, 1, -1)
    out = jnp.maximum(out, 0.0)
    out = _conv_ref(out, w2) * s2.reshape(1, 1, 1, -1) + b2.reshape(1, 1, 1, -1)
    out = out + x
    out = jnp.maximum(out, 0.0)
    return jnp.transpose(out, (0, 3, 1, 2))


# ----------------------------------------------------------------------------
# Parameter init (deterministic, synthetic)
# ----------------------------------------------------------------------------
def init_params(key, inplanes, planes):
    ks = jax.random.split(key, 10)
    # PyTorch conv weight layout is (Cout, Cin, 3, 3); store flattened over the
    # 3x3 taps in (ky, kx, cin) row-major order -> (9*Cin, Cout) for im2col.
    w1_oihw = 0.1 * jax.random.normal(ks[0], (planes, inplanes, 3, 3), jnp.float32)
    w2_oihw = 0.1 * jax.random.normal(ks[1], (planes, planes, 3, 3), jnp.float32)
    w1 = jnp.transpose(w1_oihw, (2, 3, 1, 0)).reshape(9 * inplanes, planes)
    w2 = jnp.transpose(w2_oihw, (2, 3, 1, 0)).reshape(9 * planes, planes)
    return dict(
        w1=w1, w2=w2,
        g1=1.0 + 0.1 * jax.random.normal(ks[2], (planes,), jnp.float32),
        be1=0.1 * jax.random.normal(ks[3], (planes,), jnp.float32),
        m1=0.1 * jax.random.normal(ks[4], (planes,), jnp.float32),
        v1=jax.random.uniform(ks[5], (planes,), jnp.float32, 0.5, 1.5),
        g2=1.0 + 0.1 * jax.random.normal(ks[6], (planes,), jnp.float32),
        be2=0.1 * jax.random.normal(ks[7], (planes,), jnp.float32),
        m2=0.1 * jax.random.normal(ks[8], (planes,), jnp.float32),
        v2=jax.random.uniform(ks[9], (planes,), jnp.float32, 0.5, 1.5),
    )


# ----------------------------------------------------------------------------
if __name__ == "__main__":
    key = jax.random.PRNGKey(0)
    kx, kp = jax.random.split(key)

    N, C, H, W = 2, 8, 16, 16  # inplanes == planes (stride=1, no downsample)
    x = jax.random.normal(kx, (N, C, H, W), jnp.float32)
    params = init_params(kp, C, C)

    out = basic_block_forward(x, params)
    out = jax.block_until_ready(out)

    ref = reference_forward(x, params)
    assert out.shape == (N, C, H, W), out.shape
    assert jnp.allclose(out, ref, atol=1e-4, rtol=1e-4), float(
        jnp.max(jnp.abs(out - ref)))

    print("KERNEL_OK")
</pallas_src>

<mosaic_0001>
module attributes {stable_mosaic.version = 11 : i64} {
  func.func @basic_block_kernel(%arg0: i32, %arg1: memref<1x16x16x8xf32, #tpu.memory_space<vmem>>, %arg2: memref<72x8xf32, #tpu.memory_space<vmem>>, %arg3: memref<1x8xf32, #tpu.memory_space<vmem>>, %arg4: memref<1x8xf32, #tpu.memory_space<vmem>>, %arg5: memref<72x8xf32, #tpu.memory_space<vmem>>, %arg6: memref<1x8xf32, #tpu.memory_space<vmem>>, %arg7: memref<1x8xf32, #tpu.memory_space<vmem>>, %arg8: memref<1x16x16x8xf32, #tpu.memory_space<vmem>>, %arg9: memref<18x18x8xf32, #tpu.memory_space<vmem>>, %arg10: memref<18x18x8xf32, #tpu.memory_space<vmem>>) attributes {dimension_semantics = [#tpu.dimension_semantics<parallel>], iteration_bounds = array<i64: 2>, scalar_prefetch = 0 : i64, scratch_operands = 2 : i64, tpu.core_type = #tpu.core_type<tc>, window_params = [{transform_indices = @transform_0, window_bounds = array<i64: 1, 16, 16, 8>}, {pipeline_mode = #tpu.pipeline_mode<synchronous>, transform_indices = @transform_1, window_bounds = array<i64: 72, 8>}, {pipeline_mode = #tpu.pipeline_mode<synchronous>, transform_indices = @transform_2, window_bounds = array<i64: 1, 8>}, {pipeline_mode = #tpu.pipeline_mode<synchronous>, transform_indices = @transform_3, window_bounds = array<i64: 1, 8>}, {pipeline_mode = #tpu.pipeline_mode<synchronous>, transform_indices = @transform_4, window_bounds = array<i64: 72, 8>}, {pipeline_mode = #tpu.pipeline_mode<synchronous>, transform_indices = @transform_5, window_bounds = array<i64: 1, 8>}, {pipeline_mode = #tpu.pipeline_mode<synchronous>, transform_indices = @transform_6, window_bounds = array<i64: 1, 8>}, {transform_indices = @transform_7, window_bounds = array<i64: 1, 16, 16, 8>}]} {
    %c0 = arith.constant 0 : index
    %c0_0 = arith.constant 0 : index
    %c0_1 = arith.constant 0 : index
    %c0_2 = arith.constant 0 : index
    %0 = vector.load %arg1[%c0, %c0_0, %c0_1, %c0_2] : memref<1x16x16x8xf32, #tpu.memory_space<vmem>>, vector<1x16x16x8xf32>
    %1 = vector.shape_cast %0 : vector<1x16x16x8xf32> to vector<16x16x8xf32>
    %cst = arith.constant 0.000000e+00 : f32
    %2 = vector.broadcast %cst : f32 to vector<18x18x8xf32>
    %c0_3 = arith.constant 0 : index
    %c0_4 = arith.constant 0 : index
    %c0_5 = arith.constant 0 : index
    %3 = vector.load %arg9[%c0_3, %c0_4, %c0_5] : memref<18x18x8xf32, #tpu.memory_space<vmem>>, vector<18x18x8xf32>
    tpu.vector_store %arg9[%c0_3, %c0_4, %c0_5], %2 {strides = array<i32>} : memref<18x18x8xf32, #tpu.memory_space<vmem>>, vector<18x18x8xf32>,
    %c1 = arith.constant 1 : index
    %c1_6 = arith.constant 1 : index
    %c0_7 = arith.constant 0 : index
    %4 = vector.load %arg9[%c1, %c1_6, %c0_7] : memref<18x18x8xf32, #tpu.memory_space<vmem>>, vector<16x16x8xf32>
    tpu.vector_store %arg9[%c1, %c1_6, %c0_7], %1 {strides = array<i32>} : memref<18x18x8xf32, #tpu.memory_space<vmem>>, vector<16x16x8xf32>,
    %c0_8 = arith.constant 0 : index
    %c0_9 = arith.constant 0 : index
    %c0_10 = arith.constant 0 : index
    %5 = vector.load %arg9[%c0_8, %c0_9, %c0_10] : memref<18x18x8xf32, #tpu.memory_space<vmem>>, vector<16x16x8xf32>
    %6 = vector.shape_cast %5 : vector<16x16x8xf32> to vector<256x8xf32>
    %c0_11 = arith.constant 0 : index
    %c1_12 = arith.constant 1 : index
    %c0_13 = arith.constant 0 : index
    %7 = vector.load %arg9[%c0_11, %c1_12, %c0_13] : memref<18x18x8xf32, #tpu.memory_space<vmem>>, vector<16x16x8xf32>
    %8 = vector.shape_cast %7 : vector<16x16x8xf32> to vector<256x8xf32>
    %c0_14 = arith.constant 0 : index
    %c2 = arith.constant 2 : index
    %c0_15 = arith.constant 0 : index
    %9 = vector.load %arg9[%c0_14, %c2, %c0_15] : memref<18x18x8xf32, #tpu.memory_space<vmem>>, vector<16x16x8xf32>
    %10 = vector.shape_cast %9 : vector<16x16x8xf32> to vector<256x8xf32>
    %c1_16 = arith.constant 1 : index
    %c0_17 = arith.constant 0 : index
    %c0_18 = arith.constant 0 : index
    %11 = vector.load %arg9[%c1_16, %c0_17, %c0_18] : memref<18x18x8xf32, #tpu.memory_space<vmem>>, vector<16x16x8xf32>
    %12 = vector.shape_cast %11 : vector<16x16x8xf32> to vector<256x8xf32>
    %c1_19 = arith.constant 1 : index
    %c1_20 = arith.constant 1 : index
    %c0_21 = arith.constant 0 : index
    %13 = vector.load %arg9[%c1_19, %c1_20, %c0_21] : memref<18x18x8xf32, #tpu.memory_space<vmem>>, vector<16x16x8xf32>
    %14 = vector.shape_cast %13 : vector<16x16x8xf32> to vector<256x8xf32>
    %c1_22 = arith.constant 1 : index
    %c2_23 = arith.constant 2 : index
    %c0_24 = arith.constant 0 : index
    %15 = vector.load %arg9[%c1_22, %c2_23, %c0_24] : memref<18x18x8xf32, #tpu.memory_space<vmem>>, vector<16x16x8xf32>
    %16 = vector.shape_cast %15 : vector<16x16x8xf32> to vector<256x8xf32>
    %c2_25 = arith.constant 2 : index
    %c0_26 = arith.constant 0 : index
    %c0_27 = arith.constant 0 : index
    %17 = vector.load %arg9[%c2_25, %c0_26, %c0_27] : memref<18x18x8xf32, #tpu.memory_space<vmem>>, vector<16x16x8xf32>
    %18 = vector.shape_cast %17 : vector<16x16x8xf32> to vector<256x8xf32>
    %c2_28 = arith.constant 2 : index
    %c1_29 = arith.constant 1 : index
    %c0_30 = arith.constant 0 : index
    %19 = vector.load %arg9[%c2_28, %c1_29, %c0_30] : memref<18x18x8xf32, #tpu.memory_space<vmem>>, vector<16x16x8xf32>
    %20 = vector.shape_cast %19 : vector<16x16x8xf32> to vector<256x8xf32>
    %c2_31 = arith.constant 2 : index
    %c2_32 = arith.constant 2 : index
    %c0_33 = arith.constant 0 : index
    %21 = vector.load %arg9[%c2_31, %c2_32, %c0_33] : memref<18x18x8xf32, #tpu.memory_space<vmem>>, vector<16x16x8xf32>
    %22 = vector.shape_cast %21 : vector<16x16x8xf32> to vector<256x8xf32>
    %23 = tpu.concatenate %6, %8, %10, %12, %14, %16, %18, %20, %22 in 1 : vector<256x8xf32>, vector<256x8xf32>, vector<256x8xf32>, vector<256x8xf32>, vector<256x8xf32>, vector<256x8xf32>, vector<256x8xf32>, vector<256x8xf32>, vector<256x8xf32> -> vector<256x72xf32>
    %c0_34 = arith.constant 0 : index
    %c0_35 = arith.constant 0 : index
    %24 = vector.load %arg2[%c0_34, %c0_35] : memref<72x8xf32, #tpu.memory_space<vmem>>, vector<72x8xf32>
    %cst_36 = arith.constant dense<0.000000e+00> : vector<256x8xf32>
    %25 = tpu.matmul %23, %24, %cst_36 {dimension_numbers = #tpu.dot_dimension_numbers<[1], [0], [0], [1], [0, 0, 1, 1], [], []>} : vector<256x72xf32>, vector<72x8xf32>, vector<256x8xf32> -> vector<256x8xf32>
    %c0_37 = arith.constant 0 : index
    %c0_38 = arith.constant 0 : index
    %26 = vector.load %arg3[%c0_37, %c0_38] : memref<1x8xf32, #tpu.memory_space<vmem>>, vector<1x8xf32>
    %27 = vector.broadcast %26 : vector<1x8xf32> to vector<256x8xf32>
    %28 = arith.mulf %25, %27 : vector<256x8xf32>
    %c0_39 = arith.constant 0 : index
    %c0_40 = arith.constant 0 : index
    %29 = vector.load %arg4[%c0_39, %c0_40] : memref<1x8xf32, #tpu.memory_space<vmem>>, vector<1x8xf32>
    %30 = vector.broadcast %29 : vector<1x8xf32> to vector<256x8xf32>
    %31 = arith.addf %28, %30 : vector<256x8xf32>
    %cst_41 = arith.constant 0.000000e+00 : f32
    %32 = vector.broadcast %cst_41 : f32 to vector<256x8xf32>
    %33 = arith.maximumf %31, %32 : vector<256x8xf32>
    %cst_42 = arith.constant 0.000000e+00 : f32
    %34 = vector.broadcast %cst_42 : f32 to vector<18x18x8xf32>
    %c0_43 = arith.constant 0 : index
    %c0_44 = arith.constant 0 : index
    %c0_45 = arith.constant 0 : index
    %35 = vector.load %arg10[%c0_43, %c0_44, %c0_45] : memref<18x18x8xf32, #tpu.memory_space<vmem>>, vector<18x18x8xf32>
    tpu.vector_store %arg10[%c0_43, %c0_44, %c0_45], %34 {strides = array<i32>} : memref<18x18x8xf32, #tpu.memory_space<vmem>>, vector<18x18x8xf32>,
    %36 = vector.shape_cast %33 : vector<256x8xf32> to vector<16x16x8xf32>
    %c1_46 = arith.constant 1 : index
    %c1_47 = arith.constant 1 : index
    %c0_48 = arith.constant 0 : index
    %37 = vector.load %arg10[%c1_46, %c1_47, %c0_48] : memref<18x18x8xf32, #tpu.memory_space<vmem>>, vector<16x16x8xf32>
    tpu.vector_store %arg10[%c1_46, %c1_47, %c0_48], %36 {strides = array<i32>} : memref<18x18x8xf32, #tpu.memory_space<vmem>>, vector<16x16x8xf32>,
    %c0_49 = arith.constant 0 : index
    %c0_50 = arith.constant 0 : index
    %c0_51 = arith.constant 0 : index
    %38 = vector.load %arg10[%c0_49, %c0_50, %c0_51] : memref<18x18x8xf32, #tpu.memory_space<vmem>>, vector<16x16x8xf32>
    %39 = vector.shape_cast %38 : vector<16x16x8xf32> to vector<256x8xf32>
    %c0_52 = arith.constant 0 : index
    %c1_53 = arith.constant 1 : index
    %c0_54 = arith.constant 0 : index
    %40 = vector.load %arg10[%c0_52, %c1_53, %c0_54] : memref<18x18x8xf32, #tpu.memory_space<vmem>>, vector<16x16x8xf32>
    %41 = vector.shape_cast %40 : vector<16x16x8xf32> to vector<256x8xf32>
    %c0_55 = arith.constant 0 : index
    %c2_56 = arith.constant 2 : index
    %c0_57 = arith.constant 0 : index
    %42 = vector.load %arg10[%c0_55, %c2_56, %c0_57] : memref<18x18x8xf32, #tpu.memory_space<vmem>>, vector<16x16x8xf32>
    %43 = vector.shape_cast %42 : vector<16x16x8xf32> to vector<256x8xf32>
    %c1_58 = arith.constant 1 : index
    %c0_59 = arith.constant 0 : index
    %c0_60 = arith.constant 0 : index
    %44 = vector.load %arg10[%c1_58, %c0_59, %c0_60] : memref<18x18x8xf32, #tpu.memory_space<vmem>>, vector<16x16x8xf32>
    %45 = vector.shape_cast %44 : vector<16x16x8xf32> to vector<256x8xf32>
    %c1_61 = arith.constant 1 : index
    %c1_62 = arith.constant 1 : index
    %c0_63 = arith.constant 0 : index
    %46 = vector.load %arg10[%c1_61, %c1_62, %c0_63] : memref<18x18x8xf32, #tpu.memory_space<vmem>>, vector<16x16x8xf32>
    %47 = vector.shape_cast %46 : vector<16x16x8xf32> to vector<256x8xf32>
    %c1_64 = arith.constant 1 : index
    %c2_65 = arith.constant 2 : index
    %c0_66 = arith.constant 0 : index
    %48 = vector.load %arg10[%c1_64, %c2_65, %c0_66] : memref<18x18x8xf32, #tpu.memory_space<vmem>>, vector<16x16x8xf32>
    %49 = vector.shape_cast %48 : vector<16x16x8xf32> to vector<256x8xf32>
    %c2_67 = arith.constant 2 : index
    %c0_68 = arith.constant 0 : index
    %c0_69 = arith.constant 0 : index
    %50 = vector.load %arg10[%c2_67, %c0_68, %c0_69] : memref<18x18x8xf32, #tpu.memory_space<vmem>>, vector<16x16x8xf32>
    %51 = vector.shape_cast %50 : vector<16x16x8xf32> to vector<256x8xf32>
    %c2_70 = arith.constant 2 : index
    %c1_71 = arith.constant 1 : index
    %c0_72 = arith.constant 0 : index
    %52 = vector.load %arg10[%c2_70, %c1_71, %c0_72] : memref<18x18x8xf32, #tpu.memory_space<vmem>>, vector<16x16x8xf32>
    %53 = vector.shape_cast %52 : vector<16x16x8xf32> to vector<256x8xf32>
    %c2_73 = arith.constant 2 : index
    %c2_74 = arith.constant 2 : index
    %c0_75 = arith.constant 0 : index
    %54 = vector.load %arg10[%c2_73, %c2_74, %c0_75] : memref<18x18x8xf32, #tpu.memory_space<vmem>>, vector<16x16x8xf32>
    %55 = vector.shape_cast %54 : vector<16x16x8xf32> to vector<256x8xf32>
    %56 = tpu.concatenate %39, %41, %43, %45, %47, %49, %51, %53, %55 in 1 : vector<256x8xf32>, vector<256x8xf32>, vector<256x8xf32>, vector<256x8xf32>, vector<256x8xf32>, vector<256x8xf32>, vector<256x8xf32>, vector<256x8xf32>, vector<256x8xf32> -> vector<256x72xf32>
    %c0_76 = arith.constant 0 : index
    %c0_77 = arith.constant 0 : index
    %57 = vector.load %arg5[%c0_76, %c0_77] : memref<72x8xf32, #tpu.memory_space<vmem>>, vector<72x8xf32>
    %cst_78 = arith.constant dense<0.000000e+00> : vector<256x8xf32>
    %58 = tpu.matmul %56, %57, %cst_78 {dimension_numbers = #tpu.dot_dimension_numbers<[1], [0], [0], [1], [0, 0, 1, 1], [], []>} : vector<256x72xf32>, vector<72x8xf32>, vector<256x8xf32> -> vector<256x8xf32>
    %c0_79 = arith.constant 0 : index
    %c0_80 = arith.constant 0 : index
    %59 = vector.load %arg6[%c0_79, %c0_80] : memref<1x8xf32, #tpu.memory_space<vmem>>, vector<1x8xf32>
    %60 = vector.broadcast %59 : vector<1x8xf32> to vector<256x8xf32>
    %61 = arith.mulf %58, %60 : vector<256x8xf32>
    %c0_81 = arith.constant 0 : index
    %c0_82 = arith.constant 0 : index
    %62 = vector.load %arg7[%c0_81, %c0_82] : memref<1x8xf32, #tpu.memory_space<vmem>>, vector<1x8xf32>
    %63 = vector.broadcast %62 : vector<1x8xf32> to vector<256x8xf32>
    %64 = arith.addf %61, %63 : vector<256x8xf32>
    %65 = vector.shape_cast %1 : vector<16x16x8xf32> to vector<256x8xf32>
    %66 = arith.addf %64, %65 : vector<256x8xf32>
    %cst_83 = arith.constant 0.000000e+00 : f32
    %67 = vector.broadcast %cst_83 : f32 to vector<256x8xf32>
    %68 = arith.maximumf %66, %67 : vector<256x8xf32>
    %69 = vector.shape_cast %68 : vector<256x8xf32> to vector<16x16x8xf32>
    %c0_84 = arith.constant 0 : index
    %c0_85 = arith.constant 0 : index
    %c0_86 = arith.constant 0 : index
    %c0_87 = arith.constant 0 : index
    %70 = vector.load %arg8[%c0_84, %c0_85, %c0_86, %c0_87] : memref<1x16x16x8xf32, #tpu.memory_space<vmem>>, vector<1x16x16x8xf32>
    %71 = vector.shape_cast %70 : vector<1x16x16x8xf32> to vector<16x16x8xf32>
    %72 = vector.shape_cast %69 : vector<16x16x8xf32> to vector<1x16x16x8xf32>
    tpu.vector_store %arg8[%c0_84, %c0_85, %c0_86, %c0_87], %72 {strides = array<i32>} : memref<1x16x16x8xf32, #tpu.memory_space<vmem>>, vector<1x16x16x8xf32>,
    return
  }
  func.func @transform_0(%arg0: i32) -> (i32, i32, i32, i32) {
    %c0_i32 = arith.constant 0 : i32
    %c0_i32_0 = arith.constant 0 : i32
    %c0_i32_1 = arith.constant 0 : i32
    %c0_i32_2 = arith.constant 0 : i32
    return %arg0, %c0_i32, %c0_i32_0, %c0_i32_1 : i32, i32, i32, i32
  }
  func.func @transform_1(%arg0: i32) -> (i32, i32) {
    %c0_i32 = arith.constant 0 : i32
    %c0_i32_0 = arith.constant 0 : i32
    %c0_i32_1 = arith.constant 0 : i32
    return %c0_i32, %c0_i32_0 : i32, i32
  }
  func.func @transform_2(%arg0: i32) -> (i32, i32) {
    %c0_i32 = arith.constant 0 : i32
    %c0_i32_0 = arith.constant 0 : i32
    %c0_i32_1 = arith.constant 0 : i32
    return %c0_i32, %c0_i32_0 : i32, i32
  }
  func.func @transform_3(%arg0: i32) -> (i32, i32) {
    %c0_i32 = arith.constant 0 : i32
    %c0_i32_0 = arith.constant 0 : i32
    %c0_i32_1 = arith.constant 0 : i32
    return %c0_i32, %c0_i32_0 : i32, i32
  }
  func.func @transform_4(%arg0: i32) -> (i32, i32) {
    %c0_i32 = arith.constant 0 : i32
    %c0_i32_0 = arith.constant 0 : i32
    %c0_i32_1 = arith.constant 0 : i32
    return %c0_i32, %c0_i32_0 : i32, i32
  }
  func.func @transform_5(%arg0: i32) -> (i32, i32) {
    %c0_i32 = arith.constant 0 : i32
    %c0_i32_0 = arith.constant 0 : i32
    %c0_i32_1 = arith.constant 0 : i32
    return %c0_i32, %c0_i32_0 : i32, i32
  }
  func.func @transform_6(%arg0: i32) -> (i32, i32) {
    %c0_i32 = arith.constant 0 : i32
    %c0_i32_0 = arith.constant 0 : i32
    %c0_i32_1 = arith.constant 0 : i32
    return %c0_i32, %c0_i32_0 : i32, i32
  }
  func.func @transform_7(%arg0: i32) -> (i32, i32, i32, i32) {
    %c0_i32 = arith.constant 0 : i32
    %c0_i32_0 = arith.constant 0 : i32
    %c0_i32_1 = arith.constant 0 : i32
    %c0_i32_2 = arith.constant 0 : i32
    return %arg0, %c0_i32, %c0_i32_0, %c0_i32_1 : i32, i32, i32, i32
  }
}

</mosaic_0001>

<bundles_post_ra>
// kernel: basic_block_forward.1
= control target key start
LH: loop header
LB: loop body
LE: loop exit
PB: predicated region body
PF: predicated region fallthrough
CT: control target
= control target key end

     0   :  { %s4612_s24 = smov 0   ;;  %s8278_s0 = inlined_call_operand.vmem [shape: f32[2,16,16,8], index: 0, kind: input, shape index: {}]   ;;  %s8279_s1 = inlined_call_operand.vmem [shape: f32[72,8], index: 1, kind: input, shape index: {}]   ;;  %s8280_s2 = inlined_call_operand.vmem [shape: f32[1,8], index: 2, kind: input, shape index: {}]   ;;  %s8281_s3 = inlined_call_operand.vmem [shape: f32[1,8], index: 3, kind: input, shape index: {}]   ;;  %s8282_s4 = inlined_call_operand.vmem [shape: f32[72,8], index: 4, kind: input, shape index: {}]   ;;  %s8283_s5 = inlined_call_operand.vmem [shape: f32[1,8], index: 5, kind: input, shape index: {}]   ;;  %s8284_s6 = inlined_call_operand.vmem [shape: f32[1,8], index: 6, kind: input, shape index: {}]   ;;  %s8285_s7 = inlined_call_operand.vmem [shape: f32[2,16,16,8], index: 7, kind: output, shape index: {}]  }
   0x1 LB: > { %s4396_s25 = sadd.s32 4294967295, %s4561_s24   ;;  %p4400_p0 = scmp.ge.s32.totalorder %s4561_s24, 1  ;;  %s4561_s24 = sphi %s4612_s24, %s17_s24  }
   0x2   : > { %p237_p1 = scmp.lt.s32.totalorder %s4561_s24, 3 }
   0x4   : > { %p238_p2 = pnand %p4400_p0, %p237_p1 }
   0x6   : > { %241 = sbr.rel (%p238_p2) target bundleno = 1976 (0x7b8), region = 48 }
   0xb   : > { %vm311_vm0 = vcmask 64512   ;;  %v4563_v0 = vmov 0.0   ;;  %s4564_s26 = smov 8   ;;  %p269_p3 = scmp.lt.s32.totalorder %s4396_s25, 1  ;;  %vm314_vm1 = vcmask 58368   ;;  %vm1745_vm2 = vcmask 130048  }
   0xc   : > { %312 = vst.msk [vmem:[#allocation2] sm:$0xff] %vm311_vm0, %v4563_v0  ;;  %s4565_s8 = smov 16   ;;  %s4566_s9 = smov 24   ;;  %vm1778_vm3 = vcmask 195584   ;;  %vm1844_vm4 = vcmask 326656   ;;  %vm1811_vm5 = vcmask 261120  }
   0xd   : > { %313 = vst.msk [vmem:[#allocation2 + $0x8] sm:$0xff] %vm311_vm0, %v4563_v0  ;;  %s9015_s25 = smov (!%p269_p3, %s4396_s25), 1  ;;  %s4567_s10 = smov 32   ;;  %vm1877_vm6 = vcmask 392192   ;;  %vm1943_vm7 = vcmask 523264   ;;  %vm1910_vm8 = vcmask 457728  }
   0xe   : > { %316 = vst.msk [vmem:[#allocation2 + $0x18] sm:$0xff] %vm311_vm0, %v4563_v0  ;;  %s4471_s27 = sshll.u32 %s9015_s25, 8  ;;  %s4568_s11 = smov 40   ;;  %vm1985_vm9 = vcmask 588800  }
   0xf   : > { %317 = vst.msk [vmem:[#allocation2 + $0x20] sm:$0xff] %vm311_vm0, %v4563_v0  ;;  %s4767_s30 = scalar_lea.vmem %s8278_s0, %s4471_s27  ;;  %s4569_s12 = smov 48  }
  0x10   : > { %319 = vst.msk [vmem:[#allocation2 + $0x30] sm:$0xff] %vm311_vm0, %v4563_v0  ;;  %v4776_v2 = vld [vmem:[%s4767_s30 + $0x10] sm:$0xff]  ;;  %v4781_v3 = vld [vmem:[%s4767_s30] sm:$0xff]  ;;  %v4867_v7 = vld [vmem:[%s4767_s30 + $0x18] sm:$0xff]  ;;  %s4570_s13 = smov 56   ;;  %s4571_s14 = smov 64  }
  0x11   : > { %320 = vst.msk [vmem:[#allocation2 + $0x38] sm:$0xff] %vm311_vm0, %v4563_v0  ;;  %v4872_v8 = vld [vmem:[%s4767_s30 + $0x8] sm:$0xff]  ;;  %v4877_v9 = vld [vmem:[%s4767_s30 + $0x20] sm:$0xff]  ;;  %v4882_v10 = vld [vmem:[%s4767_s30 + $0x30] sm:$0xff]  ;;  %s7988_s16 = scalar_lea.vmem %s8285_s7, %s4471_s27 }
  0x12   : > { %322 = vst.msk [vmem:[#allocation2 + $0x48] sm:$0xff] %vm311_vm0, %v4563_v0  ;;  %v4887_v11 = vld [vmem:[%s4767_s30 + $0x28] sm:$0xff]  ;;  %v4892_v12 = vld [vmem:[%s4767_s30 + $0x38] sm:$0xff]  ;;  %v4902_v14 = vld [vmem:[%s4767_s30 + $0x40] sm:$0xff] }
  0x13   : > { %323 = vst.msk [vmem:[#allocation2 + $0x50] sm:$0xff] %vm311_vm0, %v4563_v0  ;;  %v4897_v13 = vld [vmem:[%s4767_s30 + $0x48] sm:$0xff]  ;;  %v4907_v15 = vld [vmem:[%s4767_s30 + $0x50] sm:$0xff]  ;;  %v4912_v16 = vld [vmem:[%s4767_s30 + $0x60] sm:$0xff] }
  0x14   : > { %v432_v1 = vld [vmem:[#allocation2 + $0x1] sm:$0xff]  ;;  %325 = vst.msk [vmem:[#allocation2 + $0x60] sm:$0xff] %vm311_vm0, %v4563_v0  ;;  %v4919_v18 = vld [vmem:[%s4767_s30 + $0x58] sm:$0xff]  ;;  %v4944_v23 = vld [vmem:[%s4767_s30 + $0x70] sm:$0xff] }
  0x15   : > { %721 = vrot.lane.b32.xlu0 %v432_v1, %s4564_s26  ;;  %326 = vst.msk [vmem:[#allocation2 + $0x68] sm:$0xff] %vm311_vm0, %v4563_v0  ;;  %v4928_v20 = vld [vmem:[%s4767_s30 + $0x68] sm:$0xff]  ;;  %v4937_v22 = vld [vmem:[%s4767_s30 + $0x78] sm:$0xff]  ;;  %v4949_v24 = vld [vmem:[%s4767_s30 + $0x80] sm:$0xff] }
  0x16   : > { %328 = vst.msk [vmem:[#allocation2 + $0x78] sm:$0xff] %vm311_vm0, %v4563_v0  ;;  %v4954_v25 = vld [vmem:[%s4767_s30 + $0x90] sm:$0xff]  ;;  %v4961_v27 = vld [vmem:[%s4767_s30 + $0x88] sm:$0xff]  ;;  %v4968_v29 = vld [vmem:[%s4767_s30 + $0x98] sm:$0xff] }
  0x17   : > { %329 = vst.msk [vmem:[#allocation2 + $0x80] sm:$0xff] %vm311_vm0, %v4563_v0  ;;  %v4979_v31 = vld [vmem:[%s4767_s30 + $0xa8] sm:$0xff]  ;;  %v4982_v32 = vld [vmem:[%s4767_s30 + $0xa0] sm:$0xff]  ;;  %v4993_v33 = vld [vmem:[%s4767_s30 + $0xb0] sm:$0xff] }
  0x18   : > { %331 = vst.msk [vmem:[#allocation2 + $0x90] sm:$0xff] %vm311_vm0, %v4563_v0  ;;  %v5008_v37 = vld [vmem:[%s4767_s30 + $0xc0] sm:$0xff]  ;;  %v5011_v38 = vld [vmem:[%s4767_s30 + $0xb8] sm:$0xff]  ;;  %v5022_v39 = vld [vmem:[%s4767_s30 + $0xc8] sm:$0xff] }
  0x19   : > { %332 = vst.msk [vmem:[#allocation2 + $0x98] sm:$0xff] %vm311_vm0, %v4563_v0  ;;  %v5035_v43 = vld [vmem:[%s4767_s30 + $0xd8] sm:$0xff]  ;;  %v5038_v44 = vld [vmem:[%s4767_s30 + $0xd0] sm:$0xff]  ;;  %v5049_v45 = vld [vmem:[%s4767_s30 + $0xe0] sm:$0xff] }
  0x1a   : > { %334 = vst.msk [vmem:[#allocation2 + $0xa8] sm:$0xff] %vm311_vm0, %v4563_v0  ;;  %v5062_v49 = vld [vmem:[%s4767_s30 + $0xe8] sm:$0xff] }
  0x1b   : > { %335 = vst.msk [vmem:[#allocation2 + $0xb0] sm:$0xff] %vm311_vm0, %v4563_v0  ;;  %v464_v62 = vld [vmem:[#allocation2 + $0x2] sm:$0xff] }
  0x1c   : > { %337 = vst.msk [vmem:[#allocation2 + $0xc0] sm:$0xff] %vm311_vm0, %v4563_v0 }
  0x1d   : > { %338 = vst.msk [vmem:[#allocation2 + $0xc8] sm:$0xff] %vm311_vm0, %v4563_v0 }
  0x1e   : > { %340 = vst.msk [vmem:[#allocation2 + $0xd8] sm:$0xff] %vm311_vm0, %v4563_v0 }
  0x1f   : > { %341 = vst.msk [vmem:[#allocation2 + $0xe0] sm:$0xff] %vm311_vm0, %v4563_v0 }
  0x20   : > { %343 = vst.msk [vmem:[#allocation2 + $0xf0] sm:$0xff] %vm311_vm0, %v4563_v0 }
  0x21   : > { %344 = vst.msk [vmem:[#allocation2 + $0xf8] sm:$0xff] %vm311_vm0, %v4563_v0 }
  0x22   : > { %346 = vst.msk [vmem:[#allocation2 + $0x108] sm:$0xff] %vm311_vm0, %v4563_v0 }
  0x23   : > { %347 = vst.msk [vmem:[#allocation2 + $0x110] sm:$0xff] %vm311_vm0, %v4563_v0 }
  0x24   : > { %349 = vst.msk [vmem:[#allocation2 + $0x120] sm:$0xff] %vm311_vm0, %v4563_v0 }
  0x25   : > { %350 = vst.msk [vmem:[#allocation2 + $0x128] sm:$0xff] %vm311_vm0, %v4563_v0 }
  0x26   : > { %352 = vst.msk [vmem:[#allocation2 + $0x138] sm:$0xff] %vm311_vm0, %v4563_v0 }
  0x27   : > { %353 = vst.msk [vmem:[#allocation2 + $0x140] sm:$0xff] %vm311_vm0, %v4563_v0 }
  0x28   : > { %355 = vst.msk [vmem:[#allocation2 + $0x150] sm:$0xff] %vm311_vm0, %v4563_v0 }
  0x29   : > { %356 = vst.msk [vmem:[#allocation2 + $0x158] sm:$0xff] %vm311_vm0, %v4563_v0 }
  0x2a   : > { %358 = vst.msk [vmem:[#allocation2 + $0x168] sm:$0xff] %vm311_vm0, %v4563_v0 }
  0x2b   : > { %359 = vst.msk [vmem:[#allocation2 + $0x170] sm:$0xff] %vm311_vm0, %v4563_v0 }
  0x2c   : > { %361 = vst.msk [vmem:[#allocation2 + $0x180] sm:$0xff] %vm311_vm0, %v4563_v0 }
  0x2d   : > { %362 = vst.msk [vmem:[#allocation2 + $0x188] sm:$0xff] %vm311_vm0, %v4563_v0 }
  0x2e   : > { %364 = vst.msk [vmem:[#allocation2 + $0x198] sm:$0xff] %vm311_vm0, %v4563_v0 }
  0x2f   : > { %365 = vst.msk [vmem:[#allocation2 + $0x1a0] sm:$0xff] %vm311_vm0, %v4563_v0 }
  0x30   : > { %2299 = vst.msk [vmem:[#allocation3] sm:$0xff] %vm311_vm0, %v4563_v0 }
  0x31   : > { %2300 = vst.msk [vmem:[#allocation3 + $0x8] sm:$0xff] %vm311_vm0, %v4563_v0 }
  0x32   : > { %2302 = vst.msk [vmem:[#allocation3 + $0x18] sm:$0xff] %vm311_vm0, %v4563_v0 }
  0x33   : > { %2303 = vst.msk [vmem:[#allocation3 + $0x20] sm:$0xff] %vm311_vm0, %v4563_v0 }
  0x34   : > { %2305 = vst.msk [vmem:[#allocation3 + $0x30] sm:$0xff] %vm311_vm0, %v4563_v0 }
  0x35   : > { %2306 = vst.msk [vmem:[#allocation3 + $0x38] sm:$0xff] %vm311_vm0, %v4563_v0 }
  0x36   : > { %2308 = vst.msk [vmem:[#allocation3 + $0x48] sm:$0xff] %vm311_vm0, %v4563_v0 }
  0x37   : > { %2309 = vst.msk [vmem:[#allocation3 + $0x50] sm:$0xff] %vm311_vm0, %v4563_v0 }
  0x38   : > { %2311 = vst.msk [vmem:[#allocation3 + $0x60] sm:$0xff] %vm311_vm0, %v4563_v0 }
  0x39   : > { %2312 = vst.msk [vmem:[#allocation3 + $0x68] sm:$0xff] %vm311_vm0, %v4563_v0 }
  0x3a   : > { %2314 = vst.msk [vmem:[#allocation3 + $0x78] sm:$0xff] %vm311_vm0, %v4563_v0 }
  0x3b   : > { %2315 = vst.msk [vmem:[#allocation3 + $0x80] sm:$0xff] %vm311_vm0, %v4563_v0 }
  0x3c   : > { %2317 = vst.msk [vmem:[#allocation3 + $0x90] sm:$0xff] %vm311_vm0, %v4563_v0 }
  0x3d   : > { %2318 = vst.msk [vmem:[#allocation3 + $0x98] sm:$0xff] %vm311_vm0, %v4563_v0 }
  0x3e   : > { %2320 = vst.msk [vmem:[#allocation3 + $0xa8] sm:$0xff] %vm311_vm0, %v4563_v0 }
  0x3f   : > { %2321 = vst.msk [vmem:[#allocation3 + $0xb0] sm:$0xff] %vm311_vm0, %v4563_v0 }
  0x40   : > { %2323 = vst.msk [vmem:[#allocation3 + $0xc0] sm:$0xff] %vm311_vm0, %v4563_v0 }
  0x41   : > { %2324 = vst.msk [vmem:[#allocation3 + $0xc8] sm:$0xff] %vm311_vm0, %v4563_v0 }
  0x42   : > { %2326 = vst.msk [vmem:[#allocation3 + $0xd8] sm:$0xff] %vm311_vm0, %v4563_v0 }
  0x43   : > { %2327 = vst.msk [vmem:[#allocation3 + $0xe0] sm:$0xff] %vm311_vm0, %v4563_v0 }
  0x44   : > { %2329 = vst.msk [vmem:[#allocation3 + $0xf0] sm:$0xff] %vm311_vm0, %v4563_v0 }
  0x45   : > { %2330 = vst.msk [vmem:[#allocation3 + $0xf8] sm:$0xff] %vm311_vm0, %v4563_v0 }
  0x46   : > { %2332 = vst.msk [vmem:[#allocation3 + $0x108] sm:$0xff] %vm311_vm0, %v4563_v0 }
  0x47   : > { %2333 = vst.msk [vmem:[#allocation3 + $0x110] sm:$0xff] %vm311_vm0, %v4563_v0 }
  0x48   : > { %2335 = vst.msk [vmem:[#allocation3 + $0x120] sm:$0xff] %vm311_vm0, %v4563_v0 }
  0x49   : > { %2336 = vst.msk [vmem:[#allocation3 + $0x128] sm:$0xff] %vm311_vm0, %v4563_v0 }
  0x4a   : > { %2338 = vst.msk [vmem:[#allocation3 + $0x138] sm:$0xff] %vm311_vm0, %v4563_v0 }
  0x4b   : > { %2339 = vst.msk [vmem:[#allocation3 + $0x140] sm:$0xff] %vm311_vm0, %v4563_v0 }
  0x4c   : > { %2341 = vst.msk [vmem:[#allocation3 + $0x150] sm:$0xff] %vm311_vm0, %v4563_v0 }
  0x4d   : > { %2342 = vst.msk [vmem:[#allocation3 + $0x158] sm:$0xff] %vm311_vm0, %v4563_v0 }
  0x4e   : > { %2344 = vst.msk [vmem:[#allocation3 + $0x168] sm:$0xff] %vm311_vm0, %v4563_v0 }
  0x4f   : > { %2345 = vst.msk [vmem:[#allocation3 + $0x170] sm:$0xff] %vm311_vm0, %v4563_v0 }
  0x50   : > { %2347 = vst.msk [vmem:[#allocation3 + $0x180] sm:$0xff] %vm311_vm0, %v4563_v0 }
  0x51   : > { %2348 = vst.msk [vmem:[#allocation3 + $0x188] sm:$0xff] %vm311_vm0, %v4563_v0 }
  0x52   : > { %8368 = vst [vmem:[#allocation4_spill] sm:$0xff] %v4776_v2 }
  0x53   : > { %2350 = vst.msk [vmem:[#allocation3 + $0x198] sm:$0xff] %vm311_vm0, %v4563_v0 }
  0x54   : > { %8369 = vst [vmem:[#allocation5_spill] sm:$0xff] %v4781_v3 }
  0x55   : > { %2351 = vst.msk [vmem:[#allocation3 + $0x1a0] sm:$0xff] %vm311_vm0, %v4563_v0 }
  0x56   : > { %370 = vst.msk [vmem:[#allocation2 + $0x31] sm:$0xff] %vm311_vm0, %v4776_v2 }
  0x57   : > { %368 = vst.msk [vmem:[#allocation2 + $0x19] sm:$0xff] %vm311_vm0, %v4781_v3 }
  0x58   : > { %315 = vst.msk [vmem:[#allocation2 + $0x10] sm:$0x3] %vm314_vm1, %v4563_v0 }
  0x59   : > { %318 = vst.msk [vmem:[#allocation2 + $0x28] sm:$0x3] %vm314_vm1, %v4563_v0 }
  0x5a   : > { %321 = vst.msk [vmem:[#allocation2 + $0x40] sm:$0x3] %vm314_vm1, %v4563_v0 }
  0x5b   : > { %324 = vst.msk [vmem:[#allocation2 + $0x58] sm:$0x3] %vm314_vm1, %v4563_v0 }
  0x5c   : > { %327 = vst.msk [vmem:[#allocation2 + $0x70] sm:$0x3] %vm314_vm1, %v4563_v0 }
  0x5d   : > { %v4799_v4 = vld [vmem:[#allocation2 + $0x31] sm:$0xff]  ;;  %330 = vst.msk [vmem:[#allocation2 + $0x88] sm:$0x3] %vm314_vm1, %v4563_v0 }
  0x5e   : > { %729 = vrot.lane.b32.xlu2 %v4799_v4, %s4564_s26  ;;  %v4805_v5 = vld [vmem:[#allocation2 + $0x19] sm:$0xff]  ;;  %333 = vst.msk [vmem:[#allocation2 + $0xa0] sm:$0x3] %vm314_vm1, %v4563_v0 }
  0x5f   : > { %725 = vrot.lane.b32.xlu1 %v4805_v5, %s4564_s26  ;;  %v433_v6 = vld [vmem:[#allocation2 + $0x9] sm:$0xff]  ;;  %336 = vst.msk [vmem:[#allocation2 + $0xb8] sm:$0x3] %vm314_vm1, %v4563_v0 }
  0x60   : > { %723 = vrot.lane.b32.xlu0 %v433_v6, %s4564_s26  ;;  %339 = vst.msk [vmem:[#allocation2 + $0xd0] sm:$0x3] %vm314_vm1, %v4563_v0 }
  0x61   : > { %342 = vst.msk [vmem:[#allocation2 + $0xe8] sm:$0x3] %vm314_vm1, %v4563_v0 }
  0x62   : > { %345 = vst.msk [vmem:[#allocation2 + $0x100] sm:$0x3] %vm314_vm1, %v4563_v0 }
  0x63   : > { %348 = vst.msk [vmem:[#allocation2 + $0x118] sm:$0x3] %vm314_vm1, %v4563_v0 }
  0x64   : > { %351 = vst.msk [vmem:[#allocation2 + $0x130] sm:$0x3] %vm314_vm1, %v4563_v0 }
  0x65   : > { %354 = vst.msk [vmem:[#allocation2 + $0x148] sm:$0x3] %vm314_vm1, %v4563_v0 }
  0x66   : > { %357 = vst.msk [vmem:[#allocation2 + $0x160] sm:$0x3] %vm314_vm1, %v4563_v0 }
  0x67   : > { %360 = vst.msk [vmem:[#allocation2 + $0x178] sm:$0x3] %vm314_vm1, %v4563_v0 }
  0x68   : > { %363 = vst.msk [vmem:[#allocation2 + $0x190] sm:$0x3] %vm314_vm1, %v4563_v0 }
  0x69   : > { %366 = vst.msk [vmem:[#allocation2 + $0x1a8] sm:$0x3] %vm314_vm1, %v4563_v0 }
  0x6a   : > { %2301 = vst.msk [vmem:[#allocation3 + $0x10] sm:$0x3] %vm314_vm1, %v4563_v0 }
  0x6b   : > { %2304 = vst.msk [vmem:[#allocation3 + $0x28] sm:$0x3] %vm314_vm1, %v4563_v0 }
  0x6c   : > { %2307 = vst.msk [vmem:[#allocation3 + $0x40] sm:$0x3] %vm314_vm1, %v4563_v0 }
  0x6d   : > { %2310 = vst.msk [vmem:[#allocation3 + $0x58] sm:$0x3] %vm314_vm1, %v4563_v0 }
  0x6e   : > { %2313 = vst.msk [vmem:[#allocation3 + $0x70] sm:$0x3] %vm314_vm1, %v4563_v0 }
  0x6f   : > { %2316 = vst.msk [vmem:[#allocation3 + $0x88] sm:$0x3] %vm314_vm1, %v4563_v0 }
  0x70   : > { %2319 = vst.msk [vmem:[#allocation3 + $0xa0] sm:$0x3] %vm314_vm1, %v4563_v0 }
  0x71   : > { %2322 = vst.msk [vmem:[#allocation3 + $0xb8] sm:$0x3] %vm314_vm1, %v4563_v0 }
  0x72   : > { %2325 = vst.msk [vmem:[#allocation3 + $0xd0] sm:$0x3] %vm314_vm1, %v4563_v0 }
  0x73   : > { %2328 = vst.msk [vmem:[#allocation3 + $0xe8] sm:$0x3] %vm314_vm1, %v4563_v0 }
  0x74   : > { %2331 = vst.msk [vmem:[#allocation3 + $0x100] sm:$0x3] %vm314_vm1, %v4563_v0 }
  0x75   : > { %2334 = vst.msk [vmem:[#allocation3 + $0x118] sm:$0x3] %vm314_vm1, %v4563_v0 }
  0x76   : > { %2337 = vst.msk [vmem:[#allocation3 + $0x130] sm:$0x3] %vm314_vm1, %v4563_v0 }
  0x77   : > { %2340 = vst.msk [vmem:[#allocation3 + $0x148] sm:$0x3] %vm314_vm1, %v4563_v0 }
  0x78   : > { %2343 = vst.msk [vmem:[#allocation3 + $0x160] sm:$0x3] %vm314_vm1, %v4563_v0 }
  0x79   : > { %2346 = vst.msk [vmem:[#allocation3 + $0x178] sm:$0x3] %vm314_vm1, %v4563_v0 }
  0x7a   : > { %8370 = vst [vmem:[#allocation6_spill] sm:$0xff] %v4867_v7 }
  0x7b   : > { %2349 = vst.msk [vmem:[#allocation3 + $0x190] sm:$0x3] %vm314_vm1, %v4563_v0 }
  0x7c   : > { %8371 = vst [vmem:[#allocation7_spill] sm:$0xff] %v4872_v8 }
  0x7d   : > { %2352 = vst.msk [vmem:[#allocation3 + $0x1a8] sm:$0x3] %vm314_vm1, %v4563_v0  ;;  %v465_v0 = vld [vmem:[#allocation2 + $0xa] sm:$0xff] }
  0x7e   : > { %8372 = vst [vmem:[#allocation8_spill] sm:$0xff] %v4877_v9 }
  0x7f   : > { %371 = vst.msk [vmem:[#allocation2 + $0x39] sm:$0xff] %vm311_vm0, %v4867_v7 }
  0x80   : > { %8373 = vst [vmem:[#allocation9_spill] sm:$0xff] %v4882_v10 }
  0x81   : > { %369 = vst.msk [vmem:[#allocation2 + $0x21] sm:$0xff] %vm311_vm0, %v4872_v8 }
  0x82   : > { %8374 = vst [vmem:[#allocation10_spill] sm:$0xff] %v4887_v11 }
  0x83   : > { %372 = vst.msk [vmem:[#allocation2 + $0x49] sm:$0xff] %vm311_vm0, %v4877_v9 }
  0x84   : > { %8375 = vst [vmem:[#allocation11_spill] sm:$0xff] %v4892_v12 }
  0x85   : > { %374 = vst.msk [vmem:[#allocation2 + $0x61] sm:$0xff] %vm311_vm0, %v4882_v10 }
  0x86   : > { %8376 = vst [vmem:[#allocation12_spill] sm:$0xff] %v4897_v13  ;;  %v4914_v17 = vld [vmem:[#allocation2 + $0x39] sm:$0xff] }
  0x87   : > { %373 = vst.msk [vmem:[#allocation2 + $0x51] sm:$0xff] %vm311_vm0, %v4887_v11  ;;  %731 = vrot.lane.b32.xlu2 %v4914_v17, %s4564_s26 }
  0x88   : > { %8377 = vst [vmem:[#allocation13_spill] sm:$0xff] %v4902_v14  ;;  %v4923_v19 = vld [vmem:[#allocation2 + $0x21] sm:$0xff] }
  0x89   : > { %375 = vst.msk [vmem:[#allocation2 + $0x69] sm:$0xff] %vm311_vm0, %v4892_v12  ;;  %727 = vrot.lane.b32.xlu1 %v4923_v19, %s4564_s26  ;;  %v5124_v1 = vld [vmem:[#allocation2 + $0x22] sm:$0xff]  ;;  %v5126_v6 = vld [vmem:[#allocation2 + $0x1a] sm:$0xff] }
  0x8a   : > { %8378 = vst [vmem:[#allocation14_spill] sm:$0xff] %v4907_v15  ;;  %v4932_v21 = vld [vmem:[#allocation2 + $0x49] sm:$0xff] }
  0x8b   : > { %377 = vst.msk [vmem:[#allocation2 + $0x81] sm:$0xff] %vm311_vm0, %v4897_v13  ;;  %733 = vrot.lane.b32.xlu0 %v4932_v21, %s4564_s26 }
  0x8c   : > { %8379 = vst [vmem:[#allocation15_spill] sm:$0xff] %v4912_v16  ;;  %v4956_v26 = vld [vmem:[#allocation2 + $0x61] sm:$0xff] }
  0x8d   : > { %376 = vst.msk [vmem:[#allocation2 + $0x79] sm:$0xff] %vm311_vm0, %v4902_v14 }
  0x8e   : > { %8380 = vst [vmem:[#allocation16_spill] sm:$0xff] %v4919_v18  ;;  %v4963_v28 = vld [vmem:[#allocation2 + $0x51] sm:$0xff] }
  0x8f   : > { %378 = vst.msk [vmem:[#allocation2 + $0x91] sm:$0xff] %vm311_vm0, %v4907_v15  ;;  %737 = vrot.lane.b32.xlu2 %v4956_v26, %s4564_s26 }
  0x90   : > { %8381 = vst [vmem:[#allocation17_spill] sm:$0xff] %v4928_v20  ;;  %v4970_v30 = vld [vmem:[#allocation2 + $0x69] sm:$0xff] }
  0x91   : > { %380 = vst.msk [vmem:[#allocation2 + $0xa9] sm:$0xff] %vm311_vm0, %v4912_v16  ;;  %735 = vrot.lane.b32.xlu1 %v4963_v28, %s4564_s26  ;;  %v5152_v16 = vld [vmem:[#allocation2 + $0x6a] sm:$0xff] }
  0x92   : > { %8382 = vst [vmem:[#allocation18_spill] sm:$0xff] %v4937_v22  ;;  %v4999_v34 = vld [vmem:[#allocation2 + $0x81] sm:$0xff] }
  0x93   : > { %379 = vst.msk [vmem:[#allocation2 + $0x99] sm:$0xff] %vm311_vm0, %v4919_v18  ;;  %739 = vrot.lane.b32.xlu0 %v4970_v30, %s4564_s26 }
  0x94   : > { %8383 = vst [vmem:[#allocation19_spill] sm:$0xff] %v4944_v23  ;;  %v5001_v35 = vld [vmem:[#allocation2 + $0x79] sm:$0xff] }
  0x95   : > { %381 = vst.msk [vmem:[#allocation2 + $0xb1] sm:$0xff] %vm311_vm0, %v4928_v20  ;;  %v5142_v20 = vld [vmem:[#allocation2 + $0x52] sm:$0xff]  ;;  %v5156_v18 = vld [vmem:[#allocation2 + $0x7a] sm:$0xff] }
  0x96   : > { %8384 = vst [vmem:[#allocation20_spill] sm:$0xff] %v4949_v24  ;;  %v5003_v36 = vld [vmem:[#allocation2 + $0x91] sm:$0xff] }
  0x97   : > { %383 = vst.msk [vmem:[#allocation2 + $0xc9] sm:$0xff] %vm311_vm0, %v4937_v22  ;;  %743 = vrot.lane.b32.xlu2 %v4999_v34, %s4564_s26  ;;  %v5128_v22 = vld [vmem:[#allocation2 + $0x32] sm:$0xff] }
  0x98   : > { %8385 = vst [vmem:[#allocation21_spill] sm:$0xff] %v4954_v25  ;;  %v5026_v40 = vld [vmem:[#allocation2 + $0xa9] sm:$0xff] }
  0x99   : > { %382 = vst.msk [vmem:[#allocation2 + $0xc1] sm:$0xff] %vm311_vm0, %v4944_v23  ;;  %741 = vrot.lane.b32.xlu1 %v5001_v35, %s4564_s26 }
  0x9a   : > { %8386 = vst [vmem:[#allocation22_spill] sm:$0xff] %v4961_v27  ;;  %v5028_v41 = vld [vmem:[#allocation2 + $0x99] sm:$0xff] }
  0x9b   : > { %384 = vst.msk [vmem:[#allocation2 + $0xd9] sm:$0xff] %vm311_vm0, %v4949_v24  ;;  %745 = vrot.lane.b32.xlu0 %v5003_v36, %s4564_s26  ;;  %v5168_v15 = vld [vmem:[#allocation2 + $0x92] sm:$0xff]  ;;  %v5172_v13 = vld [vmem:[#allocation2 + $0x9a] sm:$0xff] }
  0x9c   : > { %8387 = vst [vmem:[#allocation23_spill] sm:$0xff] %v4968_v29  ;;  %v5030_v42 = vld [vmem:[#allocation2 + $0xb1] sm:$0xff] }
  0x9d   : > { %386 = vst.msk [vmem:[#allocation2 + $0xf1] sm:$0xff] %vm311_vm0, %v4954_v25  ;;  %v5186_v12 = vld [vmem:[#allocation2 + $0xb2] sm:$0xff] }
  0x9e   : > { %385 = vst.msk [vmem:[#allocation2 + $0xe1] sm:$0xff] %vm311_vm0, %v4961_v27  ;;  %v5053_v46 = vld [vmem:[#allocation2 + $0xc9] sm:$0xff] }
  0x9f   : > { %8388 = vst [vmem:[#allocation24_spill] sm:$0xff] %v4979_v31  ;;  %749 = vrot.lane.b32.xlu2 %v5026_v40, %s4564_s26 }
  0xa0   : > { %8389 = vst [vmem:[#allocation25_spill] sm:$0xff] %v4982_v32  ;;  %v5055_v47 = vld [vmem:[#allocation2 + $0xc1] sm:$0xff] }
  0xa1   : > { %387 = vst.msk [vmem:[#allocation2 + $0xf9] sm:$0xff] %vm311_vm0, %v4968_v29  ;;  %747 = vrot.lane.b32.xlu1 %v5028_v41, %s4564_s26  ;;  %v5190_v10 = vld [vmem:[#allocation2 + $0xc2] sm:$0xff]  ;;  %v5206_v29 = vld [vmem:[#allocation2 + $0xca] sm:$0xff] }
  0xa2   : > { %389 = vst.msk [vmem:[#allocation2 + $0x111] sm:$0xff] %vm311_vm0, %v4979_v31  ;;  %v5057_v48 = vld [vmem:[#allocation2 + $0xd9] sm:$0xff] }
  0xa3   : > { %8390 = vst [vmem:[#allocation26_spill] sm:$0xff] %v4993_v33  ;;  %751 = vrot.lane.b32.xlu0 %v5030_v42, %s4564_s26 }
  0xa4   : > { %388 = vst.msk [vmem:[#allocation2 + $0x109] sm:$0xff] %vm311_vm0, %v4982_v32  ;;  %v5070_v50 = vld [vmem:[#allocation2 + $0xf1] sm:$0xff] }
  0xa5   : > { %390 = vst.msk [vmem:[#allocation2 + $0x121] sm:$0xff] %vm311_vm0, %v4993_v33  ;;  %v5072_v51 = vld [vmem:[#allocation2 + $0xe1] sm:$0xff]  ;;  %v5188_v33 = vld [vmem:[#allocation2 + $0xaa] sm:$0xff] }
  0xa6   : > { %8391 = vst [vmem:[#allocation27_spill] sm:$0xff] %v5008_v37  ;;  %v5204_v9 = vld [vmem:[#allocation2 + $0xda] sm:$0xff]  ;;  %v5208_v7 = vld [vmem:[#allocation2 + $0xe2] sm:$0xff] }
  0xa7   : > { %8392 = vst [vmem:[#allocation28_spill] sm:$0xff] %v5011_v38  ;;  %755 = vrot.lane.b32.xlu2 %v5053_v46, %s4564_s26 }
  0xa8   : > { %392 = vst.msk [vmem:[#allocation2 + $0x139] sm:$0xff] %vm311_vm0, %v5008_v37  ;;  %v5074_v52 = vld [vmem:[#allocation2 + $0xf9] sm:$0xff] }
  0xa9   : > { %391 = vst.msk [vmem:[#allocation2 + $0x129] sm:$0xff] %vm311_vm0, %v5011_v38  ;;  %753 = vrot.lane.b32.xlu1 %v5055_v47, %s4564_s26  ;;  %v5082_v53 = vld [vmem:[#allocation2 + $0x111] sm:$0xff]  ;;  %v5222_v8 = vld [vmem:[#allocation2 + $0xfa] sm:$0xff] }
  0xaa   : > { %8393 = vst [vmem:[#allocation29_spill] sm:$0xff] %v5022_v39  ;;  %v5224_v24 = vld [vmem:[#allocation2 + $0xf2] sm:$0xff] }
  0xab   : > { %393 = vst.msk [vmem:[#allocation2 + $0x141] sm:$0xff] %vm311_vm0, %v5022_v39  ;;  %757 = vrot.lane.b32.xlu0 %v5057_v48, %s4564_s26  ;;  %v5084_v54 = vld [vmem:[#allocation2 + $0x109] sm:$0xff] }
  0xac   : > { %8394 = vst [vmem:[#allocation30_spill] sm:$0xff] %v5035_v43  ;;  %v5086_v55 = vld [vmem:[#allocation2 + $0x121] sm:$0xff]  ;;  %v5226_v3 = vld [vmem:[#allocation2 + $0x10a] sm:$0xff] }
  0xad   : > { %8395 = vst [vmem:[#allocation31_spill] sm:$0xff] %v5038_v44  ;;  %v5170_v39 = vld [vmem:[#allocation2 + $0x82] sm:$0xff] }
  0xae   : > { %395 = vst.msk [vmem:[#allocation2 + $0x159] sm:$0xff] %vm311_vm0, %v5035_v43  ;;  %v5160_v43 = vpop.permute.xlu0 %721 }
  0xaf   : > { %394 = vst.msk [vmem:[#allocation2 + $0x151] sm:$0xff] %vm311_vm0, %v5038_v44  ;;  %761 = vrot.lane.b32.xlu2 %v5070_v50, %s4564_s26  ;;  %v5094_v56 = vld [vmem:[#allocation2 + $0x139] sm:$0xff] }
  0xb0   : > { %8396 = vst [vmem:[#allocation32_spill] sm:$0xff] %v5049_v45  ;;  %v5096_v57 = vld [vmem:[#allocation2 + $0x129] sm:$0xff] }
  0xb1   : > { %396 = vst.msk [vmem:[#allocation2 + $0x169] sm:$0xff] %vm311_vm0, %v5049_v45  ;;  %759 = vrot.lane.b32.xlu1 %v5072_v51, %s4564_s26  ;;  %v5154_v45 = vld [vmem:[#allocation2 + $0x62] sm:$0xff] }
  0xb2   : > { %8397 = vst [vmem:[#allocation33_spill] sm:$0xff] %v5062_v49  ;;  %v5098_v58 = vld [vmem:[#allocation2 + $0x141] sm:$0xff] }
  0xb3   : > { %397 = vst.msk [vmem:[#allocation2 + $0x171] sm:$0xff] %vm311_vm0, %v5062_v49  ;;  %763 = vrot.lane.b32.xlu0 %v5074_v52, %s4564_s26 }
  0xb4   : > { %8400 = vst [vmem:[#allocation36_spill] sm:$0xff] %v5160_v43  ;;  %v403_v43 = vld [vmem:[#allocation2 + $0x20] sm:$0xff] }
  0xb5   : > { %v5106_v59 = vld [vmem:[#allocation2 + $0x159] sm:$0xff] }
  0xb6   : > { %v5108_v60 = vld [vmem:[#allocation2 + $0x151] sm:$0xff] }
  0xb7   : > { %767 = vrot.lane.b32.xlu2 %v5082_v53, %s4564_s26 }
  0xb8   : > { %v5110_v61 = vld [vmem:[#allocation2 + $0x169] sm:$0xff]  ;;  %v5132_v23 = vpop.permute.xlu2 %729 }
  0xb9   : > { %765 = vrot.lane.b32.xlu1 %v5084_v54, %s4564_s26  ;;  %8398 = vst [vmem:[#allocation34_spill] sm:$0xff] %v5132_v23  ;;  %v5262_v23 = vld [vmem:[#allocation2 + $0x152] sm:$0xff] }
  0xba   : > { %v5118_v63 = vld [vmem:[#allocation2 + $0x171] sm:$0xff]  ;;  %8418 = vst [vmem:[#allocation54_spill] sm:$0xff] %v5262_v23 }
  0xbb   : > { %769 = vrot.lane.b32.xlu0 %v5086_v55, %s4564_s26 }
  0xbf   : > { %773 = vrot.lane.b32.xlu2 %v5094_v56, %s4564_s26 }
  0xc1   : > { %771 = vrot.lane.b32.xlu1 %v5096_v57, %s4564_s26 }
  0xc3   : > { %775 = vrot.lane.b32.xlu0 %v5098_v58, %s4564_s26 }
  0xc7   : > { %779 = vrot.lane.b32.xlu2 %v5106_v59, %s4564_s26 }
  0xc9   : > { %777 = vrot.lane.b32.xlu1 %v5108_v60, %s4564_s26 }
  0xcb   : > { %781 = vrot.lane.b32.xlu0 %v5110_v61, %s4564_s26 }
  0xcf   : > { %849 = vrot.lane.b32.xlu2 %v464_v62, %s4565_s8  ;;  %v5138_v62 = vld [vmem:[#allocation2 + $0x4a] sm:$0xff] }
  0xd1   : > { %783 = vrot.lane.b32.xlu1 %v5118_v63, %s4564_s26  ;;  %v5178_v37 = vpop.permute.xlu1 %725 }
  0xd2   : > { %8402 = vst [vmem:[#allocation38_spill] sm:$0xff] %v5178_v37  ;;  %v5184_v38 = vpop.permute.xlu0 %723  ;;  %v5278_v37 = vld [vmem:[#allocation2 + $0x15a] sm:$0xff] }
  0xd3   : > { %851 = vrot.lane.b32.xlu0 %v465_v0, %s4565_s8  ;;  %v5140_v0 = vld [vmem:[#allocation2 + $0x3a] sm:$0xff]  ;;  %8404 = vst [vmem:[#allocation40_spill] sm:$0xff] %v5184_v38  ;;  %v5280_v38 = vld [vmem:[#allocation2 + $0x172] sm:$0xff] }
  0xd4   : > { %8423 = vst [vmem:[#allocation59_spill] sm:$0xff] %v5278_v37 }
  0xd5   : > { %8424 = vst [vmem:[#allocation60_spill] sm:$0xff] %v5280_v38 }
  0xd7   : > { %855 = vrot.lane.b32.xlu2 %v5124_v1, %s4565_s8 }
  0xd9   : > { %853 = vrot.lane.b32.xlu1 %v5126_v6, %s4565_s8 }
  0xdb   : > { %857 = vrot.lane.b32.xlu0 %v5128_v22, %s4565_s8 }
  0xdf   : > { %861 = vrot.lane.b32.xlu2 %v5138_v62, %s4565_s8 }
  0xe1   : > { %859 = vrot.lane.b32.xlu1 %v5140_v0, %s4565_s8  ;;  %v5150_v49 = vpop.permute.xlu2 %731 }
  0xe2   : > { %8399 = vst [vmem:[#allocation35_spill] sm:$0xff] %v5150_v49  ;;  %v5260_v49 = vld [vmem:[#allocation2 + $0x13a] sm:$0xff] }
  0xe3   : > { %863 = vrot.lane.b32.xlu0 %v5142_v20, %s4565_s8 }
  0xe7   : > { %867 = vrot.lane.b32.xlu2 %v5152_v16, %s4565_s8 }
  0xe9   : > { %865 = vrot.lane.b32.xlu1 %v5154_v45, %s4565_s8  ;;  %v5166_v44 = vpop.permute.xlu2 %737 }
  0xea   : > { %8401 = vst [vmem:[#allocation37_spill] sm:$0xff] %v5166_v44  ;;  %v5240_v44 = vld [vmem:[#allocation2 + $0x122] sm:$0xff] }
  0xeb   : > { %869 = vrot.lane.b32.xlu0 %v5156_v18, %s4565_s8 }
  0xef   : > { %873 = vrot.lane.b32.xlu2 %v5168_v15, %s4565_s8 }
  0xf1   : > { %871 = vrot.lane.b32.xlu1 %v5170_v39, %s4565_s8  ;;  %v5182_v14 = vpop.permute.xlu2 %743 }
  0xf2   : > { %8403 = vst [vmem:[#allocation39_spill] sm:$0xff] %v5182_v14 }
  0xf3   : > { %875 = vrot.lane.b32.xlu0 %v5172_v13, %s4565_s8 }
  0xf7   : > { %879 = vrot.lane.b32.xlu2 %v5186_v12, %s4565_s8 }
  0xf9   : > { %877 = vrot.lane.b32.xlu1 %v5188_v33, %s4565_s8  ;;  %v5198_v31 = vpop.permute.xlu2 %749 }
  0xfa   : > { %8405 = vst [vmem:[#allocation41_spill] sm:$0xff] %v5198_v31 }
  0xfb   : > { %881 = vrot.lane.b32.xlu0 %v5190_v10, %s4565_s8  ;;  %v5200_v11 = vpop.permute.xlu1 %727 }
  0xfc   : > { %8406 = vst [vmem:[#allocation42_spill] sm:$0xff] %v5200_v11  ;;  %v5276_v11 = vld [vmem:[#allocation2 + $0x16a] sm:$0xff] }
  0xfd   : > { %v5202_v32 = vpop.permute.xlu0 %733  ;;  %8422 = vst [vmem:[#allocation58_spill] sm:$0xff] %v5276_v11 }
  0xfe   : > { %8407 = vst [vmem:[#allocation43_spill] sm:$0xff] %v5202_v32  ;;  %v5258_v32 = vld [vmem:[#allocation2 + $0x142] sm:$0xff] }
  0xff   : > { %885 = vrot.lane.b32.xlu2 %v5204_v9, %s4565_s8  ;;  %8417 = vst [vmem:[#allocation53_spill] sm:$0xff] %v5258_v32 }
 0x101   : > { %883 = vrot.lane.b32.xlu1 %v5206_v29, %s4565_s8  ;;  %v5216_v25 = vpop.permute.xlu2 %755 }
 0x102   : > { %8408 = vst [vmem:[#allocation44_spill] sm:$0xff] %v5216_v25  ;;  %v5244_v25 = vld [vmem:[#allocation2 + $0x12a] sm:$0xff] }
 0x103   : > { %887 = vrot.lane.b32.xlu0 %v5208_v7, %s4565_s8  ;;  %v5218_v2 = vpop.permute.xlu1 %735 }
 0x104   : > { %8409 = vst [vmem:[#allocation45_spill] sm:$0xff] %v5218_v2  ;;  %v5242_v2 = vld [vmem:[#allocation2 + $0x112] sm:$0xff] }
 0x105   : > { %v5220_v27 = vpop.permute.xlu0 %739 }
 0x106   : > { %8410 = vst [vmem:[#allocation46_spill] sm:$0xff] %v5220_v27 }
 0x107   : > { %891 = vrot.lane.b32.xlu2 %v5222_v8, %s4565_s8 }
 0x109   : > { %889 = vrot.lane.b32.xlu1 %v5224_v24, %s4565_s8  ;;  %v5234_v31 = vpop.permute.xlu2 %761 }
 0x10a   : > { %8411 = vst [vmem:[#allocation47_spill] sm:$0xff] %v5234_v31 }
 0x10b   : > { %893 = vrot.lane.b32.xlu0 %v5226_v3, %s4565_s8  ;;  %v5236_v14 = vpop.permute.xlu1 %741 }
 0x10c   : > { %8412 = vst [vmem:[#allocation48_spill] sm:$0xff] %v5236_v14 }
 0x10d   : > { %v5238_v27 = vpop.permute.xlu0 %745 }
 0x10e   : > { %8413 = vst [vmem:[#allocation49_spill] sm:$0xff] %v5238_v27 }
 0x10f   : > { %897 = vrot.lane.b32.xlu2 %v5240_v44, %s4565_s8 }
 0x111   : > { %895 = vrot.lane.b32.xlu1 %v5242_v2, %s4565_s8  ;;  %v5252_v31 = vpop.permute.xlu2 %767 }
 0x112   : > { %8414 = vst [vmem:[#allocation50_spill] sm:$0xff] %v5252_v31 }
 0x113   : > { %899 = vrot.lane.b32.xlu0 %v5244_v25, %s4565_s8  ;;  %v5254_v14 = vpop.permute.xlu1 %747 }
 0x114   : > { %8415 = vst [vmem:[#allocation51_spill] sm:$0xff] %v5254_v14 }
 0x115   : > { %v5256_v27 = vpop.permute.xlu0 %751 }
 0x116   : > { %8416 = vst [vmem:[#allocation52_spill] sm:$0xff] %v5256_v27 }
 0x117   : > { %903 = vrot.lane.b32.xlu2 %v5258_v32, %s4565_s8  ;;  %v404_v32 = vld [vmem:[#allocation2 + $0x30] sm:$0xff] }
 0x119   : > { %901 = vrot.lane.b32.xlu1 %v5260_v49, %s4565_s8  ;;  %v5270_v31 = vpop.permute.xlu2 %773 }
 0x11a   : > { %8419 = vst [vmem:[#allocation55_spill] sm:$0xff] %v5270_v31 }
 0x11b   : > { %905 = vrot.lane.b32.xlu0 %v5262_v23, %s4565_s8  ;;  %v5272_v14 = vpop.permute.xlu1 %753  ;;  %v402_v23 = vld [vmem:[#allocation2 + $0x18] sm:$0xff] }
 0x11c   : > { %8420 = vst [vmem:[#allocation56_spill] sm:$0xff] %v5272_v14 }
 0x11d   : > { %v5274_v27 = vpop.permute.xlu0 %757 }
 0x11e   : > { %8421 = vst [vmem:[#allocation57_spill] sm:$0xff] %v5274_v27 }
 0x11f   : > { %909 = vrot.lane.b32.xlu2 %v5276_v11, %s4565_s8 }
 0x121   : > { %907 = vrot.lane.b32.xlu1 %v5278_v37, %s4565_s8  ;;  %v5288_v31 = vpop.permute.xlu2 %779 }
 0x122   : > { %8425 = vst [vmem:[#allocation61_spill] sm:$0xff] %v5288_v31  ;;  %v5303_v31 = vld [vmem:[#allocation2 + $0x48] sm:$0xff] }
 0x123   : > { %911 = vrot.lane.b32.xlu0 %v5280_v38, %s4565_s8  ;;  %v5290_v14 = vpop.permute.xlu1 %759  ;;  %8431 = vst [vmem:[#allocation67_spill] sm:$0xff] %v5303_v31 }
 0x124   : > { %8426 = vst [vmem:[#allocation62_spill] sm:$0xff] %v5290_v14  ;;  %v405_v14 = vld [vmem:[#allocation2 + $0x38] sm:$0xff] }
 0x125   : > { %v5292_v27 = vpop.permute.xlu0 %763 }
 0x126   : > { %8427 = vst [vmem:[#allocation63_spill] sm:$0xff] %v5292_v27  ;;  %v5307_v27 = vld [vmem:[#allocation2 + $0x50] sm:$0xff] }
 0x127   : > { %979 = vrot.lane.b32.xlu2 %v403_v43, %s4566_s9  ;;  %8432 = vst [vmem:[#allocation68_spill] sm:$0xff] %v5307_v27 }
 0x129   : > { %977 = vrot.lane.b32.xlu1 %v402_v23, %s4566_s9  ;;  %v5297_v11 = vpop.permute.xlu2 %849 }
 0x12a   : > { %8428 = vst [vmem:[#allocation64_spill] sm:$0xff] %v5297_v11  ;;  %v5322_v11 = vld [vmem:[#allocation2 + $0x78] sm:$0xff] }
 0x12b   : > { %981 = vrot.lane.b32.xlu0 %v404_v32, %s4566_s9  ;;  %v5299_v37 = vpop.permute.xlu1 %765  ;;  %8437 = vst [vmem:[#allocation73_spill] sm:$0xff] %v5322_v11 }
 0x12c   : > { %8429 = vst [vmem:[#allocation65_spill] sm:$0xff] %v5299_v37  ;;  %v408_v37 = vld [vmem:[#allocation2 + $0x60] sm:$0xff] }
 0x12d   : > { %v5301_v38 = vpop.permute.xlu0 %769 }
 0x12e   : > { %8430 = vst [vmem:[#allocation66_spill] sm:$0xff] %v5301_v38  ;;  %v5318_v38 = vld [vmem:[#allocation2 + $0x68] sm:$0xff] }
 0x12f   : > { %985 = vrot.lane.b32.xlu2 %v5303_v31, %s4566_s9  ;;  %8436 = vst [vmem:[#allocation72_spill] sm:$0xff] %v5318_v38  ;;  %v5371_v31 = vld [vmem:[%s4767_s30 + $0xf8] sm:$0xff] }
 0x130   : > { %8453 = vst [vmem:[#allocation89_spill] sm:$0xff] %v5371_v31 }
 0x131   : > { %983 = vrot.lane.b32.xlu1 %v405_v14, %s4566_s9  ;;  %v5312_v23 = vpop.permute.xlu2 %855  ;;  %399 = vst.msk [vmem:[#allocation2 + $0x189] sm:$0xff] %vm311_vm0, %v5371_v31 }
 0x132   : > { %8433 = vst [vmem:[#allocation69_spill] sm:$0xff] %v5312_v23 }
 0x133   : > { %987 = vrot.lane.b32.xlu0 %v5307_v27, %s4566_s9  ;;  %v5314_v32 = vpop.permute.xlu1 %771  ;;  %v411_v27 = vld [vmem:[#allocation2 + $0x80] sm:$0xff] }
 0x134   : > { %8434 = vst [vmem:[#allocation70_spill] sm:$0xff] %v5314_v32 }
 0x135   : > { %v5316_v43 = vpop.permute.xlu0 %775 }
 0x136   : > { %8435 = vst [vmem:[#allocation71_spill] sm:$0xff] %v5316_v43  ;;  %v5333_v43 = vld [vmem:[#allocation2 + $0x90] sm:$0xff] }
 0x137   : > { %991 = vrot.lane.b32.xlu2 %v5318_v38, %s4566_s9  ;;  %8441 = vst [vmem:[#allocation77_spill] sm:$0xff] %v5333_v43  ;;  %v5337_v38 = vld [vmem:[#allocation2 + $0x98] sm:$0xff] }
 0x138   : > { %8442 = vst [vmem:[#allocation78_spill] sm:$0xff] %v5337_v38 }
 0x139   : > { %989 = vrot.lane.b32.xlu1 %v408_v37, %s4566_s9  ;;  %v5327_v14 = vpop.permute.xlu2 %861 }
 0x13a   : > { %8438 = vst [vmem:[#allocation74_spill] sm:$0xff] %v5327_v14  ;;  %v5348_v14 = vld [vmem:[#allocation2 + $0xb0] sm:$0xff] }
 0x13b   : > { %993 = vrot.lane.b32.xlu0 %v5322_v11, %s4566_s9  ;;  %v5329_v23 = vpop.permute.xlu1 %777  ;;  %8446 = vst [vmem:[#allocation82_spill] sm:$0xff] %v5348_v14  ;;  %v414_v11 = vld [vmem:[#allocation2 + $0xa8] sm:$0xff] }
 0x13c   : > { %8439 = vst [vmem:[#allocation75_spill] sm:$0xff] %v5329_v23 }
 0x13d   : > { %v5331_v32 = vpop.permute.xlu0 %781 }
 0x13e   : > { %8440 = vst [vmem:[#allocation76_spill] sm:$0xff] %v5331_v32 }
 0x13f   : > { %997 = vrot.lane.b32.xlu2 %v5333_v43, %s4566_s9  ;;  %v5352_v43 = vld [vmem:[#allocation2 + $0xc0] sm:$0xff] }
 0x140   : > { %8447 = vst [vmem:[#allocation83_spill] sm:$0xff] %v5352_v43 }
 0x141   : > { %995 = vrot.lane.b32.xlu1 %v411_v27, %s4566_s9  ;;  %v5342_v37 = vpop.permute.xlu2 %867 }
 0x142   : > { %8443 = vst [vmem:[#allocation79_spill] sm:$0xff] %v5342_v37 }
 0x143   : > { %999 = vrot.lane.b32.xlu0 %v5337_v38, %s4566_s9  ;;  %v5344_v23 = vpop.permute.xlu1 %783  ;;  %v417_v38 = vld [vmem:[#allocation2 + $0xc8] sm:$0xff] }
 0x144   : > { %8444 = vst [vmem:[#allocation80_spill] sm:$0xff] %v5344_v23 }
 0x145   : > { %v5346_v32 = vpop.permute.xlu0 %851 }
 0x146   : > { %8445 = vst [vmem:[#allocation81_spill] sm:$0xff] %v5346_v32  ;;  %v5363_v32 = vld [vmem:[#allocation2 + $0xd8] sm:$0xff] }
 0x147   : > { %1003 = vrot.lane.b32.xlu2 %v5348_v14, %s4566_s9  ;;  %8451 = vst [vmem:[#allocation87_spill] sm:$0xff] %v5363_v32  ;;  %v5368_v14 = vld [vmem:[%s4767_s30 + $0xf0] sm:$0xff] }
 0x148   : > { %8452 = vst [vmem:[#allocation88_spill] sm:$0xff] %v5368_v14 }
 0x149   : > { %1001 = vrot.lane.b32.xlu1 %v414_v11, %s4566_s9  ;;  %v5357_v27 = vpop.permute.xlu2 %873  ;;  %v5373_v11 = vld [vmem:[#allocation2 + $0xe0] sm:$0xff]  ;;  %398 = vst.msk [vmem:[#allocation2 + $0x181] sm:$0xff] %vm311_vm0, %v5368_v14 }
 0x14a   : > { %8448 = vst [vmem:[#allocation84_spill] sm:$0xff] %v5357_v27 }
 0x14b   : > { %1005 = vrot.lane.b32.xlu0 %v5352_v43, %s4566_s9  ;;  %v5359_v37 = vpop.permute.xlu1 %853  ;;  %v420_v43 = vld [vmem:[#allocation2 + $0xf0] sm:$0xff] }
 0x14c   : > { %8449 = vst [vmem:[#allocation85_spill] sm:$0xff] %v5359_v37 }
 0x14d   : > { %v5361_v23 = vpop.permute.xlu0 %857 }
 0x14e   : > { %8450 = vst [vmem:[#allocation86_spill] sm:$0xff] %v5361_v23 }
 0x14f   : > { %1009 = vrot.lane.b32.xlu2 %v5363_v32, %s4566_s9  ;;  %v5388_v32 = vld [vmem:[#allocation2 + $0xf8] sm:$0xff] }
 0x150   : > { %8457 = vst [vmem:[#allocation93_spill] sm:$0xff] %v5388_v32 }
 0x151   : > { %1007 = vrot.lane.b32.xlu1 %v417_v38, %s4566_s9  ;;  %v5380_v27 = vpop.permute.xlu2 %879  ;;  %v5392_v38 = vld [vmem:[#allocation2 + $0x108] sm:$0xff] }
 0x152   : > { %8454 = vst [vmem:[#allocation90_spill] sm:$0xff] %v5380_v27 }
 0x153   : > { %1011 = vrot.lane.b32.xlu0 %v5373_v11, %s4566_s9  ;;  %v5384_v23 = vpop.permute.xlu1 %859  ;;  %8458 = vst [vmem:[#allocation94_spill] sm:$0xff] %v5392_v38 }
 0x154   : > { %8455 = vst [vmem:[#allocation91_spill] sm:$0xff] %v5384_v23  ;;  %v423_v23 = vld [vmem:[#allocation2 + $0x110] sm:$0xff] }
 0x155   : > { %v5386_v37 = vpop.permute.xlu0 %863 }
 0x156   : > { %8456 = vst [vmem:[#allocation92_spill] sm:$0xff] %v5386_v37  ;;  %v5403_v37 = vld [vmem:[#allocation2 + $0x120] sm:$0xff] }
 0x157   : > { %1015 = vrot.lane.b32.xlu2 %v5388_v32, %s4566_s9  ;;  %8462 = vst [vmem:[#allocation98_spill] sm:$0xff] %v5403_v37  ;;  %v5407_v32 = vld [vmem:[#allocation2 + $0x128] sm:$0xff] }
 0x158   : > { %8463 = vst [vmem:[#allocation99_spill] sm:$0xff] %v5407_v32 }
 0x159   : > { %1013 = vrot.lane.b32.xlu1 %v420_v43, %s4566_s9  ;;  %v5397_v14 = vpop.permute.xlu2 %885 }
 0x15a   : > { %8459 = vst [vmem:[#allocation95_spill] sm:$0xff] %v5397_v14 }
 0x15b   : > { %1017 = vrot.lane.b32.xlu0 %v5392_v38, %s4566_s9  ;;  %v5399_v31 = vpop.permute.xlu1 %865  ;;  %v5420_v38 = vld [vmem:[#allocation2 + $0x138] sm:$0xff] }
 0x15c   : > { %8460 = vst [vmem:[#allocation96_spill] sm:$0xff] %v5399_v31 }
 0x15d   : > { %v5401_v27 = vpop.permute.xlu0 %869  ;;  %8468 = vst [vmem:[#allocation104_spill] sm:$0xff] %v5420_v38 }
 0x15e   : > { %8461 = vst [vmem:[#allocation97_spill] sm:$0xff] %v5401_v27  ;;  %v5418_v27 = vld [vmem:[#allocation2 + $0x140] sm:$0xff] }
 0x15f   : > { %1021 = vrot.lane.b32.xlu2 %v5403_v37, %s4566_s9  ;;  %8467 = vst [vmem:[#allocation103_spill] sm:$0xff] %v5418_v27  ;;  %v5424_v37 = vld [vmem:[#allocation2 + $0x150] sm:$0xff] }
 0x160   : > { %8469 = vst [vmem:[#allocation105_spill] sm:$0xff] %v5424_v37 }
 0x161   : > { %1019 = vrot.lane.b32.xlu1 %v423_v23, %s4566_s9  ;;  %v5412_v43 = vpop.permute.xlu2 %891 }
 0x162   : > { %8464 = vst [vmem:[#allocation100_spill] sm:$0xff] %v5412_v43  ;;  %v5436_v43 = vld [vmem:[#allocation2 + $0x168] sm:$0xff] }
 0x163   : > { %1023 = vrot.lane.b32.xlu0 %v5407_v32, %s4566_s9  ;;  %v5414_v14 = vpop.permute.xlu1 %871  ;;  %8473 = vst [vmem:[#allocation109_spill] sm:$0xff] %v5436_v43  ;;  %v5438_v32 = vld [vmem:[#allocation2 + $0x158] sm:$0xff] }
 0x164   : > { %8465 = vst [vmem:[#allocation101_spill] sm:$0xff] %v5414_v14 }
 0x165   : > { %v5416_v31 = vpop.permute.xlu0 %875 }
 0x166   : > { %8466 = vst [vmem:[#allocation102_spill] sm:$0xff] %v5416_v31 }
 0x167   : > { %1027 = vrot.lane.b32.xlu2 %v5418_v27, %s4566_s9  ;;  %v5442_v27 = vld [vmem:[#allocation2 + $0x170] sm:$0xff] }
 0x169   : > { %1025 = vrot.lane.b32.xlu1 %v5420_v38, %s4566_s9  ;;  %v5430_v23 = vpop.permute.xlu2 %897  ;;  %v5456_v38 = vld [vmem:[#allocation2 + $0x180] sm:$0xff] }
 0x16a   : > { %8470 = vst [vmem:[#allocation106_spill] sm:$0xff] %v5430_v23 }
 0x16b   : > { %1029 = vrot.lane.b32.xlu0 %v5424_v37, %s4566_s9  ;;  %v5432_v14 = vpop.permute.xlu1 %877  ;;  %v5454_v37 = vld [vmem:[#allocation2 + $0x188] sm:$0xff] }
 0x16c   : > { %8471 = vst [vmem:[#allocation107_spill] sm:$0xff] %v5432_v14 }
 0x16d   : > { %v5434_v31 = vpop.permute.xlu0 %881  ;;  %8477 = vst [vmem:[#allocation113_spill] sm:$0xff] %v5454_v37 }
 0x16e   : > { %8472 = vst [vmem:[#allocation108_spill] sm:$0xff] %v5434_v31 }
 0x16f   : > { %1033 = vrot.lane.b32.xlu2 %v5436_v43, %s4566_s9 }
 0x171   : > { %1031 = vrot.lane.b32.xlu1 %v5438_v32, %s4566_s9  ;;  %v5448_v23 = vpop.permute.xlu2 %903 }
 0x172   : > { %8474 = vst [vmem:[#allocation110_spill] sm:$0xff] %v5448_v23 }
 0x173   : > { %1035 = vrot.lane.b32.xlu0 %v5442_v27, %s4566_s9  ;;  %v5450_v14 = vpop.permute.xlu1 %883 }
 0x174   : > { %8475 = vst [vmem:[#allocation111_spill] sm:$0xff] %v5450_v14 }
 0x175   : > { %v5452_v31 = vpop.permute.xlu0 %887 }
 0x176   : > { %8476 = vst [vmem:[#allocation112_spill] sm:$0xff] %v5452_v31 }
 0x177   : > { %1039 = vrot.lane.b32.xlu2 %v5454_v37, %s4566_s9 }
 0x179   : > { %1037 = vrot.lane.b32.xlu1 %v5456_v38, %s4566_s9  ;;  %v5462_v43 = vpop.permute.xlu2 %909 }
 0x17a   : > { %8478 = vst [vmem:[#allocation114_spill] sm:$0xff] %v5462_v43 }
 0x17b   : > { %1105 = vrot.lane.b32.xlu0 %v4805_v5, %s4567_s10  ;;  %v5466_v23 = vpop.permute.xlu1 %889 }
 0x17c   : > { %8479 = vst [vmem:[#allocation115_spill] sm:$0xff] %v5466_v23  ;;  %v647_v23 = vld [vmem:[#allocation2 + $0x139] sm:$0xff] }
 0x17d   : > { %v5468_v14 = vpop.permute.xlu0 %893 }
 0x17e   : > { %8480 = vst [vmem:[#allocation116_spill] sm:$0xff] %v5468_v14 }
 0x17f   : > { %1109 = vrot.lane.b32.xlu2 %v4799_v4, %s4567_s10 }
 0x181   : > { %1107 = vrot.lane.b32.xlu1 %v4923_v19, %s4567_s10  ;;  %v5476_v31 = vpop.permute.xlu2 %979 }
 0x183   : > { %1111 = vrot.lane.b32.xlu0 %v4914_v17, %s4567_s10  ;;  %v5478_v43 = vpop.permute.xlu1 %895 }
 0x184   : > { %8481 = vst [vmem:[#allocation117_spill] sm:$0xff] %v5478_v43  ;;  %v612_v43 = vld [vmem:[#allocation2 + $0x110] sm:$0xff] }
 0x185   : > { %v5480_v37 = vpop.permute.xlu0 %899 }
 0x186   : > { %8482 = vst [vmem:[#allocation118_spill] sm:$0xff] %v5480_v37 }
 0x187   : > { %1115 = vrot.lane.b32.xlu2 %v4963_v28, %s4567_s10 }
 0x189   : > { %1113 = vrot.lane.b32.xlu1 %v4932_v21, %s4567_s10  ;;  %v5488_v4 = vpop.permute.xlu2 %985 }
 0x18b   : > { %1117 = vrot.lane.b32.xlu0 %v4956_v26, %s4567_s10  ;;  %v5490_v5 = vpop.permute.xlu1 %901 }
 0x18c   : > { %8483 = vst [vmem:[#allocation119_spill] sm:$0xff] %v5490_v5  ;;  %v594_v5 = vld [vmem:[#allocation2 + $0x38] sm:$0xff] }
 0x18d   : > { %v5492_v17 = vpop.permute.xlu0 %905 }
 0x18e   : > { %8484 = vst [vmem:[#allocation120_spill] sm:$0xff] %v5492_v17 }
 0x18f   : > { %1121 = vrot.lane.b32.xlu2 %v5001_v35, %s4567_s10 }
 0x191   : > { %1119 = vrot.lane.b32.xlu1 %v4970_v30, %s4567_s10  ;;  %v5500_v19 = vpop.permute.xlu2 %991 }
 0x193   : > { %1123 = vrot.lane.b32.xlu0 %v4999_v34, %s4567_s10  ;;  %v5502_v21 = vpop.permute.xlu1 %907 }
 0x194   : > { %8485 = vst [vmem:[#allocation121_spill] sm:$0xff] %v5502_v21 }
 0x195   : > { %v5504_v26 = vpop.permute.xlu0 %911 }
 0x196   : > { %8486 = vst [vmem:[#allocation122_spill] sm:$0xff] %v5504_v26  ;;  %v5592_v26 = vld [vmem:[#allocation2 + $0x189] sm:$0xff] }
 0x197   : > { %1127 = vrot.lane.b32.xlu2 %v5028_v41, %s4567_s10 }
 0x199   : > { %1125 = vrot.lane.b32.xlu1 %v5003_v36, %s4567_s10  ;;  %v5512_v28 = vpop.permute.xlu2 %997 }
 0x19a   : > { %8487 = vst [vmem:[#allocation123_spill] sm:$0xff] %v5512_v28  ;;  %v648_v28 = vld [vmem:[#allocation2 + $0x141] sm:$0xff] }
 0x19b   : > { %1129 = vrot.lane.b32.xlu0 %v5026_v40, %s4567_s10  ;;  %v5514_v30 = vpop.permute.xlu1 %977 }
 0x19d   : > { %v5516_v34 = vpop.permute.xlu0 %981 }
 0x19f   : > { %1133 = vrot.lane.b32.xlu2 %v5055_v47, %s4567_s10 }
 0x1a1   : > { %1131 = vrot.lane.b32.xlu1 %v5030_v42, %s4567_s10  ;;  %v5524_v35 = vpop.permute.xlu2 %1003 }
 0x1a2   : > { %8488 = vst [vmem:[#allocation124_spill] sm:$0xff] %v5524_v35  ;;  %v609_v35 = vld [vmem:[#allocation2 + $0xf0] sm:$0xff] }
 0x1a3   : > { %1135 = vrot.lane.b32.xlu0 %v5053_v46, %s4567_s10  ;;  %v5526_v36 = vpop.permute.xlu1 %983 }
 0x1a5   : > { %v5528_v40 = vpop.permute.xlu0 %987 }
 0x1a7   : > { %1139 = vrot.lane.b32.xlu2 %v5072_v51, %s4567_s10 }
 0x1a9   : > { %1137 = vrot.lane.b32.xlu1 %v5057_v48, %s4567_s10  ;;  %v5536_v41 = vpop.permute.xlu2 %1009 }
 0x1ab   : > { %1141 = vrot.lane.b32.xlu0 %v5070_v50, %s4567_s10  ;;  %v5538_v42 = vpop.permute.xlu1 %989 }
 0x1ad   : > { %v5540_v46 = vpop.permute.xlu0 %993 }
 0x1af   : > { %1145 = vrot.lane.b32.xlu2 %v5084_v54, %s4567_s10 }
 0x1b1   : > { %1143 = vrot.lane.b32.xlu1 %v5074_v52, %s4567_s10  ;;  %v5548_v47 = vpop.permute.xlu2 %1015 }
 0x1b2   : > { %8489 = vst [vmem:[#allocation125_spill] sm:$0xff] %v5548_v47  ;;  %v675_v47 = vld [vmem:[#allocation2 + $0x10a] sm:$0xff] }
 0x1b3   : > { %1147 = vrot.lane.b32.xlu0 %v5082_v53, %s4567_s10  ;;  %v5550_v48 = vpop.permute.xlu1 %995 }
 0x1b4   : > { %8490 = vst [vmem:[#allocation126_spill] sm:$0xff] %v5550_v48  ;;  %v671_v48 = vld [vmem:[#allocation2 + $0xda] sm:$0xff] }
 0x1b5   : > { %v5552_v50 = vpop.permute.xlu0 %999 }
 0x1b6   : > { %8491 = vst [vmem:[#allocation127_spill] sm:$0xff] %v5552_v50  ;;  %v632_v50 = vld [vmem:[#allocation2 + $0x81] sm:$0xff] }
 0x1b7   : > { %1151 = vrot.lane.b32.xlu2 %v5096_v57, %s4567_s10  ;;  %v5578_v57 = vld [vmem:[#allocation2 + $0x181] sm:$0xff] }
 0x1b9   : > { %1149 = vrot.lane.b32.xlu1 %v5086_v55, %s4567_s10  ;;  %v5560_v51 = vpop.permute.xlu2 %1021 }
 0x1ba   : > { %8492 = vst [vmem:[#allocation128_spill] sm:$0xff] %v5560_v51  ;;  %v8557_v51 = vld [vmem:[#allocation105_spill] sm:$0xff] }
 0x1bb   : > { %1153 = vrot.lane.b32.xlu0 %v5094_v56, %s4567_s10  ;;  %v5562_v52 = vpop.permute.xlu1 %1001 }
 0x1bc   : > { %8493 = vst [vmem:[#allocation129_spill] sm:$0xff] %v5562_v52 }
 0x1bd   : > { %v5564_v53 = vpop.permute.xlu0 %1005 }
 0x1be   : > { %8494 = vst [vmem:[#allocation130_spill] sm:$0xff] %v5564_v53  ;;  %v600_v53 = vld [vmem:[#allocation2 + $0x80] sm:$0xff] }
 0x1bf   : > { %1157 = vrot.lane.b32.xlu2 %v5108_v60, %s4567_s10 }
 0x1c1   : > { %1155 = vrot.lane.b32.xlu1 %v5098_v58, %s4567_s10  ;;  %v5572_v54 = vpop.permute.xlu2 %1027 }
 0x1c2   : > { %8495 = vst [vmem:[#allocation131_spill] sm:$0xff] %v5572_v54 }
 0x1c3   : > { %1159 = vrot.lane.b32.xlu0 %v5106_v59, %s4567_s10  ;;  %v5574_v55 = vpop.permute.xlu1 %1007 }
 0x1c4   : > { %8496 = vst [vmem:[#allocation132_spill] sm:$0xff] %v5574_v55  ;;  %v8526_v55 = vld [vmem:[#allocation67_spill] sm:$0xff] }
 0x1c5   : > { %v5576_v56 = vpop.permute.xlu0 %1011 }
 0x1c7   : > { %1163 = vrot.lane.b32.xlu2 %v5118_v63, %s4567_s10 }
 0x1c9   : > { %1161 = vrot.lane.b32.xlu1 %v5110_v61, %s4567_s10  ;;  %v5586_v58 = vpop.permute.xlu2 %1033 }
 0x1ca   : > { %8497 = vst [vmem:[#allocation133_spill] sm:$0xff] %v5586_v58 }
 0x1cb   : > { %1165 = vrot.lane.b32.xlu0 %v5578_v57, %s4567_s10  ;;  %v5588_v59 = vpop.permute.xlu1 %1013 }
 0x1cd   : > { %v5590_v60 = vpop.permute.xlu0 %1017 }
 0x1ce   : > { %8498 = vst [vmem:[#allocation134_spill] sm:$0xff] %v5590_v60  ;;  %v646_v60 = vld [vmem:[#allocation2 + $0x129] sm:$0xff] }
 0x1cf   : > { %1233 = vrot.lane.b32.xlu2 %v5126_v6, %s4568_s11 }
 0x1d1   : > { %1167 = vrot.lane.b32.xlu1 %v5592_v26, %s4567_s10  ;;  %v5600_v61 = vpop.permute.xlu2 %1039 }
 0x1d2   : > { %8499 = vst [vmem:[#allocation135_spill] sm:$0xff] %v5600_v61 }
 0x1d3   : > { %1235 = vrot.lane.b32.xlu0 %v5124_v1, %s4568_s11  ;;  %v5602_v63 = vpop.permute.xlu1 %1019 }
 0x1d4   : > { %8500 = vst [vmem:[#allocation136_spill] sm:$0xff] %v5602_v63  ;;  %v631_v63 = vld [vmem:[#allocation2 + $0x79] sm:$0xff] }
 0x1d5   : > { %v5604_v21 = vpop.permute.xlu0 %1023 }
 0x1d6   : > { %8501 = vst [vmem:[#allocation137_spill] sm:$0xff] %v5604_v21  ;;  %v606_v21 = vld [vmem:[#allocation2 + $0xc8] sm:$0xff] }
 0x1d7   : > { %1239 = vrot.lane.b32.xlu2 %v5140_v0, %s4568_s11 }
 0x1d9   : > { %1237 = vrot.lane.b32.xlu1 %v5128_v22, %s4568_s11  ;;  %v5612_v6 = vpop.permute.xlu2 %1109 }
 0x1db   : > { %1241 = vrot.lane.b32.xlu0 %v5138_v62, %s4568_s11  ;;  %v5614_v58 = vpop.permute.xlu1 %1025 }
 0x1dc   : > { %8502 = vst [vmem:[#allocation138_spill] sm:$0xff] %v5614_v58  ;;  %v8530_v58 = vld [vmem:[#allocation72_spill] sm:$0xff] }
 0x1dd   : > { %v5616_v1 = vpop.permute.xlu0 %1029 }
 0x1de   : > { %8503 = vst [vmem:[#allocation139_spill] sm:$0xff] %v5616_v1  ;;  %v5716_v1 = vld [vmem:[#allocation2 + $0x18a] sm:$0xff] }
 0x1df   : > { %1245 = vrot.lane.b32.xlu2 %v5154_v45, %s4568_s11 }
 0x1e1   : > { %1243 = vrot.lane.b32.xlu1 %v5142_v20, %s4568_s11  ;;  %v5624_v0 = vpop.permute.xlu2 %1115 }
 0x1e3   : > { %1247 = vrot.lane.b32.xlu0 %v5152_v16, %s4568_s11  ;;  %v5626_v22 = vpop.permute.xlu1 %1031 }
 0x1e4   : > { %8504 = vst [vmem:[#allocation140_spill] sm:$0xff] %v5626_v22  ;;  %v5714_v22 = vld [vmem:[#allocation2 + $0x182] sm:$0xff] }
 0x1e5   : > { %v5628_v62 = vpop.permute.xlu0 %1035 }
 0x1e6   : > { %8505 = vst [vmem:[#allocation141_spill] sm:$0xff] %v5628_v62  ;;  %v8518_v62 = vld [vmem:[#allocation54_spill] sm:$0xff] }
 0x1e7   : > { %1251 = vrot.lane.b32.xlu2 %v5170_v39, %s4568_s11 }
 0x1e9   : > { %1249 = vrot.lane.b32.xlu1 %v5156_v18, %s4568_s11  ;;  %v5636_v45 = vpop.permute.xlu2 %1121 }
 0x1eb   : > { %1253 = vrot.lane.b32.xlu0 %v5168_v15, %s4568_s11  ;;  %v5638_v20 = vpop.permute.xlu1 %1037 }
 0x1ec   : > { %8506 = vst [vmem:[#allocation142_spill] sm:$0xff] %v5638_v20  ;;  %v8517_v20 = vld [vmem:[#allocation59_spill] sm:$0xff] }
 0x1ed   : > { %v5640_v16 = vpop.permute.xlu0 %1105 }
 0x1ef   : > { %1257 = vrot.lane.b32.xlu2 %v5188_v33, %s4568_s11 }
 0x1f1   : > { %1255 = vrot.lane.b32.xlu1 %v5172_v13, %s4568_s11  ;;  %v5648_v39 = vpop.permute.xlu2 %1127 }
 0x1f2   : > { %8507 = vst [vmem:[#allocation143_spill] sm:$0xff] %v5648_v39  ;;  %v629_v39 = vld [vmem:[#allocation2 + $0x61] sm:$0xff] }
 0x1f3   : > { %1259 = vrot.lane.b32.xlu0 %v5186_v12, %s4568_s11  ;;  %v5650_v18 = vpop.permute.xlu1 %1107 }
 0x1f5   : > { %v5652_v15 = vpop.permute.xlu0 %1111 }
 0x1f7   : > { %1263 = vrot.lane.b32.xlu2 %v5206_v29, %s4568_s11 }
 0x1f9   : > { %1261 = vrot.lane.b32.xlu1 %v5190_v10, %s4568_s11  ;;  %v5660_v33 = vpop.permute.xlu2 %1133 }
 0x1fa   : > { %8508 = vst [vmem:[#allocation144_spill] sm:$0xff] %v5660_v33  ;;  %v8529_v33 = vld [vmem:[#allocation68_spill] sm:$0xff] }
 0x1fb   : > { %1265 = vrot.lane.b32.xlu0 %v5204_v9, %s4568_s11  ;;  %v5662_v13 = vpop.permute.xlu1 %1113 }
 0x1fd   : > { %v5664_v12 = vpop.permute.xlu0 %1117 }
 0x1ff   : > { %1269 = vrot.lane.b32.xlu2 %v5224_v24, %s4568_s11 }
 0x201   : > { %1267 = vrot.lane.b32.xlu1 %v5208_v7, %s4568_s11  ;;  %v5672_v29 = vpop.permute.xlu2 %1139 }
 0x203   : > { %1271 = vrot.lane.b32.xlu0 %v5222_v8, %s4568_s11  ;;  %v5674_v10 = vpop.permute.xlu1 %1119 }
 0x205   : > { %v5676_v9 = vpop.permute.xlu0 %1123 }
 0x206   : > { %8509 = vst [vmem:[#allocation145_spill] sm:$0xff] %v5676_v9  ;;  %v668_v9 = vld [vmem:[#allocation2 + $0xb2] sm:$0xff] }
 0x207   : > { %1275 = vrot.lane.b32.xlu2 %v5242_v2, %s4568_s11  ;;  %v8513_v2 = vld [vmem:[#allocation53_spill] sm:$0xff] }
 0x209   : > { %1273 = vrot.lane.b32.xlu1 %v5226_v3, %s4568_s11  ;;  %v5684_v24 = vpop.permute.xlu2 %1145 }
 0x20a   : > { %8510 = vst [vmem:[#allocation146_spill] sm:$0xff] %v5684_v24  ;;  %v644_v24 = vld [vmem:[#allocation2 + $0x111] sm:$0xff] }
 0x20b   : > { %1277 = vrot.lane.b32.xlu0 %v5240_v44, %s4568_s11  ;;  %v5686_v7 = vpop.permute.xlu1 %1125 }
 0x20c   : > { %8511 = vst [vmem:[#allocation147_spill] sm:$0xff] %v5686_v7  ;;  %v643_v7 = vld [vmem:[#allocation2 + $0x109] sm:$0xff] }
 0x20d   : > { %v5688_v8 = vpop.permute.xlu0 %1129 }
 0x20e   : > { %8512 = vst [vmem:[#allocation148_spill] sm:$0xff] %v5688_v8  ;;  %v8552_v8 = vld [vmem:[#allocation99_spill] sm:$0xff] }
 0x20f   : > { %1281 = vrot.lane.b32.xlu2 %v5260_v49, %s4568_s11  ;;  %v8519_v49 = vld [vmem:[#allocation58_spill] sm:$0xff] }
 0x211   : > { %1279 = vrot.lane.b32.xlu1 %v5244_v25, %s4568_s11  ;;  %v5696_v61 = vpop.permute.xlu2 %1151 }
 0x212   : > { %8514 = vst [vmem:[#allocation53_spill] sm:$0xff] %v5696_v61  ;;  %v603_v61 = vld [vmem:[#allocation2 + $0xa8] sm:$0xff] }
 0x213   : > { %1283 = vrot.lane.b32.xlu0 %v8513_v2, %s4568_s11  ;;  %v5698_v3 = vpop.permute.xlu1 %1131 }
 0x214   : > { %8515 = vst [vmem:[#allocation149_spill] sm:$0xff] %v5698_v3 }
 0x215   : > { %v5700_v44 = vpop.permute.xlu0 %1135 }
 0x216   : > { %8516 = vst [vmem:[#allocation150_spill] sm:$0xff] %v5700_v44  ;;  %v593_v44 = vld [vmem:[#allocation2 + $0x30] sm:$0xff] }
 0x217   : > { %1287 = vrot.lane.b32.xlu2 %v8517_v20, %s4568_s11  ;;  %v8522_v20 = vld [vmem:[#allocation60_spill] sm:$0xff] }
 0x219   : > { %1285 = vrot.lane.b32.xlu1 %v8518_v62, %s4568_s11  ;;  %v5708_v17 = vpop.permute.xlu2 %1157 }
 0x21a   : > { %8520 = vst [vmem:[#allocation59_spill] sm:$0xff] %v5708_v17 }
 0x21b   : > { %1289 = vrot.lane.b32.xlu0 %v8519_v49, %s4568_s11  ;;  %v5710_v25 = vpop.permute.xlu1 %1137 }
 0x21d   : > { %v5712_v2 = vpop.permute.xlu0 %1141 }
 0x21e   : > { %8521 = vst [vmem:[#allocation54_spill] sm:$0xff] %v5712_v2 }
 0x21f   : > { %1293 = vrot.lane.b32.xlu2 %v5714_v22, %s4568_s11 }
 0x221   : > { %1291 = vrot.lane.b32.xlu1 %v8522_v20, %s4568_s11  ;;  %v5724_v62 = vpop.permute.xlu2 %1163 }
 0x222   : > { %8523 = vst [vmem:[#allocation58_spill] sm:$0xff] %v5724_v62  ;;  %v597_v62 = vld [vmem:[#allocation2 + $0x60] sm:$0xff] }
 0x223   : > { %1295 = vrot.lane.b32.xlu0 %v5716_v1, %s4568_s11  ;;  %v5726_v49 = vpop.permute.xlu1 %1143 }
 0x224   : > { %8524 = vst [vmem:[#allocation60_spill] sm:$0xff] %v5726_v49  ;;  %v665_v49 = vld [vmem:[#allocation2 + $0x92] sm:$0xff] }
 0x225   : > { %v5728_v17 = vpop.permute.xlu0 %1147 }
 0x226   : > { %8525 = vst [vmem:[#allocation151_spill] sm:$0xff] %v5728_v17  ;;  %v628_v17 = vld [vmem:[#allocation2 + $0x51] sm:$0xff] }
 0x227   : > { %1363 = vrot.lane.b32.xlu2 %v594_v5, %s4569_s12 }
 0x229   : > { %1361 = vrot.lane.b32.xlu1 %v593_v44, %s4569_s12  ;;  %v5734_v20 = vpop.permute.xlu2 %1233 }
 0x22b   : > { %1365 = vrot.lane.b32.xlu0 %v8526_v55, %s4569_s12  ;;  %v5736_v54 = vpop.permute.xlu1 %1149 }
 0x22c   : > { %8527 = vst [vmem:[#allocation67_spill] sm:$0xff] %v5736_v54 }
 0x22d   : > { %v5738_v37 = vpop.permute.xlu0 %1153 }
 0x22e   : > { %8528 = vst [vmem:[#allocation152_spill] sm:$0xff] %v5738_v37  ;;  %v8533_v37 = vld [vmem:[#allocation73_spill] sm:$0xff] }
 0x22f   : > { %1369 = vrot.lane.b32.xlu2 %v597_v62, %s4569_s12  ;;  %v8534_v62 = vld [vmem:[#allocation77_spill] sm:$0xff] }
 0x231   : > { %1367 = vrot.lane.b32.xlu1 %v8529_v33, %s4569_s12  ;;  %v5745_v5 = vpop.permute.xlu2 %1239 }
 0x233   : > { %1371 = vrot.lane.b32.xlu0 %v8530_v58, %s4569_s12  ;;  %v5747_v44 = vpop.permute.xlu1 %1155 }
 0x234   : > { %8531 = vst [vmem:[#allocation68_spill] sm:$0xff] %v5747_v44 }
 0x235   : > { %v5749_v55 = vpop.permute.xlu0 %1159 }
 0x236   : > { %8532 = vst [vmem:[#allocation72_spill] sm:$0xff] %v5749_v55  ;;  %v8537_v55 = vld [vmem:[#allocation78_spill] sm:$0xff] }
 0x237   : > { %1375 = vrot.lane.b32.xlu2 %v600_v53, %s4569_s12  ;;  %v8538_v53 = vld [vmem:[#allocation82_spill] sm:$0xff] }
 0x239   : > { %1373 = vrot.lane.b32.xlu1 %v8533_v37, %s4569_s12  ;;  %v5756_v3 = vpop.permute.xlu2 %1245 }
 0x23b   : > { %1377 = vrot.lane.b32.xlu0 %v8534_v62, %s4569_s12  ;;  %v5758_v33 = vpop.permute.xlu1 %1161 }
 0x23c   : > { %8535 = vst [vmem:[#allocation73_spill] sm:$0xff] %v5758_v33 }
 0x23d   : > { %v5760_v58 = vpop.permute.xlu0 %1165 }
 0x23e   : > { %8536 = vst [vmem:[#allocation77_spill] sm:$0xff] %v5760_v58  ;;  %v8541_v58 = vld [vmem:[#allocation83_spill] sm:$0xff] }
 0x23f   : > { %1381 = vrot.lane.b32.xlu2 %v603_v61, %s4569_s12  ;;  %v8542_v61 = vld [vmem:[#allocation87_spill] sm:$0xff] }
 0x241   : > { %1379 = vrot.lane.b32.xlu1 %v8537_v55, %s4569_s12  ;;  %v5767_v44 = vpop.permute.xlu2 %1251 }
 0x242   : > { %8539 = vst [vmem:[#allocation78_spill] sm:$0xff] %v5767_v44  ;;  %v650_v44 = vld [vmem:[#allocation2 + $0x159] sm:$0xff] }
 0x243   : > { %1383 = vrot.lane.b32.xlu0 %v8538_v53, %s4569_s12  ;;  %v5769_v37 = vpop.permute.xlu1 %1167 }
 0x244   : > { %8540 = vst [vmem:[#allocation82_spill] sm:$0xff] %v5769_v37 }
 0x245   : > { %v5771_v62 = vpop.permute.xlu0 %1235 }
 0x247   : > { %1387 = vrot.lane.b32.xlu2 %v606_v21, %s4569_s12  ;;  %v8544_v21 = vld [vmem:[#allocation93_spill] sm:$0xff] }
 0x249   : > { %1385 = vrot.lane.b32.xlu1 %v8541_v58, %s4569_s12  ;;  %v5778_v33 = vpop.permute.xlu2 %1257 }
 0x24a   : > { %8543 = vst [vmem:[#allocation83_spill] sm:$0xff] %v5778_v33  ;;  %v8546_v33 = vld [vmem:[#allocation94_spill] sm:$0xff] }
 0x24b   : > { %1389 = vrot.lane.b32.xlu0 %v8542_v61, %s4569_s12  ;;  %v5780_v55 = vpop.permute.xlu1 %1237 }
 0x24d   : > { %v5782_v53 = vpop.permute.xlu0 %1241 }
 0x24f   : > { %1393 = vrot.lane.b32.xlu2 %v609_v35, %s4569_s12  ;;  %v8547_v35 = vld [vmem:[#allocation98_spill] sm:$0xff] }
 0x251   : > { %1391 = vrot.lane.b32.xlu1 %v5373_v11, %s4569_s12  ;;  %v5789_v37 = vpop.permute.xlu2 %1263 }
 0x252   : > { %8545 = vst [vmem:[#allocation87_spill] sm:$0xff] %v5789_v37  ;;  %v8551_v37 = vld [vmem:[#allocation104_spill] sm:$0xff] }
 0x253   : > { %1395 = vrot.lane.b32.xlu0 %v8544_v21, %s4569_s12  ;;  %v5791_v58 = vpop.permute.xlu1 %1243 }
 0x255   : > { %v5793_v61 = vpop.permute.xlu0 %1247 }
 0x257   : > { %1399 = vrot.lane.b32.xlu2 %v612_v43, %s4569_s12  ;;  %v8553_v43 = vld [vmem:[#allocation103_spill] sm:$0xff] }
 0x259   : > { %1397 = vrot.lane.b32.xlu1 %v8546_v33, %s4569_s12  ;;  %v5800_v54 = vpop.permute.xlu2 %1269 }
 0x25a   : > { %8548 = vst [vmem:[#allocation93_spill] sm:$0xff] %v5800_v54  ;;  %v1976_v54 = vld [vmem:[%s8279_s1] sm:$0xff] }
 0x25b   : > { %1401 = vrot.lane.b32.xlu0 %v8547_v35, %s4569_s12  ;;  %v5802_v11 = vpop.permute.xlu1 %1249 }
 0x25c   : > { %8549 = vst [vmem:[#allocation94_spill] sm:$0xff] %v5802_v11  ;;  %v679_v11 = vld [vmem:[#allocation2 + $0x13a] sm:$0xff] }
 0x25d   : > { %v5804_v21 = vpop.permute.xlu0 %1253 }
 0x25e   : > { %8550 = vst [vmem:[#allocation98_spill] sm:$0xff] %v5804_v21  ;;  %v638_v21 = vld [vmem:[#allocation2 + $0xc9] sm:$0xff] }
 0x25f   : > { %1405 = vrot.lane.b32.xlu2 %v8551_v37, %s4569_s12  ;;  %v8558_v37 = vld [vmem:[#allocation109_spill] sm:$0xff] }
 0x261   : > { %1403 = vrot.lane.b32.xlu1 %v8552_v8, %s4569_s12  ;;  %v5812_v52 = vpop.permute.xlu2 %1275 }
 0x262   : > { %8554 = vst [vmem:[#allocation104_spill] sm:$0xff] %v5812_v52  ;;  %v626_v52 = vld [vmem:[#allocation2 + $0x39] sm:$0xff] }
 0x263   : > { %1407 = vrot.lane.b32.xlu0 %v8553_v43, %s4569_s12  ;;  %v5814_v33 = vpop.permute.xlu1 %1255 }
 0x264   : > { %8555 = vst [vmem:[#allocation99_spill] sm:$0xff] %v5814_v33  ;;  %v623_v33 = vld [vmem:[#allocation2 + $0x198] sm:$0xff] }
 0x265   : > { %v5816_v35 = vpop.permute.xlu0 %1259 }
 0x266   : > { %8556 = vst [vmem:[#allocation103_spill] sm:$0xff] %v5816_v35 }
 0x267   : > { %1411 = vrot.lane.b32.xlu2 %v5438_v32, %s4569_s12  ;;  %v8561_v32 = vld [vmem:[#allocation113_spill] sm:$0xff] }
 0x269   : > { %1409 = vrot.lane.b32.xlu1 %v8557_v51, %s4569_s12  ;;  %v5824_v14 = vpop.permute.xlu2 %1281 }
 0x26a   : > { %8559 = vst [vmem:[#allocation105_spill] sm:$0xff] %v5824_v14  ;;  %v624_v14 = vld [vmem:[#allocation2 + $0x1a0] sm:$0xff] }
 0x26b   : > { %1413 = vrot.lane.b32.xlu0 %v8558_v37, %s4569_s12  ;;  %v5826_v8 = vpop.permute.xlu1 %1261 }
 0x26c   : > { %8560 = vst [vmem:[#allocation109_spill] sm:$0xff] %v5826_v8  ;;  %v625_v8 = vld [vmem:[#allocation2 + $0x31] sm:$0xff] }
 0x26d   : > { %v5828_v43 = vpop.permute.xlu0 %1265 }
 0x26f   : > { %1417 = vrot.lane.b32.xlu2 %v5456_v38, %s4569_s12 }
 0x271   : > { %1415 = vrot.lane.b32.xlu1 %v5442_v27, %s4569_s12  ;;  %v5836_v35 = vpop.permute.xlu2 %1287 }
 0x272   : > { %8562 = vst [vmem:[#allocation113_spill] sm:$0xff] %v5836_v35  ;;  %v627_v35 = vld [vmem:[#allocation2 + $0x49] sm:$0xff] }
 0x273   : > { %1419 = vrot.lane.b32.xlu0 %v8561_v32, %s4569_s12  ;;  %v5838_v51 = vpop.permute.xlu1 %1267 }
 0x275   : > { %v5840_v37 = vpop.permute.xlu0 %1271 }
 0x276   : > { %8563 = vst [vmem:[#allocation153_spill] sm:$0xff] %v5840_v37  ;;  %v649_v37 = vld [vmem:[#allocation2 + $0x151] sm:$0xff] }
 0x277   : > { %1423 = vrot.lane.b32.xlu2 %v624_v14, %s4569_s12 }
 0x279   : > { %1421 = vrot.lane.b32.xlu1 %v623_v33, %s4569_s12  ;;  %v5845_v27 = vpop.permute.xlu2 %1293 }
 0x27a   : > { %8564 = vst [vmem:[#allocation154_spill] sm:$0xff] %v5845_v27  ;;  %v630_v27 = vld [vmem:[#allocation2 + $0x69] sm:$0xff] }
 0x27b   : > { %1489 = vrot.lane.b32.xlu0 %v625_v8, %s4570_s13  ;;  %v5847_v38 = vpop.permute.xlu1 %1273 }
 0x27c   : > { %8565 = vst [vmem:[#allocation155_spill] sm:$0xff] %v5847_v38  ;;  %v635_v38 = vld [vmem:[#allocation2 + $0xa9] sm:$0xff] }
 0x27d   : > { %v5849_v32 = vpop.permute.xlu0 %1277 }
 0x27e   : > { %8566 = vst [vmem:[#allocation156_spill] sm:$0xff] %v5849_v32  ;;  %v633_v32 = vld [vmem:[#allocation2 + $0x91] sm:$0xff] }
 0x27f   : > { %1493 = vrot.lane.b32.xlu2 %v627_v35, %s4570_s13 }
 0x281   : > { %1491 = vrot.lane.b32.xlu1 %v626_v52, %s4570_s13  ;;  %v5854_v14 = vpop.permute.xlu2 %1363 }
 0x283   : > { %1495 = vrot.lane.b32.xlu0 %v628_v17, %s4570_s13  ;;  %v5856_v33 = vpop.permute.xlu1 %1279 }
 0x284   : > { %8567 = vst [vmem:[#allocation157_spill] sm:$0xff] %v5856_v33  ;;  %v634_v33 = vld [vmem:[#allocation2 + $0x99] sm:$0xff] }
 0x285   : > { %v5858_v8 = vpop.permute.xlu0 %1283 }
 0x286   : > { %8568 = vst [vmem:[#allocation158_spill] sm:$0xff] %v5858_v8  ;;  %v636_v8 = vld [vmem:[#allocation2 + $0xb1] sm:$0xff] }
 0x287   : > { %1499 = vrot.lane.b32.xlu2 %v630_v27, %s4570_s13 }
 0x289   : > { %1497 = vrot.lane.b32.xlu1 %v629_v39, %s4570_s13  ;;  %v5863_v35 = vpop.permute.xlu2 %1369 }
 0x28b   : > { %1501 = vrot.lane.b32.xlu0 %v631_v63, %s4570_s13  ;;  %v5865_v52 = vpop.permute.xlu1 %1285 }
 0x28c   : > { %8569 = vst [vmem:[#allocation159_spill] sm:$0xff] %v5865_v52  ;;  %v637_v52 = vld [vmem:[#allocation2 + $0xc1] sm:$0xff] }
 0x28d   : > { %v5867_v17 = vpop.permute.xlu0 %1289 }
 0x28e   : > { %8570 = vst [vmem:[#allocation160_spill] sm:$0xff] %v5867_v17  ;;  %v639_v17 = vld [vmem:[#allocation2 + $0xd9] sm:$0xff] }
 0x28f   : > { %1505 = vrot.lane.b32.xlu2 %v633_v32, %s4570_s13 }
 0x291   : > { %1503 = vrot.lane.b32.xlu1 %v632_v50, %s4570_s13  ;;  %v5872_v27 = vpop.permute.xlu2 %1375 }
 0x293   : > { %1507 = vrot.lane.b32.xlu0 %v634_v33, %s4570_s13  ;;  %v5874_v39 = vpop.permute.xlu1 %1291 }
 0x294   : > { %8571 = vst [vmem:[#allocation161_spill] sm:$0xff] %v5874_v39  ;;  %v640_v39 = vld [vmem:[#allocation2 + $0xe1] sm:$0xff] }
 0x295   : > { %v5876_v63 = vpop.permute.xlu0 %1295 }
 0x296   : > { %8572 = vst [vmem:[#allocation162_spill] sm:$0xff] %v5876_v63  ;;  %v642_v63 = vld [vmem:[#allocation2 + $0xf9] sm:$0xff] }
 0x297   : > { %1511 = vrot.lane.b32.xlu2 %v636_v8, %s4570_s13 }
 0x299   : > { %1509 = vrot.lane.b32.xlu1 %v635_v38, %s4570_s13  ;;  %v5881_v32 = vpop.permute.xlu2 %1381 }
 0x29a   : > { %8573 = vst [vmem:[#allocation163_spill] sm:$0xff] %v5881_v32  ;;  %v641_v32 = vld [vmem:[#allocation2 + $0xf1] sm:$0xff] }
 0x29b   : > { %1513 = vrot.lane.b32.xlu0 %v637_v52, %s4570_s13  ;;  %v5883_v50 = vpop.permute.xlu1 %1361 }
 0x29d   : > { %v5885_v33 = vpop.permute.xlu0 %1365 }
 0x29f   : > { %1517 = vrot.lane.b32.xlu2 %v639_v17, %s4570_s13 }
 0x2a1   : > { %1515 = vrot.lane.b32.xlu1 %v638_v21, %s4570_s13  ;;  %v5890_v8 = vpop.permute.xlu2 %1387 }
 0x2a2   : > { %8574 = vst [vmem:[#allocation164_spill] sm:$0xff] %v5890_v8  ;;  %v645_v8 = vld [vmem:[#allocation2 + $0x121] sm:$0xff] }
 0x2a3   : > { %1519 = vrot.lane.b32.xlu0 %v640_v39, %s4570_s13  ;;  %v5892_v38 = vpop.permute.xlu1 %1367 }
 0x2a5   : > { %v5894_v52 = vpop.permute.xlu0 %1371 }
 0x2a7   : > { %1523 = vrot.lane.b32.xlu2 %v642_v63, %s4570_s13 }
 0x2a9   : > { %1521 = vrot.lane.b32.xlu1 %v641_v32, %s4570_s13  ;;  %v5899_v17 = vpop.permute.xlu2 %1393 }
 0x2ab   : > { %1525 = vrot.lane.b32.xlu0 %v643_v7, %s4570_s13  ;;  %v5901_v21 = vpop.permute.xlu1 %1373 }
 0x2ad   : > { %v5903_v39 = vpop.permute.xlu0 %1377 }
 0x2ae   : > { %8575 = vst [vmem:[#allocation165_spill] sm:$0xff] %v5903_v39  ;;  %v677_v39 = vld [vmem:[#allocation2 + $0x122] sm:$0xff] }
 0x2af   : > { %1529 = vrot.lane.b32.xlu2 %v645_v8, %s4570_s13 }
 0x2b1   : > { %1527 = vrot.lane.b32.xlu1 %v644_v24, %s4570_s13  ;;  %v5908_v63 = vpop.permute.xlu2 %1399 }
 0x2b2   : > { %8576 = vst [vmem:[#allocation166_spill] sm:$0xff] %v5908_v63  ;;  %v651_v63 = vld [vmem:[#allocation2 + $0x169] sm:$0xff] }
 0x2b3   : > { %1531 = vrot.lane.b32.xlu0 %v646_v60, %s4570_s13  ;;  %v5910_v32 = vpop.permute.xlu1 %1379 }
 0x2b4   : > { %8577 = vst [vmem:[#allocation167_spill] sm:$0xff] %v5910_v32  ;;  %v652_v32 = vld [vmem:[#allocation2 + $0x171] sm:$0xff] }
 0x2b5   : > { %v5912_v7 = vpop.permute.xlu0 %1383 }
 0x2b6   : > { %8578 = vst [vmem:[#allocation168_spill] sm:$0xff] %v5912_v7  ;;  %v661_v7 = vld [vmem:[#allocation2 + $0x62] sm:$0xff] }
 0x2b7   : > { %1535 = vrot.lane.b32.xlu2 %v648_v28, %s4570_s13 }
 0x2b9   : > { %1533 = vrot.lane.b32.xlu1 %v647_v23, %s4570_s13  ;;  %v5917_v8 = vpop.permute.xlu2 %1405 }
 0x2ba   : > { %8579 = vst [vmem:[#allocation169_spill] sm:$0xff] %v5917_v8  ;;  %v655_v8 = vld [vmem:[#allocation2 + $0x199] sm:$0xff] }
 0x2bb   : > { %1537 = vrot.lane.b32.xlu0 %v649_v37, %s4570_s13  ;;  %v5919_v24 = vpop.permute.xlu1 %1385 }
 0x2bc   : > { %8580 = vst [vmem:[#allocation170_spill] sm:$0xff] %v5919_v24  ;;  %v659_v24 = vld [vmem:[#allocation2 + $0x4a] sm:$0xff] }
 0x2bd   : > { %v5921_v60 = vpop.permute.xlu0 %1389 }
 0x2be   : > { %8581 = vst [vmem:[#allocation171_spill] sm:$0xff] %v5921_v60  ;;  %v656_v60 = vld [vmem:[#allocation2 + $0x1a1] sm:$0xff] }
 0x2bf   : > { %1541 = vrot.lane.b32.xlu2 %v651_v63, %s4570_s13 }
 0x2c1   : > { %1539 = vrot.lane.b32.xlu1 %v650_v44, %s4570_s13  ;;  %v5926_v28 = vpop.permute.xlu2 %1411 }
 0x2c2   : > { %8582 = vst [vmem:[#allocation172_spill] sm:$0xff] %v5926_v28  ;;  %v657_v28 = vld [vmem:[#allocation2 + $0x32] sm:$0xff] }
 0x2c3   : > { %1543 = vrot.lane.b32.xlu0 %v652_v32, %s4570_s13  ;;  %v5928_v23 = vpop.permute.xlu1 %1391 }
 0x2c4   : > { %8583 = vst [vmem:[#allocation173_spill] sm:$0xff] %v5928_v23  ;;  %v658_v23 = vld [vmem:[#allocation2 + $0x3a] sm:$0xff] }
 0x2c5   : > { %v5930_v37 = vpop.permute.xlu0 %1395 }
 0x2c7   : > { %1547 = vrot.lane.b32.xlu2 %v5592_v26, %s4570_s13 }
 0x2c9   : > { %1545 = vrot.lane.b32.xlu1 %v5578_v57, %s4570_s13  ;;  %v5937_v63 = vpop.permute.xlu2 %1417 }
 0x2ca   : > { %8584 = vst [vmem:[#allocation174_spill] sm:$0xff] %v5937_v63  ;;  %v660_v63 = vld [vmem:[#allocation2 + $0x52] sm:$0xff] }
 0x2cb   : > { %1549 = vrot.lane.b32.xlu0 %v655_v8, %s4570_s13  ;;  %v5939_v44 = vpop.permute.xlu1 %1397 }
 0x2cc   : > { %8585 = vst [vmem:[#allocation175_spill] sm:$0xff] %v5939_v44 }
 0x2cd   : > { %v5941_v32 = vpop.permute.xlu0 %1401 }
 0x2ce   : > { %8586 = vst [vmem:[#allocation176_spill] sm:$0xff] %v5941_v32  ;;  %v662_v32 = vld [vmem:[#allocation2 + $0x6a] sm:$0xff] }
 0x2cf   : > { %1617 = vrot.lane.b32.xlu2 %v657_v28, %s4571_s14 }
 0x2d1   : > { %1551 = vrot.lane.b32.xlu1 %v656_v60, %s4570_s13  ;;  %v5946_v26 = vpop.permute.xlu2 %1423 }
 0x2d2   : > { %8587 = vst [vmem:[#allocation177_spill] sm:$0xff] %v5946_v26  ;;  %v663_v26 = vld [vmem:[#allocation2 + $0x7a] sm:$0xff] }
 0x2d3   : > { %1619 = vrot.lane.b32.xlu0 %v658_v23, %s4571_s14  ;;  %v5948_v57 = vpop.permute.xlu1 %1403 }
 0x2d4   : > { %8588 = vst [vmem:[#allocation178_spill] sm:$0xff] %v5948_v57  ;;  %v664_v57 = vld [vmem:[#allocation2 + $0x82] sm:$0xff] }
 0x2d5   : > { %v5950_v8 = vpop.permute.xlu0 %1407 }
 0x2d6   : > { %8589 = vst [vmem:[#allocation179_spill] sm:$0xff] %v5950_v8  ;;  %v666_v8 = vld [vmem:[#allocation2 + $0x9a] sm:$0xff] }
 0x2d7   : > { %1623 = vrot.lane.b32.xlu2 %v660_v63, %s4571_s14 }
 0x2d9   : > { %1621 = vrot.lane.b32.xlu1 %v659_v24, %s4571_s14  ;;  %v5955_v28 = vpop.permute.xlu2 %1493 }
 0x2db   : > { %1625 = vrot.lane.b32.xlu0 %v661_v7, %s4571_s14  ;;  %v5957_v60 = vpop.permute.xlu1 %1409 }
 0x2dc   : > { %8590 = vst [vmem:[#allocation180_spill] sm:$0xff] %v5957_v60  ;;  %v667_v60 = vld [vmem:[#allocation2 + $0xaa] sm:$0xff] }
 0x2dd   : > { %v5959_v23 = vpop.permute.xlu0 %1413 }
 0x2de   : > { %8591 = vst [vmem:[#allocation181_spill] sm:$0xff] %v5959_v23  ;;  %v669_v23 = vld [vmem:[#allocation2 + $0xc2] sm:$0xff] }
 0x2df   : > { %1629 = vrot.lane.b32.xlu2 %v663_v26, %s4571_s14 }
 0x2e1   : > { %1627 = vrot.lane.b32.xlu1 %v662_v32, %s4571_s14  ;;  %v5964_v63 = vpop.permute.xlu2 %1499 }
 0x2e3   : > { %1631 = vrot.lane.b32.xlu0 %v664_v57, %s4571_s14  ;;  %v5966_v24 = vpop.permute.xlu1 %1415 }
 0x2e4   : > { %8592 = vst [vmem:[#allocation182_spill] sm:$0xff] %v5966_v24  ;;  %v670_v24 = vld [vmem:[#allocation2 + $0xca] sm:$0xff] }
 0x2e5   : > { %v5968_v7 = vpop.permute.xlu0 %1419 }
 0x2e6   : > { %8593 = vst [vmem:[#allocation183_spill] sm:$0xff] %v5968_v7  ;;  %v672_v7 = vld [vmem:[#allocation2 + $0xe2] sm:$0xff] }
 0x2e7   : > { %1635 = vrot.lane.b32.xlu2 %v666_v8, %s4571_s14 }
 0x2e9   : > { %1633 = vrot.lane.b32.xlu1 %v665_v49, %s4571_s14  ;;  %v5973_v26 = vpop.permute.xlu2 %1505 }
 0x2ea   : > { %8594 = vst [vmem:[#allocation184_spill] sm:$0xff] %v5973_v26 }
 0x2eb   : > { %1637 = vrot.lane.b32.xlu0 %v667_v60, %s4571_s14  ;;  %v5975_v32 = vpop.permute.xlu1 %1421 }
 0x2ec   : > { %8595 = vst [vmem:[#allocation185_spill] sm:$0xff] %v5975_v32  ;;  %v673_v32 = vld [vmem:[#allocation2 + $0xf2] sm:$0xff] }
 0x2ed   : > { %v5977_v57 = vpop.permute.xlu0 %1489 }
 0x2ef   : > { %1641 = vrot.lane.b32.xlu2 %v669_v23, %s4571_s14 }
 0x2f1   : > { %1639 = vrot.lane.b32.xlu1 %v668_v9, %s4571_s14  ;;  %v5982_v8 = vpop.permute.xlu2 %1511 }
 0x2f2   : > { %8596 = vst [vmem:[#allocation186_spill] sm:$0xff] %v5982_v8 }
 0x2f3   : > { %1643 = vrot.lane.b32.xlu0 %v670_v24, %s4571_s14  ;;  %v5984_v49 = vpop.permute.xlu1 %1491  ;;  %v1984_v24 = vld [vmem:[%s8279_s1 + $0x40] sm:$0xff] }
 0x2f4   : > { %2089 = vmatpush.msra.mxu0 %v1984_v24  ;;  %4473 = vmatpush.msra.mxu2 %v1984_v24  ;;  %v1981_v24 = vld [vmem:[%s8279_s1 + $0x28] sm:$0xff] }
 0x2f5   : > { %v5986_v60 = vpop.permute.xlu0 %1495 }
 0x2f7   : > { %1647 = vrot.lane.b32.xlu2 %v672_v7, %s4571_s14  ;;  %v1983_v7 = vld [vmem:[%s8279_s1 + $0x38] sm:$0xff] }
 0x2f8   : > { %2090 = vmatpush.msra.mxu0 %v1983_v7  ;;  %4474 = vmatpush.msra.mxu2 %v1983_v7  ;;  %v1980_v7 = vld [vmem:[%s8279_s1 + $0x20] sm:$0xff] }
 0x2f9   : > { %1645 = vrot.lane.b32.xlu1 %v671_v48, %s4571_s14  ;;  %v5991_v23 = vpop.permute.xlu2 %1517  ;;  %v1982_v48 = vld [vmem:[%s8279_s1 + $0x30] sm:$0xff] }
 0x2fa   : > { %8597 = vst [vmem:[#allocation187_spill] sm:$0xff] %v5991_v23  ;;  %v676_v23 = vld [vmem:[#allocation2 + $0x112] sm:$0xff]  ;;  %2091 = vmatpush.msra.mxu0 %v1982_v48  ;;  %4475 = vmatpush.msra.mxu2 %v1982_v48 }
 0x2fb   : > { %1649 = vrot.lane.b32.xlu0 %v673_v32, %s4571_s14  ;;  %v5993_v9 = vpop.permute.xlu1 %1497  ;;  %v674_v32 = vld [vmem:[#allocation2 + $0xfa] sm:$0xff] }
 0x2fc   : > { %2092 = vmatpush.msra.mxu0 %v1981_v24  ;;  %4476 = vmatpush.msra.mxu2 %v1981_v24  ;;  %v1979_v48 = vld [vmem:[%s8279_s1 + $0x18] sm:$0xff]  ;;  %v1977_v24 = vld [vmem:[%s8279_s1 + $0x8] sm:$0xff] }
 0x2fd   : > { %v5998_v8 = vpop.permute.xlu0 %1501 }
 0x2fe   : > { %2093 = vmatpush.msra.mxu0 %v1980_v7  ;;  %4477 = vmatpush.msra.mxu2 %v1980_v7 }
 0x2ff   : > { %1653 = vrot.lane.b32.xlu2 %v675_v47, %s4571_s14 }
 0x300   : > { %2094 = vmatpush.msra.mxu0 %v1979_v48  ;;  %4478 = vmatpush.msra.mxu2 %v1979_v48  ;;  %v680_v48 = vld [vmem:[#allocation2 + $0x142] sm:$0xff] }
 0x301   : > { %1651 = vrot.lane.b32.xlu1 %v674_v32, %s4571_s14  ;;  %v6012_v26 = vpop.permute.xlu2 %1523  ;;  %v678_v32 = vld [vmem:[#allocation2 + $0x12a] sm:$0xff] }
 0x303   : > { %1655 = vrot.lane.b32.xlu0 %v676_v23, %s4571_s14  ;;  %v6014_v44 = vpop.permute.xlu1 %1503  ;;  %v1978_v23 = vld [vmem:[%s8279_s1 + $0x10] sm:$0xff] }
 0x304   : > { %2095 = vmatpush.msra.mxu0 %v1978_v23  ;;  %4479 = vmatpush.msra.mxu2 %v1978_v23 }
 0x305   : > { %v6019_v47 = vpop.permute.xlu0 %1507 }
 0x306   : > { %8598 = vst [vmem:[#allocation188_spill] sm:$0xff] %v6019_v47  ;;  %2096 = vmatpush.msra.mxu0 %v1977_v24  ;;  %4480 = vmatpush.msra.mxu2 %v1977_v24  ;;  %v684_v24 = vld [vmem:[#allocation2 + $0x172] sm:$0xff] }
 0x307   : > { %1659 = vrot.lane.b32.xlu2 %v678_v32, %s4571_s14  ;;  %v681_v32 = vld [vmem:[#allocation2 + $0x152] sm:$0xff] }
 0x308   : > { %2097 = vmatpush.msra.mxu0 %v1976_v54  ;;  %4481 = vmatpush.msra.mxu2 %v1976_v54 }
 0x309   : > { %1657 = vrot.lane.b32.xlu1 %v677_v39, %s4571_s14  ;;  %v6033_v47 = vpop.permute.xlu2 %1529  ;;  %v682_v39 = vld [vmem:[#allocation2 + $0x15a] sm:$0xff] }
 0x30a   : > { %8599 = vst [vmem:[#allocation189_spill] sm:$0xff] %v6033_v47  ;;  %v683_v47 = vld [vmem:[#allocation2 + $0x16a] sm:$0xff] }
 0x30b   : > { %1661 = vrot.lane.b32.xlu0 %v679_v11, %s4571_s14  ;;  %v6035_v7 = vpop.permute.xlu1 %1509 }
 0x30c   : > { %8600 = vst [vmem:[#allocation190_spill] sm:$0xff] %v6035_v7 }
 0x30d   : > { %v6040_v2 = vpop.permute.xlu0 %1513 }
 0x30e   : > { %8601 = vst [vmem:[#allocation191_spill] sm:$0xff] %v6040_v2  ;;  %v8609_v2 = vld [vmem:[#allocation64_spill] sm:$0xff] }
 0x30f   : > { %1665 = vrot.lane.b32.xlu2 %v681_v32, %s4571_s14 }
 0x311   : > { %1663 = vrot.lane.b32.xlu1 %v680_v48, %s4571_s14  ;;  %v6045_v11 = vpop.permute.xlu2 %1535 }
 0x312   : > { %8602 = vst [vmem:[#allocation192_spill] sm:$0xff] %v6045_v11  ;;  %v688_v11 = vld [vmem:[#allocation2 + $0x1a2] sm:$0xff] }
 0x313   : > { %1667 = vrot.lane.b32.xlu0 %v682_v39, %s4571_s14  ;;  %v6047_v23 = vpop.permute.xlu1 %1515  ;;  %v687_v39 = vld [vmem:[#allocation2 + $0x19a] sm:$0xff] }
 0x314   : > { %8603 = vst [vmem:[#allocation193_spill] sm:$0xff] %v6047_v23 }
 0x315   : > { %v6049_v7 = vpop.permute.xlu0 %1519 }
 0x316   : > { %8604 = vst [vmem:[#allocation194_spill] sm:$0xff] %v6049_v7  ;;  %v400_v7 = vld [vmem:[#allocation2] sm:$0xff] }
 0x317   : > { %1671 = vrot.lane.b32.xlu2 %v684_v24, %s4571_s14  ;;  %v8608_v24 = vld [vmem:[#allocation36_spill] sm:$0xff] }
 0x319   : > { %1669 = vrot.lane.b32.xlu1 %v683_v47, %s4571_s14  ;;  %v6055_v54 = vpop.permute.xlu2 %1541 }
 0x31a   : > { %8605 = vst [vmem:[#allocation195_spill] sm:$0xff] %v6055_v54  ;;  %v1713_v54 = vsel %vm311_vm0, %v400_v7, %v8608_v24 }
 0x31b   : > { %1673 = vrot.lane.b32.xlu0 %v5714_v22, %s4571_s14  ;;  %v6057_v32 = vpop.permute.xlu1 %1521 }
 0x31d   : > { %v6059_v48 = vpop.permute.xlu0 %1525 }
 0x31e   : > { %8606 = vst [vmem:[#allocation196_spill] sm:$0xff] %v6059_v48  ;;  %v1746_v48 = vsel %vm1745_vm2, %v1713_v54, %v8609_v2 }
 0x31f   : > { %1677 = vrot.lane.b32.xlu2 %v687_v39, %s4571_s14 }
 0x321   : > { %1675 = vrot.lane.b32.xlu1 %v5716_v1, %s4571_s14  ;;  %v6065_v47 = vpop.permute.xlu2 %1547  ;;  %v1779_v1 = vsel %vm1778_vm3, %v1746_v48, %v5514_v30 }
 0x322   : > { %8607 = vst [vmem:[#allocation197_spill] sm:$0xff] %v6065_v47 }
 0x323   : > { %1679 = vrot.lane.b32.xlu0 %v688_v11, %s4571_s14  ;;  %v6067_v22 = vpop.permute.xlu1 %1527  ;;  %v1812_v11 = vsel %vm1811_vm5, %v1779_v1, %v5640_v16  ;;  %v401_v1 = vld [vmem:[#allocation2 + $0x8] sm:$0xff] }
 0x324   : > { %v1845_v39 = vsel %vm1844_vm4, %v1812_v11, %v5734_v20 }
 0x325   : > { %v6071_v23 = vpop.permute.xlu0 %1531  ;;  %v1878_v7 = vsel %vm1877_vm6, %v1845_v39, %v5883_v50  ;;  %v8613_v39 = vld [vmem:[#allocation40_spill] sm:$0xff] }
 0x326   : > { %v1911_v2 = vsel %vm1910_vm8, %v1878_v7, %v5977_v57  ;;  %v1714_v57 = vsel %vm311_vm0, %v401_v1, %v8613_v39  ;;  %v8614_v7 = vld [vmem:[#allocation81_spill] sm:$0xff] }
 0x327   : > { %v1747_v47 = vsel %vm1745_vm2, %v1714_v57, %v8614_v7  ;;  %v4512_v7 = vld [vmem:[#allocation2 + $0x18] sm:$0xff] }
 0x329   : > { %v1618_v54 = vpop.permute.xlu2 %1617 }
 0x32a   : > { %v1944_v30 = vsel %vm1943_vm7, %v1911_v2, %v1618_v54  ;;  %v1780_v2 = vsel %vm1778_vm3, %v1747_v47, %v5476_v31 }
 0x32b   : > { %v6085_v24 = vpop.permute.xlu1 %1533  ;;  %4405 = vmatmul.msk.f32.vlgmr.msra.gmra.mxu0 %vm1985_vm9, %v1944_v30  ;;  %v1813_v54 = vsel %vm1811_vm5, %v1780_v2, %v5650_v18  ;;  %v8616_v18 = vld [vmem:[#allocation85_spill] sm:$0xff] }
 0x32c   : > { %v1846_v30 = vsel %vm1844_vm4, %v1813_v54, %v5771_v62 }
 0x32d   : > { %v6088_v48 = vpop.permute.xlu0 %1537 }
 0x331   : > { %v1624_v47 = vpop.permute.xlu2 %1623 }
 0x333   : > { %v6091_v16 = vpop.permute.xlu1 %1539 }
 0x335   : > { %v6093_v20 = vpop.permute.xlu0 %1543 }
 0x336   : > { %8610 = vst [vmem:[#allocation36_spill] sm:$0xff] %v6093_v20 }
 0x33b   : > { %v6095_v50 = vpop.permute.xlu1 %1545 }
 0x33c   : > { %8611 = vst [vmem:[#allocation64_spill] sm:$0xff] %v6095_v50  ;;  %v1879_v50 = vsel %vm1877_vm6, %v1846_v30, %v5854_v14 }
 0x33d   : > { %v6097_v11 = vpop.permute.xlu0 %1549  ;;  %v1912_v1 = vsel %vm1910_vm8, %v1879_v50, %v5984_v49 }
 0x33e   : > { %8612 = vst [vmem:[#allocation198_spill] sm:$0xff] %v6097_v11  ;;  %v8615_v11 = vld [vmem:[#allocation38_spill] sm:$0xff] }
 0x33f   : > { %v1715_v31 = vsel %vm311_vm0, %v4512_v7, %v8615_v11 }
 0x340   : > { %v1748_v62 = vsel %vm1745_vm2, %v1715_v31, %v8616_v18  ;;  %v1630_v31 = vpop.permute.xlu2 %1629 }
 0x341   : > { %v1781_v14 = vsel %vm1778_vm3, %v1748_v62, %v5516_v34 }
 0x342   : > { %v1814_v2 = vsel %vm1811_vm5, %v1781_v14, %v5612_v6  ;;  %v8618_v6 = vld [vmem:[#allocation69_spill] sm:$0xff] }
 0x343   : > { %v6111_v20 = vpop.permute.xlu1 %1551  ;;  %v1847_v49 = vsel %vm1844_vm4, %v1814_v2, %v5780_v55 }
 0x344   : > { %v1880_v50 = vsel %vm1877_vm6, %v1847_v49, %v5885_v33 }
 0x345   : > { %v1620_v39 = vpop.permute.xlu0 %1619  ;;  %v1913_v11 = vsel %vm1910_vm8, %v1880_v50, %v5955_v28  ;;  %v4514_v50 = vld [vmem:[#allocation2 + $0x30] sm:$0xff] }
 0x346   : > { %v1945_v57 = vsel %vm1943_vm7, %v1912_v1, %v1620_v39  ;;  %v4513_v39 = vld [vmem:[#allocation2 + $0x20] sm:$0xff] }
 0x347   : > { %4406 = vmatmul.msk.f32.gmra.mxu0 %vm1985_vm9, %v1945_v57  ;;  %v8617_v57 = vld [vmem:[#allocation42_spill] sm:$0xff] }
 0x348   : > { %v1716_v34 = vsel %vm311_vm0, %v4513_v39, %v8617_v57  ;;  %v6167_v57 = vpop.permute.xlu2 %1635 }
 0x349   : > { %v1749_v7 = vsel %vm1745_vm2, %v1716_v34, %v8618_v6  ;;  %v4515_v6 = vld [vmem:[#allocation2 + $0x38] sm:$0xff] }
 0x34a   : > { %v1782_v55 = vsel %vm1778_vm3, %v1749_v7, %v5526_v36  ;;  %v8619_v36 = vld [vmem:[#allocation34_spill] sm:$0xff]  ;;  %v8621_v7 = vld [vmem:[#allocation35_spill] sm:$0xff] }
 0x34b   : > { %v1622_v54 = vpop.permute.xlu1 %1621  ;;  %v1815_v33 = vsel %vm1811_vm5, %v1782_v55, %v5652_v15  ;;  %v8620_v15 = vld [vmem:[#allocation86_spill] sm:$0xff] }
 0x34c   : > { %v1946_v1 = vsel %vm1943_vm7, %v1913_v11, %v1622_v54  ;;  %v1848_v28 = vsel %vm1844_vm4, %v1815_v33, %v5745_v5  ;;  %v1717_v54 = vsel %vm311_vm0, %v4514_v50, %v8619_v36  ;;  %v4516_v50 = vld [vmem:[#allocation2 + $0x48] sm:$0xff] }
 0x34d   : > { %v1626_v30 = vpop.permute.xlu0 %1625  ;;  %v1881_v18 = vsel %vm1877_vm6, %v1848_v28, %v5892_v38  ;;  %v1750_v5 = vsel %vm1745_vm2, %v1717_v54, %v8620_v15  ;;  %v8624_v54 = vld [vmem:[#allocation56_spill] sm:$0xff] }
 0x34e   : > { %v1914_v14 = vsel %vm1910_vm8, %v1881_v18, %v5986_v60  ;;  %v1783_v38 = vsel %vm1778_vm3, %v1750_v5, %v5488_v4 }
 0x34f   : > { %4407 = vmatmul.msk.f32.gmra.mxu0 %vm1985_vm9, %v1946_v1  ;;  %v1947_v49 = vsel %vm1943_vm7, %v1914_v14, %v1624_v47  ;;  %v1816_v11 = vsel %vm1811_vm5, %v1783_v38, %v5662_v13  ;;  %v1718_v13 = vsel %vm311_vm0, %v4515_v6, %v8621_v7 }
 0x350   : > { %v1849_v60 = vsel %vm1844_vm4, %v1816_v11, %v5782_v53  ;;  %v8622_v53 = vld [vmem:[#allocation91_spill] sm:$0xff]  ;;  %v6196_v15 = vpop.permute.xlu2 %1641 }
 0x351   : > { %v1882_v47 = vsel %vm1877_vm6, %v1849_v60, %v5863_v35  ;;  %v1751_v35 = vsel %vm1745_vm2, %v1718_v13, %v8622_v53  ;;  %v8627_v53 = vld [vmem:[#allocation44_spill] sm:$0xff] }
 0x352   : > { %v1915_v39 = vsel %vm1910_vm8, %v1882_v47, %v5993_v9  ;;  %v1784_v55 = vsel %vm1778_vm3, %v1751_v35, %v5528_v40  ;;  %v8623_v40 = vld [vmem:[#allocation43_spill] sm:$0xff]  ;;  %v4519_v35 = vld [vmem:[#allocation2 + $0x50] sm:$0xff] }
 0x353   : > { %v1628_v62 = vpop.permute.xlu1 %1627  ;;  %v1948_v4 = vsel %vm1943_vm7, %v1915_v39, %v1626_v30  ;;  %v1817_v9 = vsel %vm1811_vm5, %v1784_v55, %v5624_v0  ;;  %v1719_v36 = vsel %vm311_vm0, %v4516_v50, %v8623_v40  ;;  %v4517_v0 = vld [vmem:[#allocation2 + $0xc0] sm:$0xff]  ;;  %v8628_v55 = vld [vmem:[#allocation45_spill] sm:$0xff] }
 0x354   : > { %v1850_v33 = vsel %vm1844_vm4, %v1817_v9, %v5791_v58  ;;  %v1729_v58 = vsel %vm311_vm0, %v4517_v0, %v8624_v54  ;;  %v8630_v9 = vld [vmem:[#allocation111_spill] sm:$0xff] }
 0x355   : > { %v6147_v2 = vpop.permute.xlu0 %1631  ;;  %v1883_v30 = vsel %vm1877_vm6, %v1850_v33, %v5894_v52  ;;  %v8625_v52 = vld [vmem:[#allocation74_spill] sm:$0xff] }
 0x356   : > { %v1916_v18 = vsel %vm1910_vm8, %v1883_v30, %v5964_v63  ;;  %v1752_v5 = vsel %vm1745_vm2, %v1719_v36, %v8625_v52  ;;  %v8626_v63 = vld [vmem:[#allocation108_spill] sm:$0xff] }
 0x357   : > { %4408 = vmatmul.msk.f32.gmra.mxu0 %vm1985_vm9, %v1947_v49  ;;  %v1949_v49 = vsel %vm1943_vm7, %v1916_v18, %v1628_v62  ;;  %v1762_v38 = vsel %vm1745_vm2, %v1729_v58, %v8626_v63  ;;  %v1785_v11 = vsel %vm1778_vm3, %v1752_v5, %v5538_v42  ;;  %v4520_v58 = vld [vmem:[#allocation2 + $0x60] sm:$0xff]  ;;  %v8632_v5 = vld [vmem:[#allocation57_spill] sm:$0xff] }
 0x358   : > { %v1795_v62 = vsel %vm1778_vm3, %v1762_v38, %v5536_v41  ;;  %v1818_v60 = vsel %vm1811_vm5, %v1785_v11, %v5664_v12  ;;  %v6241_v18 = vpop.permute.xlu2 %1647  ;;  %v8634_v63 = vld [vmem:[#allocation96_spill] sm:$0xff] }
 0x359   : > { %v1828_v47 = vsel %vm1811_vm5, %v1795_v62, %v5710_v25  ;;  %v1851_v39 = vsel %vm1844_vm4, %v1818_v60, %v5756_v3  ;;  %v8635_v60 = vld [vmem:[#allocation54_spill] sm:$0xff] }
 0x35a   : > { %v1884_v41 = vsel %vm1877_vm6, %v1851_v39, %v5901_v21  ;;  %v1720_v21 = vsel %vm311_vm0, %v4519_v35, %v8628_v55  ;;  %v8636_v39 = vld [vmem:[#allocation93_spill] sm:$0xff]  ;;  %v8642_v55 = vld [vmem:[#allocation46_spill] sm:$0xff] }
 0x35b   : > { %v6163_v1 = vpop.permute.xlu1 %1633  ;;  %v1917_v42 = vsel %vm1910_vm8, %v1884_v41, %v5998_v8  ;;  %v8629_v8 = vld [vmem:[#allocation92_spill] sm:$0xff]  ;;  %v4522_v35 = vld [vmem:[#allocation2 + $0x68] sm:$0xff] }
 0x35c   : > { %v1950_v3 = vsel %vm1943_vm7, %v1917_v42, %v1630_v31 }
 0x35d   : > { %v6169_v34 = vpop.permute.xlu0 %1637 }
 0x35f   : > { %4409 = vmatmul.msk.f32.gmra.mxu0 %vm1985_vm9, %v1948_v4  ;;  %v1861_v4 = vsel %vm1844_vm4, %v1828_v47, %v5828_v43  ;;  %v4518_v43 = vld [vmem:[#allocation2 + $0xc8] sm:$0xff] }
 0x360   : > { %v1894_v6 = vsel %vm1877_vm6, %v1861_v4, %v5899_v17  ;;  %v1730_v17 = vsel %vm311_vm0, %v4518_v43, %v8627_v53  ;;  %v1654_v42 = vpop.permute.xlu2 %1653 }
 0x361   : > { %v1927_v12 = vsel %vm1910_vm8, %v1894_v6, %v6057_v32  ;;  %v1753_v32 = vsel %vm1745_vm2, %v1720_v21, %v8629_v8  ;;  %v1763_v31 = vsel %vm1745_vm2, %v1730_v17, %v8630_v9  ;;  %v8637_v6 = vld [vmem:[#allocation94_spill] sm:$0xff]  ;;  %v1722_v21 = vsel %vm311_vm0, %v4522_v35, %v8642_v55  ;;  %v4523_v8 = vld [vmem:[#allocation2 + $0xe0] sm:$0xff] }
 0x362   : > { %v1786_v33 = vsel %vm1778_vm3, %v1753_v32, %v5500_v19  ;;  %v1796_v30 = vsel %vm1778_vm3, %v1763_v31, %v5576_v56  ;;  %v8643_v32 = vld [vmem:[#allocation62_spill] sm:$0xff]  ;;  %v8644_v31 = vld [vmem:[#allocation79_spill] sm:$0xff] }
 0x363   : > { %v6185_v28 = vpop.permute.xlu1 %1639  ;;  %v1819_v50 = vsel %vm1811_vm5, %v1786_v33, %v5674_v10  ;;  %v1732_v9 = vsel %vm311_vm0, %v4523_v8, %v8643_v32  ;;  %v1755_v33 = vsel %vm1745_vm2, %v1722_v21, %v8644_v31  ;;  %v8665_v21 = vld [vmem:[#allocation163_spill] sm:$0xff]  ;;  %v8666_v32 = vld [vmem:[#allocation176_spill] sm:$0xff]  ;;  %v8667_v31 = vld [vmem:[#allocation189_spill] sm:$0xff] }
 0x364   : > { %v1852_v40 = vsel %vm1844_vm4, %v1819_v50, %v5793_v61 }
 0x365   : > { %v6189_v14 = vpop.permute.xlu0 %1643  ;;  %v1885_v19 = vsel %vm1877_vm6, %v1852_v40, %v5872_v27  ;;  %v4521_v27 = vld [vmem:[#allocation2 + $0xd8] sm:$0xff]  ;;  %v8647_v40 = vld [vmem:[#allocation126_spill] sm:$0xff] }
 0x367   : > { %4410 = vmatmul.msk.f32.gmra.mxu0 %vm1985_vm9, %v1949_v49  ;;  %v1829_v49 = vsel %vm1811_vm5, %v1796_v30, %v5672_v29  ;;  %v1918_v29 = vsel %vm1910_vm8, %v1885_v19, %v6014_v44  ;;  %v8645_v30 = vld [vmem:[#allocation112_spill] sm:$0xff]  ;;  %v8648_v19 = vld [vmem:[#allocation145_spill] sm:$0xff] }
 0x368   : > { %v1862_v36 = vsel %vm1844_vm4, %v1829_v49, %v5838_v51  ;;  %v1951_v10 = vsel %vm1943_vm7, %v1918_v29, %v6147_v2  ;;  %v8631_v51 = vld [vmem:[#allocation37_spill] sm:$0xff]  ;;  %v8650_v29 = vld [vmem:[#allocation78_spill] sm:$0xff] }
 0x369   : > { %v1895_v56 = vsel %vm1877_vm6, %v1862_v36, %v5930_v37  ;;  %v1721_v52 = vsel %vm311_vm0, %v4520_v58, %v8631_v51  ;;  %v1731_v37 = vsel %vm311_vm0, %v4521_v27, %v8632_v5  ;;  %v8646_v49 = vld [vmem:[#allocation125_spill] sm:$0xff]  ;;  %v1788_v36 = vsel %vm1778_vm3, %v1755_v33, %v8647_v40  ;;  %v8653_v5 = vld [vmem:[#allocation167_spill] sm:$0xff]  ;;  %v4526_v40 = vld [vmem:[#allocation2 + $0x80] sm:$0xff] }
 0x36a   : > { %v1928_v54 = vsel %vm1910_vm8, %v1895_v56, %v6012_v26  ;;  %v8633_v26 = vld [vmem:[#allocation95_spill] sm:$0xff]  ;;  %v1754_v2 = vsel %vm1745_vm2, %v1721_v52, %v8634_v63  ;;  %v1821_v56 = vsel %vm1811_vm5, %v1788_v36, %v8648_v19  ;;  %v8652_v52 = vld [vmem:[#allocation166_spill] sm:$0xff] }
 0x36b   : > { %v6219_v7 = vpop.permute.xlu1 %1645  ;;  %v1764_v44 = vsel %vm1745_vm2, %v1731_v37, %v8633_v26  ;;  %v1787_v38 = vsel %vm1778_vm3, %v1754_v2, %v5540_v46  ;;  %v8639_v46 = vld [vmem:[#allocation175_spill] sm:$0xff]  ;;  %v8654_v26 = vld [vmem:[#allocation188_spill] sm:$0xff] }
 0x36c   : > { %v1797_v62 = vsel %vm1778_vm3, %v1764_v44, %v5588_v59  ;;  %v1820_v11 = vsel %vm1811_vm5, %v1787_v38, %v5636_v45  ;;  %v8640_v59 = vld [vmem:[#allocation184_spill] sm:$0xff]  ;;  %v8669_v36 = vld [vmem:[#allocation39_spill] sm:$0xff] }
 0x36d   : > { %v1650_v25 = vpop.permute.xlu0 %1649  ;;  %v1830_v47 = vsel %vm1811_vm5, %v1797_v62, %v8635_v60  ;;  %v1853_v41 = vsel %vm1844_vm4, %v1820_v11, %v8637_v6  ;;  %v8641_v45 = vld [vmem:[#allocation196_spill] sm:$0xff]  ;;  %v4524_v62 = vld [vmem:[#allocation2 + $0xf0] sm:$0xff]  ;;  %v8655_v11 = vld [vmem:[#allocation47_spill] sm:$0xff]  ;;  %v1724_v19 = vsel %vm311_vm0, %v4526_v40, %v8669_v36 }
 0x36e   : > { %v1960_v13 = vsel %vm1943_vm7, %v1927_v12, %v1650_v25  ;;  %v1863_v4 = vsel %vm1844_vm4, %v1830_v47, %v8636_v39  ;;  %v8638_v12 = vld [vmem:[#allocation165_spill] sm:$0xff]  ;;  %v1733_v60 = vsel %vm311_vm0, %v4524_v62, %v8655_v11  ;;  %v4525_v47 = vld [vmem:[#allocation2 + $0x78] sm:$0xff]  ;;  %v8656_v39 = vld [vmem:[#allocation48_spill] sm:$0xff]  ;;  %v1660_v11 = vpop.permute.xlu2 %1659 }
 0x36f   : > { %4411 = vmatmul.msk.f32.gmra.mxu0 %vm1985_vm9, %v1950_v3  ;;  %4421 = vmatmul.msk.f32.vlgmr.msra.gmra.mxu2 %vm1985_vm9, %v1960_v13  ;;  %v1886_v25 = vsel %vm1877_vm6, %v1853_v41, %v8638_v12  ;;  %v1896_v3 = vsel %vm1877_vm6, %v1863_v4, %v8639_v46  ;;  %v1723_v4 = vsel %vm311_vm0, %v4525_v47, %v8656_v39  ;;  %v8657_v6 = vld [vmem:[#allocation97_spill] sm:$0xff]  ;;  %v8658_v41 = vld [vmem:[#allocation115_spill] sm:$0xff]  ;;  %v8680_v39 = vld [vmem:[#allocation178_spill] sm:$0xff] }
 0x370   : > { %v1919_v13 = vsel %vm1910_vm8, %v1886_v25, %v8640_v59  ;;  %v1929_v43 = vsel %vm1910_vm8, %v1896_v3, %v8641_v45  ;;  %v8660_v25 = vld [vmem:[#allocation134_spill] sm:$0xff] }
 0x371   : > { %v1952_v53 = vsel %vm1943_vm7, %v1919_v13, %v6163_v1  ;;  %v1962_v17 = vsel %vm1943_vm7, %v1929_v43, %v1654_v42  ;;  %v1765_v1 = vsel %vm1745_vm2, %v1732_v9, %v8645_v30  ;;  %v8659_v42 = vld [vmem:[#allocation123_spill] sm:$0xff]  ;;  %v8661_v3 = vld [vmem:[#allocation146_spill] sm:$0xff] }
 0x372   : > { %v1798_v50 = vsel %vm1778_vm3, %v1765_v1, %v8646_v49  ;;  %v8662_v13 = vld [vmem:[#allocation147_spill] sm:$0xff]  ;;  %v8663_v43 = vld [vmem:[#allocation98_spill] sm:$0xff] }
 0x373   : > { %v1652_v0 = vpop.permute.xlu1 %1651  ;;  %v8668_v30 = vld [vmem:[#allocation190_spill] sm:$0xff] }
 0x374   : > { %v1961_v61 = vsel %vm1943_vm7, %v1928_v54, %v1652_v0  ;;  %v8649_v0 = vld [vmem:[#allocation60_spill] sm:$0xff]  ;;  %v8693_v36 = vld [vmem:[#allocation170_spill] sm:$0xff] }
 0x375   : > { %v1831_v54 = vsel %vm1811_vm5, %v1798_v50, %v8649_v0  ;;  %v1656_v51 = vpop.permute.xlu0 %1655  ;;  %v8670_v0 = vld [vmem:[#allocation63_spill] sm:$0xff] }
 0x377   : > { %4412 = vmatmul.msk.f32.gmra.mxu0 %vm1985_vm9, %v1951_v10  ;;  %4422 = vmatmul.msk.f32.gmra.mxu2 %vm1985_vm9, %v1961_v61  ;;  %v1854_v10 = vsel %vm1844_vm4, %v1821_v56, %v8650_v29  ;;  %v8651_v61 = vld [vmem:[#allocation153_spill] sm:$0xff]  ;;  %v4527_v56 = vld [vmem:[#allocation2 + $0xf8] sm:$0xff]  ;;  %v8671_v29 = vld [vmem:[#allocation100_spill] sm:$0xff] }
 0x378   : > { %v1864_v58 = vsel %vm1844_vm4, %v1831_v54, %v8651_v61  ;;  %v1887_v37 = vsel %vm1877_vm6, %v1854_v10, %v8653_v5  ;;  %v1734_v54 = vsel %vm311_vm0, %v4527_v56, %v8670_v0  ;;  %v8672_v61 = vld [vmem:[#allocation101_spill] sm:$0xff]  ;;  %v8675_v5 = vld [vmem:[#allocation143_spill] sm:$0xff] }
 0x379   : > { %v1897_v27 = vsel %vm1877_vm6, %v1864_v58, %v8652_v52  ;;  %v1920_v44 = vsel %vm1910_vm8, %v1887_v37, %v8654_v26  ;;  %v1767_v10 = vsel %vm1745_vm2, %v1734_v54, %v8671_v29  ;;  %v8673_v58 = vld [vmem:[#allocation127_spill] sm:$0xff]  ;;  %v8674_v52 = vld [vmem:[#allocation136_spill] sm:$0xff] }
 0x37a   : > { %v1930_v63 = vsel %vm1910_vm8, %v1897_v27, %v6067_v22  ;;  %v1953_v2 = vsel %vm1943_vm7, %v1920_v44, %v6167_v57  ;;  %v1756_v22 = vsel %vm1745_vm2, %v1723_v4, %v8657_v6  ;;  %v1766_v57 = vsel %vm1745_vm2, %v1733_v60, %v8658_v41  ;;  %v8676_v26 = vld [vmem:[#allocation151_spill] sm:$0xff]  ;;  %v8679_v60 = vld [vmem:[#allocation168_spill] sm:$0xff]  ;;  %v8681_v6 = vld [vmem:[#allocation186_spill] sm:$0xff] }
 0x37b   : > { %v1963_v38 = vsel %vm1943_vm7, %v1930_v63, %v1656_v51  ;;  %v1789_v12 = vsel %vm1778_vm3, %v1756_v22, %v8659_v42  ;;  %v1799_v46 = vsel %vm1778_vm3, %v1766_v57, %v8660_v25  ;;  %v1658_v55 = vpop.permute.xlu1 %1657  ;;  %v1800_v27 = vsel %vm1778_vm3, %v1767_v10, %v8674_v52  ;;  %v8677_v63 = vld [vmem:[#allocation104_spill] sm:$0xff]  ;;  %v8682_v25 = vld [vmem:[#allocation49_spill] sm:$0xff]  ;;  %v8694_v56 = vld [vmem:[#allocation191_spill] sm:$0xff] }
 0x37c   : > { %v1832_v59 = vsel %vm1811_vm5, %v1799_v46, %v8661_v3  ;;  %v1822_v45 = vsel %vm1811_vm5, %v1789_v12, %v8662_v13  ;;  %v1833_v44 = vsel %vm1811_vm5, %v1800_v27, %v8676_v26  ;;  %v4528_v12 = vld [vmem:[#allocation2 + $0x90] sm:$0xff]  ;;  %v4529_v3 = vld [vmem:[#allocation2 + $0x108] sm:$0xff]  ;;  %v8696_v52 = vld [vmem:[#allocation51_spill] sm:$0xff] }
 0x37d   : > { %v1725_v46 = vsel %vm311_vm0, %v4528_v12, %v8682_v25  ;;  %v8699_v26 = vld [vmem:[#allocation124_spill] sm:$0xff] }
 0x37e   : > { %v8707_v25 = vld [vmem:[#allocation192_spill] sm:$0xff] }
 0x37f   : > { %4413 = vmatmul.msk.f32.gmra.mxu0 %vm1985_vm9, %v1952_v53  ;;  %4423 = vmatmul.msk.f32.gmra.mxu2 %vm1985_vm9, %v1962_v17  ;;  %v1855_v53 = vsel %vm1844_vm4, %v1822_v45, %v8663_v43  ;;  %v8664_v17 = vld [vmem:[#allocation155_spill] sm:$0xff]  ;;  %v8684_v45 = vld [vmem:[#allocation84_spill] sm:$0xff] }
 0x380   : > { %v1865_v35 = vsel %vm1844_vm4, %v1832_v59, %v8664_v17  ;;  %v1888_v8 = vsel %vm1877_vm6, %v1855_v53, %v8665_v21  ;;  %v8683_v59 = vld [vmem:[#allocation65_spill] sm:$0xff]  ;;  %v8685_v43 = vld [vmem:[#allocation116_spill] sm:$0xff] }
 0x381   : > { %v1898_v9 = vsel %vm1877_vm6, %v1865_v35, %v8666_v32  ;;  %v1921_v1 = vsel %vm1910_vm8, %v1888_v8, %v8668_v30  ;;  %v1735_v13 = vsel %vm311_vm0, %v4529_v3, %v8683_v59  ;;  %v8686_v53 = vld [vmem:[#allocation128_spill] sm:$0xff]  ;;  %v8687_v35 = vld [vmem:[#allocation129_spill] sm:$0xff]  ;;  %v8689_v32 = vld [vmem:[#allocation67_spill] sm:$0xff] }
 0x382   : > { %v1931_v33 = vsel %vm1910_vm8, %v1898_v9, %v8667_v31  ;;  %v1954_v49 = vsel %vm1943_vm7, %v1921_v1, %v6169_v34  ;;  %v1757_v34 = vsel %vm1745_vm2, %v1724_v19, %v8672_v61  ;;  %v8688_v21 = vld [vmem:[#allocation148_spill] sm:$0xff]  ;;  %v8690_v31 = vld [vmem:[#allocation83_spill] sm:$0xff]  ;;  %v4530_v61 = vld [vmem:[#allocation2 + $0x110] sm:$0xff] }
 0x383   : > { %v1964_v50 = vsel %vm1943_vm7, %v1931_v33, %v1658_v55  ;;  %v1790_v51 = vsel %vm1778_vm3, %v1757_v34, %v8673_v58  ;;  %v8691_v30 = vld [vmem:[#allocation156_spill] sm:$0xff]  ;;  %v8695_v34 = vld [vmem:[#allocation50_spill] sm:$0xff]  ;;  %v8708_v3 = vld [vmem:[#allocation193_spill] sm:$0xff] }
 0x384   : > { %v1823_v37 = vsel %vm1811_vm5, %v1790_v51, %v8675_v5  ;;  %v1736_v58 = vsel %vm311_vm0, %v4530_v61, %v8695_v34  ;;  %v4531_v51 = vld [vmem:[#allocation2 + $0x98] sm:$0xff]  ;;  %v8697_v5 = vld [vmem:[#allocation102_spill] sm:$0xff] }
 0x385   : > { %v1726_v27 = vsel %vm311_vm0, %v4531_v51, %v8696_v52  ;;  %v2418_v34 = vld [vmem:[#allocation3 + $0x1] sm:$0xff]  ;;  %v8720_v52 = vld [vmem:[#allocation180_spill] sm:$0xff] }
 0x386   : > { %2707 = vrot.lane.b32.xlu1 %v2418_v34, %s4564_s26 }
 0x387   : > { %4414 = vmatmul.msk.f32.gmra.mxu0 %vm1985_vm9, %v1953_v2  ;;  %4424 = vmatmul.msk.f32.gmra.mxu2 %vm1985_vm9, %v1963_v38  ;;  %v1866_v2 = vsel %vm1844_vm4, %v1833_v44, %v8677_v63  ;;  %v8678_v38 = vld [vmem:[#allocation99_spill] sm:$0xff]  ;;  %v8700_v63 = vld [vmem:[#allocation137_spill] sm:$0xff] }
 0x388   : > { %v1856_v62 = vsel %vm1844_vm4, %v1823_v37, %v8678_v38  ;;  %v1899_v4 = vsel %vm1877_vm6, %v1866_v2, %v8680_v39  ;;  %v8698_v37 = vld [vmem:[#allocation117_spill] sm:$0xff] }
 0x389   : > { %v1889_v47 = vsel %vm1877_vm6, %v1856_v62, %v8679_v60  ;;  %v1932_v41 = vsel %vm1910_vm8, %v1899_v4, %v6071_v23  ;;  %v1758_v23 = vsel %vm1745_vm2, %v1725_v46, %v8684_v45  ;;  %v8701_v38 = vld [vmem:[#allocation53_spill] sm:$0xff] }
 0x38a   : > { %v1922_v22 = vsel %vm1910_vm8, %v1889_v47, %v8681_v6  ;;  %v1965_v42 = vsel %vm1943_vm7, %v1932_v41, %v1660_v11  ;;  %v1791_v55 = vsel %vm1778_vm3, %v1758_v23, %v8687_v35  ;;  %v8702_v11 = vld [vmem:[#allocation149_spill] sm:$0xff]  ;;  %v8703_v47 = vld [vmem:[#allocation103_spill] sm:$0xff]  ;;  %v8705_v41 = vld [vmem:[#allocation164_spill] sm:$0xff] }
 0x38b   : > { %v1955_v57 = vsel %vm1943_vm7, %v1922_v22, %v6185_v28  ;;  %v1768_v28 = vsel %vm1745_vm2, %v1735_v13, %v8685_v43  ;;  %v1824_v8 = vsel %vm1811_vm5, %v1791_v55, %v8688_v21  ;;  %v8704_v4 = vld [vmem:[#allocation157_spill] sm:$0xff]  ;;  %v1664_v22 = vpop.permute.xlu1 %1663  ;;  %v6469_v55 = vld [vmem:[%s8280_s2] ss:$0 sm:$0xff] }
 0x38c   : > { %v1801_v17 = vsel %vm1778_vm3, %v1768_v28, %v8686_v53  ;;  %v1857_v33 = vsel %vm1844_vm4, %v1824_v8, %v8690_v31  ;;  %v4532_v23 = vld [vmem:[#allocation2 + $0xa8] sm:$0xff]  ;;  %v4533_v53 = vld [vmem:[#allocation2 + $0x120] sm:$0xff]  ;;  %v8712_v8 = vld [vmem:[#allocation107_spill] sm:$0xff] }
 0x38d   : > { %v1834_v9 = vsel %vm1811_vm5, %v1801_v17, %v8689_v32  ;;  %v1890_v19 = vsel %vm1877_vm6, %v1857_v33, %v8693_v36  ;;  %v8709_v43 = vld [vmem:[#allocation41_spill] sm:$0xff]  ;;  %v8710_v17 = vld [vmem:[#allocation66_spill] sm:$0xff] }
 0x38e   : > { %v1867_v1 = vsel %vm1844_vm4, %v1834_v9, %v8691_v30  ;;  %v1923_v0 = vsel %vm1910_vm8, %v1890_v19, %v8694_v56  ;;  %v1727_v28 = vsel %vm311_vm0, %v4532_v23, %v8709_v43  ;;  %v1737_v35 = vsel %vm311_vm0, %v4533_v53, %v8710_v17  ;;  %v8713_v9 = vld [vmem:[#allocation130_spill] sm:$0xff]  ;;  %v8717_v56 = vld [vmem:[#allocation105_spill] sm:$0xff]  ;;  %v2419_v43 = vld [vmem:[#allocation3 + $0x9] sm:$0xff] }
 0x38f   : > { %4415 = vmatmul.msk.f32.gmra.mxu0 %vm1985_vm9, %v1954_v49  ;;  %4425 = vmatmul.msk.f32.gmra.mxu2 %vm1985_vm9, %v1964_v50  ;;  %v1662_v49 = vpop.permute.xlu0 %1661  ;;  %v8692_v50 = vld [vmem:[#allocation169_spill] sm:$0xff]  ;;  %v1956_v29 = vsel %vm1943_vm7, %v1923_v0, %v6196_v15  ;;  %v1769_v15 = vsel %vm1745_vm2, %v1736_v58, %v8698_v37  ;;  %v1760_v32 = vsel %vm1745_vm2, %v1727_v28, %v8712_v8  ;;  %v8714_v33 = vld [vmem:[#allocation138_spill] sm:$0xff]  ;;  %v8719_v58 = vld [vmem:[#allocation171_spill] sm:$0xff] }
 0x390   : > { %v1900_v40 = vsel %vm1877_vm6, %v1867_v1, %v8692_v50  ;;  %v1802_v2 = vsel %vm1778_vm3, %v1769_v15, %v8700_v63  ;;  %v1793_v31 = vsel %vm1778_vm3, %v1760_v32, %v8713_v9  ;;  %v6482_v1 = vld [vmem:[%s8281_s3] ss:$0 sm:$0xff]  ;;  %v4534_v63 = vld [vmem:[#allocation2 + $0xb0] sm:$0xff]  ;;  %v8733_v17 = vld [vmem:[#allocation173_spill] sm:$0xff]  ;;  %2709 = vrot.lane.b32.xlu2 %v2419_v43, %s4564_s26 }
 0x391   : > { %v1933_v54 = vsel %vm1910_vm8, %v1900_v40, %v6085_v24  ;;  %v1759_v24 = vsel %vm1745_vm2, %v1726_v27, %v8697_v5  ;;  %v1835_v62 = vsel %vm1811_vm5, %v1802_v2, %v8701_v38  ;;  %v8716_v40 = vld [vmem:[#allocation152_spill] sm:$0xff]  ;;  %v8721_v5 = vld [vmem:[#allocation187_spill] sm:$0xff]  ;;  %v8754_v43 = vld [vmem:[#allocation174_spill] sm:$0xff] }
 0x392   : > { %v1966_v10 = vsel %vm1943_vm7, %v1933_v54, %v1662_v49  ;;  %v1792_v44 = vsel %vm1778_vm3, %v1759_v24, %v8699_v26  ;;  %v1868_v6 = vsel %vm1844_vm4, %v1835_v62, %v8704_v4  ;;  %v8715_v49 = vld [vmem:[#allocation144_spill] sm:$0xff]  ;;  %v8718_v54 = vld [vmem:[#allocation109_spill] sm:$0xff]  ;;  %v8725_v4 = vld [vmem:[#allocation118_spill] sm:$0xff] }
 0x393   : > { %v1825_v60 = vsel %vm1811_vm5, %v1792_v44, %v8702_v11  ;;  %v1826_v50 = vsel %vm1811_vm5, %v1793_v31, %v8715_v49  ;;  %v8722_v2 = vld [vmem:[#allocation52_spill] sm:$0xff]  ;;  %v4535_v62 = vld [vmem:[#allocation2 + $0x128] sm:$0xff]  ;;  %v8723_v11 = vld [vmem:[#allocation70_spill] sm:$0xff] }
 0x394   : > { %v1858_v39 = vsel %vm1844_vm4, %v1825_v60, %v8703_v47  ;;  %v1728_v38 = vsel %vm311_vm0, %v4534_v63, %v8722_v2  ;;  %v1738_v60 = vsel %vm311_vm0, %v4535_v62, %v8723_v11  ;;  %v8732_v28 = vld [vmem:[#allocation172_spill] sm:$0xff]  ;;  %v4536_v31 = vld [vmem:[#allocation2 + $0x138] sm:$0xff]  ;;  %v8746_v63 = vld [vmem:[#allocation113_spill] sm:$0xff] }
 0x395   : > { %v8736_v49 = vld [vmem:[#allocation119_spill] sm:$0xff]  ;;  %v8747_v62 = vld [vmem:[#allocation182_spill] sm:$0xff] }
 0x397   : > { %4416 = vmatmul.msk.f32.gmra.mxu0 %vm1985_vm9, %v1955_v57  ;;  %4426 = vmatmul.msk.f32.gmra.mxu2 %vm1985_vm9, %v1965_v42  ;;  %v1891_v57 = vsel %vm1877_vm6, %v1858_v39, %v8705_v41  ;;  %v8706_v42 = vld [vmem:[#allocation179_spill] sm:$0xff]  ;;  %v8727_v41 = vld [vmem:[#allocation132_spill] sm:$0xff]  ;;  %v1668_v23 = vpop.permute.xlu0 %1667 }
 0x398   : > { %v1901_v12 = vsel %vm1877_vm6, %v1868_v6, %v8706_v42  ;;  %v1924_v59 = vsel %vm1910_vm8, %v1891_v57, %v8708_v3  ;;  %v8726_v6 = vld [vmem:[#allocation131_spill] sm:$0xff]  ;;  %v8728_v42 = vld [vmem:[#allocation150_spill] sm:$0xff] }
 0x399   : > { %v1934_v46 = vsel %vm1910_vm8, %v1901_v12, %v8707_v25  ;;  %v1957_v13 = vsel %vm1943_vm7, %v1924_v59, %v6189_v14  ;;  %v8711_v14 = vld [vmem:[#allocation106_spill] sm:$0xff]  ;;  %v8729_v25 = vld [vmem:[#allocation68_spill] sm:$0xff]  ;;  %v8730_v3 = vld [vmem:[#allocation87_spill] sm:$0xff] }
 0x39a   : > { %v1967_v45 = vsel %vm1943_vm7, %v1934_v46, %v1664_v22  ;;  %v1770_v21 = vsel %vm1745_vm2, %v1737_v35, %v8711_v14  ;;  %v8734_v14 = vld [vmem:[#allocation194_spill] sm:$0xff] }
 0x39b   : > { %v1803_v30 = vsel %vm1778_vm3, %v1770_v21, %v8714_v33  ;;  %v8735_v33 = vld [vmem:[#allocation55_spill] sm:$0xff] }
 0x39c   : > { %v1836_v36 = vsel %vm1811_vm5, %v1803_v30, %v8716_v40  ;;  %v1739_v30 = vsel %vm311_vm0, %v4536_v31, %v8735_v33  ;;  %v8757_v33 = vld [vmem:[#allocation121_spill] sm:$0xff] }
 0x39d   : > { %v1869_v0 = vsel %vm1844_vm4, %v1836_v36, %v8717_v56  ;;  %v8737_v36 = vld [vmem:[#allocation139_spill] sm:$0xff] }
 0x39e   : > { %v1902_v27 = vsel %vm1877_vm6, %v1869_v0, %v8720_v52  ;;  %v8739_v56 = vld [vmem:[#allocation159_spill] sm:$0xff] }
 0x39f   : > { %4417 = vmatmul.msk.f32.gmra.mxu0 %vm1985_vm9, %v1956_v29  ;;  %4427 = vmatmul.msk.f32.gmra.mxu2 %vm1985_vm9, %v1966_v10  ;;  %v1859_v29 = vsel %vm1844_vm4, %v1826_v50, %v8718_v54  ;;  %v1666_v10 = vpop.permute.xlu2 %1665  ;;  %v1935_v37 = vsel %vm1910_vm8, %v1902_v27, %v6088_v48  ;;  %v8724_v48 = vld [vmem:[#allocation90_spill] sm:$0xff]  ;;  %v1772_v50 = vsel %vm1745_vm2, %v1739_v30, %v8736_v49  ;;  %v1670_v54 = vpop.permute.xlu1 %1669  ;;  %v8742_v52 = vld [vmem:[#allocation71_spill] sm:$0xff]  ;;  %v8758_v49 = vld [vmem:[#allocation141_spill] sm:$0xff] }
 0x3a0   : > { %v1892_v51 = vsel %vm1877_vm6, %v1859_v29, %v8719_v58  ;;  %v1968_v44 = vsel %vm1943_vm7, %v1935_v37, %v1666_v10  ;;  %v1761_v39 = vsel %vm1745_vm2, %v1728_v38, %v8724_v48  ;;  %v8740_v29 = vld [vmem:[#allocation181_spill] sm:$0xff]  ;;  %v8744_v37 = vld [vmem:[#allocation140_spill] sm:$0xff] }
 0x3a1   : > { %v1925_v24 = vsel %vm1910_vm8, %v1892_v51, %v8721_v5  ;;  %v1794_v57 = vsel %vm1778_vm3, %v1761_v39, %v8727_v41  ;;  %v4537_v51 = vld [vmem:[#allocation2 + $0x140] sm:$0xff]  ;;  %v8743_v5 = vld [vmem:[#allocation110_spill] sm:$0xff] }
 0x3a2   : > { %v1958_v26 = vsel %vm1943_vm7, %v1925_v24, %v6219_v7  ;;  %v1771_v7 = vsel %vm1745_vm2, %v1738_v60, %v8725_v4  ;;  %v1827_v12 = vsel %vm1811_vm5, %v1794_v57, %v8728_v42  ;;  %v1740_v27 = vsel %vm311_vm0, %v4537_v51, %v8742_v52  ;;  %v8750_v57 = vld [vmem:[#allocation120_spill] sm:$0xff] }
 0x3a3   : > { %v1804_v22 = vsel %vm1778_vm3, %v1771_v7, %v8726_v6  ;;  %v1860_v59 = vsel %vm1844_vm4, %v1827_v12, %v8730_v3  ;;  %v1773_v24 = vsel %vm1745_vm2, %v1740_v27, %v8743_v5  ;;  %v4538_v7 = vld [vmem:[#allocation2 + $0x150] sm:$0xff]  ;;  %v8749_v6 = vld [vmem:[#allocation75_spill] sm:$0xff]  ;;  %v8751_v12 = vld [vmem:[#allocation133_spill] sm:$0xff] }
 0x3a4   : > { %v1837_v46 = vsel %vm1811_vm5, %v1804_v22, %v8729_v25  ;;  %v1893_v35 = vsel %vm1877_vm6, %v1860_v59, %v8733_v17  ;;  %v1741_v22 = vsel %vm311_vm0, %v4538_v7, %v8749_v6  ;;  %v8752_v3 = vld [vmem:[#allocation73_spill] sm:$0xff]  ;;  %v8755_v17 = vld [vmem:[#allocation64_spill] sm:$0xff]  ;;  %v8769_v6 = vld [vmem:[#allocation198_spill] sm:$0xff] }
 0x3a5   : > { %v1926_v21 = vsel %vm1910_vm8, %v1893_v35, %v8734_v14  ;;  %v1774_v42 = vsel %vm1745_vm2, %v1741_v22, %v8750_v57  ;;  %v4540_v27 = vld [vmem:[#allocation2 + $0x168] sm:$0xff]  ;;  %v8763_v5 = vld [vmem:[#allocation76_spill] sm:$0xff] }
 0x3a6   : > { %v1959_v32 = vsel %vm1943_vm7, %v1926_v21, %v6241_v18  ;;  %v8738_v18 = vld [vmem:[#allocation59_spill] sm:$0xff]  ;;  %v1807_v25 = vsel %vm1778_vm3, %v1774_v42, %v8751_v12  ;;  %v4541_v42 = vld [vmem:[#allocation2 + $0x170] sm:$0xff]  ;;  %v8770_v12 = vld [vmem:[#allocation80_spill] sm:$0xff] }
 0x3a7   : > { %4418 = vmatmul.msk.f32.gmra.mxu0 %vm1985_vm9, %v1957_v13  ;;  %4428 = vmatmul.msk.f32.gmra.mxu2 %vm1985_vm9, %v1967_v45  ;;  %v8731_v13 = vld [vmem:[#allocation158_spill] sm:$0xff]  ;;  %v1672_v38 = vpop.permute.xlu2 %1671  ;;  %v1840_v59 = vsel %vm1811_vm5, %v1807_v25, %v8752_v3  ;;  %v1744_v25 = vsel %vm311_vm0, %v4541_v42, %v8770_v12 }
 0x3a8   : > { %v2099_v19 = vpop.f32.mrf.mxu0  ;;  %v1870_v45 = vsel %vm1844_vm4, %v1837_v46, %v8731_v13  ;;  %v8753_v13 = vld [vmem:[#allocation160_spill] sm:$0xff]  ;;  %v8771_v3 = vld [vmem:[#allocation122_spill] sm:$0xff] }
 0x3a9   : > { %v2199_v61 = vmul.f32 %v6469_v55, %v2099_v19  ;;  %v1903_v53 = vsel %vm1877_vm6, %v1870_v45, %v8732_v28  ;;  %v1873_v45 = vsel %vm1844_vm4, %v1840_v59, %v8753_v13  ;;  %v1777_v59 = vsel %vm1745_vm2, %v1744_v25, %v8771_v3  ;;  %v8772_v13 = vld [vmem:[#allocation135_spill] sm:$0xff] }
 0x3aa   : > { %v1936_v8 = vsel %vm1910_vm8, %v1903_v53, %v6091_v16  ;;  %v1805_v16 = vsel %vm1778_vm3, %v1772_v50, %v8737_v36  ;;  %v1906_v28 = vsel %vm1877_vm6, %v1873_v45, %v8754_v43  ;;  %v1810_v45 = vsel %vm1778_vm3, %v1777_v59, %v8772_v13  ;;  %v8773_v43 = vld [vmem:[#allocation82_spill] sm:$0xff] }
 0x3ab   : > { %v2235_v15 = vadd.f32 %v6482_v1, %v2199_v61  ;;  %v1969_v9 = vsel %vm1943_vm7, %v1936_v8, %v1668_v23  ;;  %v1838_v19 = vsel %vm1811_vm5, %v1805_v16, %v8738_v18  ;;  %v8741_v61 = vld [vmem:[#allocation195_spill] sm:$0xff]  ;;  %v1674_v23 = vpop.permute.xlu0 %1673  ;;  %v1939_v35 = vsel %vm1910_vm8, %v1906_v28, %v8755_v17  ;;  %v8759_v16 = vld [vmem:[#allocation58_spill] sm:$0xff] }
 0x3ac   : > { %v1871_v0 = vsel %vm1844_vm4, %v1838_v19, %v8739_v56  ;;  %v1972_v21 = vsel %vm1943_vm7, %v1939_v35, %v1674_v23  ;;  %v4539_v8 = vld [vmem:[#allocation2 + $0x158] sm:$0xff]  ;;  %v8760_v56 = vld [vmem:[#allocation161_spill] sm:$0xff]  ;;  %v1843_v28 = vsel %vm1811_vm5, %v1810_v45, %v8773_v43  ;;  %v8774_v17 = vld [vmem:[#allocation162_spill] sm:$0xff] }
 0x3ad   : > { %v2267_v47 = vmax.f32 %v2235_v15, 0.0  ;;  %v1904_v10 = vsel %vm1877_vm6, %v1871_v0, %v8740_v29  ;;  %v1806_v15 = vsel %vm1778_vm3, %v1773_v24, %v8744_v37  ;;  %v8761_v29 = vld [vmem:[#allocation183_spill] sm:$0xff]  ;;  %v1743_v24 = vsel %vm311_vm0, %v4540_v27, %v8763_v5 }
 0x3ae   : > { %v1937_v34 = vsel %vm1910_vm8, %v1904_v10, %v8741_v61  ;;  %v1876_v35 = vsel %vm1844_vm4, %v1843_v28, %v8774_v17 }
 0x3af   : > { %4419 = vmatmul.msk.f32.gmra.mxu0 %vm1985_vm9, %v1958_v26  ;;  %4429 = vmatmul.msk.f32.gmra.mxu2 %vm1985_vm9, %v1968_v44  ;;  %2354 = vst.msk [vmem:[#allocation3 + $0x19] sm:$0xff] %vm311_vm0, %v2267_v47  ;;  %v1970_v58 = vsel %vm1943_vm7, %v1937_v34, %v1670_v54  ;;  %v8745_v26 = vld [vmem:[#allocation72_spill] sm:$0xff]  ;;  %v1676_v54 = vpop.permute.xlu1 %1675  ;;  %v8762_v34 = vld [vmem:[#allocation197_spill] sm:$0xff] }
 0x3b0   : > { %v1839_v44 = vsel %vm1811_vm5, %v1806_v15, %v8745_v26  ;;  %v8748_v47 = vld [vmem:[#allocation36_spill] sm:$0xff]  ;;  %v8764_v15 = vld [vmem:[#allocation114_spill] sm:$0xff] }
 0x3b1   : > { %v1872_v2 = vsel %vm1844_vm4, %v1839_v44, %v8746_v63  ;;  %v1776_v26 = vsel %vm1745_vm2, %v1743_v24, %v8764_v15  ;;  %v8765_v44 = vld [vmem:[#allocation142_spill] sm:$0xff] }
 0x3b2   : > { %v1905_v11 = vsel %vm1877_vm6, %v1872_v2, %v8747_v62  ;;  %v1809_v63 = vsel %vm1778_vm3, %v1776_v26, %v8765_v44 }
 0x3b3   : > { %v1938_v48 = vsel %vm1910_vm8, %v1905_v11, %v8748_v47 }
 0x3b4   : > { %v1971_v4 = vsel %vm1943_vm7, %v1938_v48, %v1672_v38  ;;  %v8766_v38 = vld [vmem:[#allocation77_spill] sm:$0xff]  ;;  %v1678_v48 = vpop.permute.xlu2 %1677 }
 0x3b5   : > { %v1842_v62 = vsel %vm1811_vm5, %v1809_v63, %v8766_v38 }
 0x3b6   : > { %v6547_v40 = vld [vmem:[#allocation3 + $0x19] sm:$0xff] }
 0x3b7   : > { %4420 = vmatmul.msk.f32.gmra.mxu0 %vm1985_vm9, %v1959_v32  ;;  %4430 = vmatmul.msk.f32.gmra.mxu2 %vm1985_vm9, %v1969_v9  ;;  %v8756_v32 = vld [vmem:[#allocation61_spill] sm:$0xff] }
 0x3b8   : > { %2711 = vrot.lane.b32.xlu0 %v6547_v40, %s4564_s26  ;;  %v1742_v9 = vsel %vm311_vm0, %v4539_v8, %v8756_v32 }
 0x3b9   : > { %v1775_v30 = vsel %vm1745_vm2, %v1742_v9, %v8757_v33 }
 0x3ba   : > { %v1808_v50 = vsel %vm1778_vm3, %v1775_v30, %v8758_v49 }
 0x3bb   : > { %v1841_v18 = vsel %vm1811_vm5, %v1808_v50, %v8759_v16 }
 0x3bc   : > { %v1874_v0 = vsel %vm1844_vm4, %v1841_v18, %v8760_v56 }
 0x3bd   : > { %v1907_v10 = vsel %vm1877_vm6, %v1874_v0, %v8761_v29 }
 0x3bf   : > { %4431 = vmatmul.msk.f32.gmra.mxu2 %vm1985_vm9, %v1970_v58  ;;  %v1940_v58 = vsel %vm1910_vm8, %v1907_v10, %v8762_v34 }
 0x3c0   : > { %v1973_v52 = vsel %vm1943_vm7, %v1940_v58, %v1676_v54 }
 0x3c4   : > { %v2102_v60 = vpop.f32.mrf.mxu0 }
 0x3c5   : > { %v2200_v39 = vmul.f32 %v6469_v55, %v2102_v60  ;;  %v8767_v60 = vld [vmem:[#allocation154_spill] sm:$0xff] }
 0x3c6   : > { %v1875_v47 = vsel %vm1844_vm4, %v1842_v62, %v8767_v60 }
 0x3c7   : > { %v2236_v41 = vadd.f32 %v6482_v1, %v2200_v39  ;;  %4432 = vmatmul.msk.f32.gmra.mxu2 %vm1985_vm9, %v1971_v4  ;;  %v8768_v39 = vld [vmem:[#allocation185_spill] sm:$0xff] }
 0x3c8   : > { %v1908_v4 = vsel %vm1877_vm6, %v1875_v47, %v8768_v39 }
 0x3c9   : > { %v2268_v46 = vmax.f32 %v2236_v41, 0.0  ;;  %v1941_v22 = vsel %vm1910_vm8, %v1908_v4, %v8769_v6 }
 0x3ca   : > { %v1974_v57 = vsel %vm1943_vm7, %v1941_v22, %v1678_v48 }
 0x3cb   : > { %2355 = vst.msk [vmem:[#allocation3 + $0x21] sm:$0xff] %vm311_vm0, %v2268_v46 }
 0x3cc   : > { %v2105_v53 = vpop.f32.mrf.mxu0 }
 0x3cd   : > { %v2201_v14 = vmul.f32 %v6469_v55, %v2105_v53 }
 0x3cf   : > { %v2237_v31 = vadd.f32 %v6482_v1, %v2201_v14  ;;  %4433 = vmatmul.msk.f32.gmra.mxu2 %vm1985_vm9, %v1972_v21  ;;  %v1680_v14 = vpop.permute.xlu0 %1679  ;;  %v8775_v21 = vld [vmem:[#allocation177_spill] sm:$0xff] }
 0x3d0   : > { %v1909_v8 = vsel %vm1877_vm6, %v1876_v35, %v8775_v21 }
 0x3d1   : > { %v2269_v36 = vmax.f32 %v2237_v31, 0.0  ;;  %v1942_v9 = vsel %vm1910_vm8, %v1909_v8, %v6111_v20 }
 0x3d2   : > { %v6608_v19 = vld [vmem:[#allocation3 + $0x21] sm:$0xff]  ;;  %v1975_v33 = vsel %vm1943_vm7, %v1942_v9, %v1680_v14 }
 0x3d3   : > { %2356 = vst.msk [vmem:[#allocation3 + $0x31] sm:$0xff] %vm311_vm0, %v2269_v36  ;;  %2713 = vrot.lane.b32.xlu1 %v6608_v19, %s4564_s26 }
 0x3d4   : > { %v2108_v61 = vpop.f32.mrf.mxu0 }
 0x3d5   : > { %v2202_v51 = vmul.f32 %v6469_v55, %v2108_v61 }
 0x3d7   : > { %v2238_v37 = vadd.f32 %v6482_v1, %v2202_v51  ;;  %4434 = vmatmul.msk.f32.gmra.mxu2 %vm1985_vm9, %v1973_v52 }
 0x3d9   : > { %v2270_v2 = vmax.f32 %v2238_v37, 0.0 }
 0x3da   : > { %v6631_v11 = vld [vmem:[#allocation3 + $0x31] sm:$0xff] }
 0x3db   : > { %2357 = vst.msk [vmem:[#allocation3 + $0x39] sm:$0xff] %vm311_vm0, %v2270_v2  ;;  %2715 = vrot.lane.b32.xlu2 %v6631_v11, %s4564_s26 }
 0x3dc   : > { %v2111_v7 = vpop.f32.mrf.mxu0 }
 0x3dd   : > { %v2203_v41 = vmul.f32 %v6469_v55, %v2111_v7 }
 0x3df   : > { %v2239_v46 = vadd.f32 %v6482_v1, %v2203_v41  ;;  %4435 = vmatmul.msk.f32.gmra.mxu2 %vm1985_vm9, %v1974_v57 }
 0x3e1   : > { %v2271_v23 = vmax.f32 %v2239_v46, 0.0 }
 0x3e2   : > { %v6654_v53 = vld [vmem:[#allocation3 + $0x39] sm:$0xff] }
 0x3e3   : > { %2358 = vst.msk [vmem:[#allocation3 + $0x49] sm:$0xff] %vm311_vm0, %v2271_v23  ;;  %2717 = vrot.lane.b32.xlu0 %v6654_v53, %s4564_s26 }
 0x3e4   : > { %v2114_v32 = vpop.f32.mrf.mxu0 }
 0x3e5   : > { %v2204_v31 = vmul.f32 %v6469_v55, %v2114_v32 }
 0x3e7   : > { %v2240_v30 = vadd.f32 %v6482_v1, %v2204_v31  ;;  %4436 = vmatmul.msk.f32.gmra.mxu2 %vm1985_vm9, %v1975_v33 }
 0x3e9   : > { %v2272_v49 = vmax.f32 %v2240_v30, 0.0 }
 0x3ea   : > { %v6669_v50 = vld [vmem:[#allocation3 + $0x49] sm:$0xff] }
 0x3eb   : > { %2359 = vst.msk [vmem:[#allocation3 + $0x51] sm:$0xff] %vm311_vm0, %v2272_v49  ;;  %2719 = vrot.lane.b32.xlu1 %v6669_v50, %s4564_s26 }
 0x3ec   : > { %v2117_v36 = vpop.f32.mrf.mxu0 }
 0x3ed   : > { %v2205_v16 = vmul.f32 %v6469_v55, %v2117_v36 }
 0x3ef   : > { %v2241_v20 = vadd.f32 %v6482_v1, %v2205_v16 }
 0x3f1   : > { %v2273_v18 = vmax.f32 %v2241_v20, 0.0 }
 0x3f2   : > { %v2147_v56 = vpop.f32.mrf.mxu2  ;;  %v6676_v0 = vld [vmem:[#allocation3 + $0x51] sm:$0xff] }
 0x3f3   : > { %2360 = vst.msk [vmem:[#allocation3 + $0x61] sm:$0xff] %vm311_vm0, %v2273_v18  ;;  %v2215_v54 = vmul.f32 %v6469_v55, %v2147_v56  ;;  %2721 = vrot.lane.b32.xlu2 %v6676_v0, %s4564_s26 }
 0x3f4   : > { %v2120_v29 = vpop.f32.mrf.mxu0 }
 0x3f5   : > { %v2251_v10 = vadd.f32 %v6482_v1, %v2215_v54  ;;  %v2206_v61 = vmul.f32 %v6469_v55, %v2120_v29 }
 0x3f7   : > { %v2283_v34 = vmax.f32 %v2251_v10, 0.0  ;;  %v2242_v58 = vadd.f32 %v6482_v1, %v2206_v61 }
 0x3f9   : > { %2370 = vst.msk [vmem:[#allocation3 + $0xd9] sm:$0xff] %vm311_vm0, %v2283_v34  ;;  %v2274_v51 = vmax.f32 %v2242_v58, 0.0 }
 0x3fa   : > { %v2150_v52 = vpop.f32.mrf.mxu2  ;;  %v6686_v27 = vld [vmem:[#allocation3 + $0x61] sm:$0xff] }
 0x3fb   : > { %2361 = vst.msk [vmem:[#allocation3 + $0x69] sm:$0xff] %vm311_vm0, %v2274_v51  ;;  %v2216_v5 = vmul.f32 %v6469_v55, %v2150_v52  ;;  %2723 = vrot.lane.b32.xlu0 %v6686_v27, %s4564_s26 }
 0x3fc   : > { %v2123_v24 = vpop.f32.mrf.mxu0 }
 0x3fd   : > { %v2252_v37 = vadd.f32 %v6482_v1, %v2216_v5  ;;  %v2207_v15 = vmul.f32 %v6469_v55, %v2123_v24 }
 0x3ff   : > { %v2284_v26 = vmax.f32 %v2252_v37, 0.0  ;;  %v2243_v44 = vadd.f32 %v6482_v1, %v2207_v15 }
 0x401   : > { %2371 = vst.msk [vmem:[#allocation3 + $0xe1] sm:$0xff] %vm311_vm0, %v2284_v26  ;;  %v2275_v63 = vmax.f32 %v2243_v44, 0.0 }
 0x402   : > { %v2153_v2 = vpop.f32.mrf.mxu2  ;;  %v6696_v38 = vld [vmem:[#allocation3 + $0x69] sm:$0xff] }
 0x403   : > { %2362 = vst.msk [vmem:[#allocation3 + $0x79] sm:$0xff] %vm311_vm0, %v2275_v63  ;;  %v2217_v62 = vmul.f32 %v6469_v55, %v2153_v2  ;;  %2725 = vrot.lane.b32.xlu1 %v6696_v38, %s4564_s26 }
 0x404   : > { %v2126_v60 = vpop.f32.mrf.mxu0 }
 0x405   : > { %v2253_v47 = vadd.f32 %v6482_v1, %v2217_v62  ;;  %v2208_v48 = vmul.f32 %v6469_v55, %v2126_v60 }
 0x407   : > { %v2285_v39 = vmax.f32 %v2253_v47, 0.0  ;;  %v2244_v4 = vadd.f32 %v6482_v1, %v2208_v48 }
 0x409   : > { %2372 = vst.msk [vmem:[#allocation3 + $0xf1] sm:$0xff] %vm311_vm0, %v2285_v39  ;;  %v2276_v7 = vmax.f32 %v2244_v4, 0.0 }
 0x40a   : > { %v2156_v6 = vpop.f32.mrf.mxu2  ;;  %v6706_v22 = vld [vmem:[#allocation3 + $0x79] sm:$0xff] }
 0x40b   : > { %2363 = vst.msk [vmem:[#allocation3 + $0x81] sm:$0xff] %vm311_vm0, %v2276_v7  ;;  %v2218_v41 = vmul.f32 %v6469_v55, %v2156_v6  ;;  %2727 = vrot.lane.b32.xlu2 %v6706_v22, %s4564_s26 }
 0x40c   : > { %v2129_v57 = vpop.f32.mrf.mxu0 }
 0x40d   : > { %v2254_v42 = vadd.f32 %v6482_v1, %v2218_v41  ;;  %v2209_v12 = vmul.f32 %v6469_v55, %v2129_v57  ;;  %v6766_v41 = vld [vmem:[#allocation3 + $0xd9] sm:$0xff] }
 0x40f   : > { %v2286_v25 = vmax.f32 %v2254_v42, 0.0  ;;  %v2245_v46 = vadd.f32 %v6482_v1, %v2209_v12 }
 0x411   : > { %2373 = vst.msk [vmem:[#allocation3 + $0xf9] sm:$0xff] %vm311_vm0, %v2286_v25  ;;  %v2277_v3 = vmax.f32 %v2245_v46, 0.0 }
 0x412   : > { %v2159_v59 = vpop.f32.mrf.mxu2  ;;  %v6716_v13 = vld [vmem:[#allocation3 + $0x81] sm:$0xff] }
 0x413   : > { %2364 = vst.msk [vmem:[#allocation3 + $0x91] sm:$0xff] %vm311_vm0, %v2277_v3  ;;  %v2219_v45 = vmul.f32 %v6469_v55, %v2159_v59  ;;  %2729 = vrot.lane.b32.xlu0 %v6716_v13, %s4564_s26  ;;  %v6780_v59 = vld [vmem:[#allocation3 + $0xe1] sm:$0xff] }
 0x414   : > { %v2132_v23 = vpop.f32.mrf.mxu0 }
 0x415   : > { %v2255_v43 = vadd.f32 %v6482_v1, %v2219_v45  ;;  %v2210_v28 = vmul.f32 %v6469_v55, %v2132_v23 }
 0x417   : > { %v2287_v17 = vmax.f32 %v2255_v43, 0.0  ;;  %v2246_v35 = vadd.f32 %v6482_v1, %v2210_v28 }
 0x418   : > { %v6778_v3 = vld [vmem:[#allocation3 + $0xf9] sm:$0xff] }
 0x419   : > { %2374 = vst.msk [vmem:[#allocation3 + $0x109] sm:$0xff] %vm311_vm0, %v2287_v17  ;;  %v2278_v14 = vmax.f32 %v2246_v35, 0.0 }
 0x41a   : > { %v2162_v21 = vpop.f32.mrf.mxu2  ;;  %v6726_v8 = vld [vmem:[#allocation3 + $0x91] sm:$0xff] }
 0x41b   : > { %2365 = vst.msk [vmem:[#allocation3 + $0x99] sm:$0xff] %vm311_vm0, %v2278_v14  ;;  %v2220_v32 = vmul.f32 %v6469_v55, %v2162_v21  ;;  %2731 = vrot.lane.b32.xlu1 %v6726_v8, %s4564_s26 }
 0x41c   : > { %v2135_v9 = vpop.f32.mrf.mxu0 }
 0x41d   : > { %v2256_v31 = vadd.f32 %v6482_v1, %v2220_v32  ;;  %v2211_v33 = vmul.f32 %v6469_v55, %v2135_v9  ;;  %v6802_v32 = vld [vmem:[#allocation3 + $0xf1] sm:$0xff] }
 0x41f   : > { %v2288_v30 = vmax.f32 %v2256_v31, 0.0  ;;  %v2247_v49 = vadd.f32 %v6482_v1, %v2211_v33 }
 0x420   : > { %v6795_v14 = vld [vmem:[#allocation3 + $0x109] sm:$0xff] }
 0x421   : > { %2375 = vst.msk [vmem:[#allocation3 + $0x111] sm:$0xff] %vm311_vm0, %v2288_v30  ;;  %v2279_v36 = vmax.f32 %v2247_v49, 0.0 }
 0x422   : > { %v2165_v16 = vpop.f32.mrf.mxu2  ;;  %v6736_v20 = vld [vmem:[#allocation3 + $0x99] sm:$0xff] }
 0x423   : > { %2366 = vst.msk [vmem:[#allocation3 + $0xa9] sm:$0xff] %vm311_vm0, %v2279_v36  ;;  %v2221_v18 = vmul.f32 %v6469_v55, %v2165_v16  ;;  %2733 = vrot.lane.b32.xlu2 %v6736_v20, %s4564_s26 }
 0x424   : > { %v2138_v56 = vpop.f32.mrf.mxu0 }
 0x425   : > { %v2257_v54 = vadd.f32 %v6482_v1, %v2221_v18  ;;  %v2212_v29 = vmul.f32 %v6469_v55, %v2138_v56 }
 0x427   : > { %v2289_v10 = vmax.f32 %v2257_v54, 0.0  ;;  %v2248_v61 = vadd.f32 %v6482_v1, %v2212_v29 }
 0x428   : > { %v6817_v16 = vld [vmem:[#allocation3 + $0x111] sm:$0xff] }
 0x429   : > { %2376 = vst.msk [vmem:[#allocation3 + $0x121] sm:$0xff] %vm311_vm0, %v2289_v10  ;;  %v2280_v34 = vmax.f32 %v2248_v61, 0.0 }
 0x42a   : > { %v2168_v58 = vpop.f32.mrf.mxu2  ;;  %v6746_v51 = vld [vmem:[#allocation3 + $0xa9] sm:$0xff] }
 0x42b   : > { %2367 = vst.msk [vmem:[#allocation3 + $0xb1] sm:$0xff] %vm311_vm0, %v2280_v34  ;;  %v2222_v52 = vmul.f32 %v6469_v55, %v2168_v58  ;;  %2735 = vrot.lane.b32.xlu0 %v6746_v51, %s4564_s26 }
 0x42c   : > { %v2141_v5 = vpop.f32.mrf.mxu0 }
 0x42d   : > { %v2258_v24 = vadd.f32 %v6482_v1, %v2222_v52  ;;  %v2213_v37 = vmul.f32 %v6469_v55, %v2141_v5 }
 0x42f   : > { %v2290_v15 = vmax.f32 %v2258_v24, 0.0  ;;  %v2249_v26 = vadd.f32 %v6482_v1, %v2213_v37 }
 0x430   : > { %v6793_v35 = vld [vmem:[#allocation3 + $0x121] sm:$0xff] }
 0x431   : > { %2377 = vst.msk [vmem:[#allocation3 + $0x129] sm:$0xff] %vm311_vm0, %v2290_v15  ;;  %v2281_v44 = vmax.f32 %v2249_v26, 0.0  ;;  %v2451_v26 = vld [vmem:[#allocation3 + $0xa] sm:$0xff] }
 0x432   : > { %v2171_v63 = vpop.f32.mrf.mxu2  ;;  %v6756_v2 = vld [vmem:[#allocation3 + $0xb1] sm:$0xff] }
 0x433   : > { %2368 = vst.msk [vmem:[#allocation3 + $0xc1] sm:$0xff] %vm311_vm0, %v2281_v44  ;;  %v2223_v62 = vmul.f32 %v6469_v55, %v2171_v63  ;;  %2737 = vrot.lane.b32.xlu1 %v6756_v2, %s4564_s26 }
 0x434   : > { %v2144_v60 = vpop.f32.mrf.mxu0 }
 0x435   : > { %v2259_v47 = vadd.f32 %v6482_v1, %v2223_v62  ;;  %v2214_v48 = vmul.f32 %v6469_v55, %v2144_v60  ;;  %v2450_v62 = vld [vmem:[#allocation3 + $0x2] sm:$0xff] }
 0x437   : > { %v2291_v39 = vmax.f32 %v2259_v47, 0.0  ;;  %v2250_v4 = vadd.f32 %v6482_v1, %v2214_v48  ;;  %v6850_v47 = vpop.permute.xlu2 %2709 }
 0x438   : > { %v6810_v49 = vld [vmem:[#allocation3 + $0x129] sm:$0xff]  ;;  %8776 = vst [vmem:[#allocation40_spill] sm:$0xff] %v6850_v47 }
 0x439   : > { %2378 = vst.msk [vmem:[#allocation3 + $0x139] sm:$0xff] %vm311_vm0, %v2291_v39  ;;  %v2282_v7 = vmax.f32 %v2250_v4, 0.0 }
 0x43a   : > { %v2174_v6 = vpop.f32.mrf.mxu2  ;;  %v6768_v57 = vld [vmem:[#allocation3 + $0xc1] sm:$0xff] }
 0x43b   : > { %2369 = vst.msk [vmem:[#allocation3 + $0xc9] sm:$0xff] %vm311_vm0, %v2282_v7  ;;  %v2224_v42 = vmul.f32 %v6469_v55, %v2174_v6  ;;  %2743 = vrot.lane.b32.xlu1 %v6766_v41, %s4564_s26  ;;  %2739 = vrot.lane.b32.xlu2 %v6768_v57, %s4564_s26  ;;  %v6855_v7 = vld [vmem:[#allocation3 + $0x32] sm:$0xff]  ;;  %v6857_v6 = vld [vmem:[#allocation3 + $0x1a] sm:$0xff] }
 0x43d   : > { %v2260_v12 = vadd.f32 %v6482_v1, %v2224_v42  ;;  %v6864_v42 = vld [vmem:[#allocation3 + $0x22] sm:$0xff] }
 0x43f   : > { %v2292_v25 = vmax.f32 %v2260_v12, 0.0  ;;  %v6872_v12 = vld [vmem:[#allocation3 + $0x3a] sm:$0xff] }
 0x440   : > { %v6828_v61 = vld [vmem:[#allocation3 + $0x139] sm:$0xff] }
 0x441   : > { %2379 = vst.msk [vmem:[#allocation3 + $0x141] sm:$0xff] %vm311_vm0, %v2292_v25  ;;  %v6878_v25 = vpop.permute.xlu1 %2707 }
 0x442   : > { %v2177_v46 = vpop.f32.mrf.mxu2  ;;  %v6782_v45 = vld [vmem:[#allocation3 + $0xc9] sm:$0xff]  ;;  %8778 = vst [vmem:[#allocation38_spill] sm:$0xff] %v6878_v25 }
 0x443   : > { %v2225_v23 = vmul.f32 %v6469_v55, %v2177_v46  ;;  %2749 = vrot.lane.b32.xlu1 %v6778_v3, %s4564_s26  ;;  %2745 = vrot.lane.b32.xlu2 %v6780_v59, %s4564_s26  ;;  %v6880_v46 = vld [vmem:[#allocation3 + $0x4a] sm:$0xff] }
 0x444   : > { %2741 = vrot.lane.b32.xlu0 %v6782_v45, %s4564_s26 }
 0x445   : > { %v2261_v43 = vadd.f32 %v6482_v1, %v2225_v23 }
 0x447   : > { %v2293_v28 = vmax.f32 %v2261_v43, 0.0  ;;  %v6886_v43 = vld [vmem:[#allocation3 + $0x7a] sm:$0xff] }
 0x448   : > { %v6808_v30 = vld [vmem:[#allocation3 + $0x141] sm:$0xff] }
 0x449   : > { %2380 = vst.msk [vmem:[#allocation3 + $0x151] sm:$0xff] %vm311_vm0, %v2293_v28  ;;  %v6888_v28 = vld [vmem:[#allocation3 + $0x62] sm:$0xff] }
 0x44a   : > { %v2180_v17 = vpop.f32.mrf.mxu2 }
 0x44b   : > { %v2226_v21 = vmul.f32 %v6469_v55, %v2180_v17  ;;  %2755 = vrot.lane.b32.xlu1 %v6793_v35, %s4564_s26  ;;  %2751 = vrot.lane.b32.xlu2 %v6795_v14, %s4564_s26  ;;  %v6894_v17 = vld [vmem:[#allocation3 + $0x6a] sm:$0xff] }
 0x44c   : > { %2747 = vrot.lane.b32.xlu0 %v6802_v32, %s4564_s26 }
 0x44d   : > { %v2262_v9 = vadd.f32 %v6482_v1, %v2226_v21  ;;  %v6898_v21 = vpop.permute.xlu1 %2713 }
 0x44e   : > { %8780 = vst [vmem:[#allocation42_spill] sm:$0xff] %v6898_v21 }
 0x44f   : > { %v2294_v31 = vmax.f32 %v2262_v9, 0.0 }
 0x450   : > { %v6823_v29 = vld [vmem:[#allocation3 + $0x151] sm:$0xff] }
 0x451   : > { %2381 = vst.msk [vmem:[#allocation3 + $0x159] sm:$0xff] %vm311_vm0, %v2294_v31  ;;  %v6902_v31 = vld [vmem:[#allocation3 + $0x9a] sm:$0xff] }
 0x452   : > { %v2183_v33 = vpop.f32.mrf.mxu2 }
 0x453   : > { %v2227_v36 = vmul.f32 %v6469_v55, %v2183_v33  ;;  %2761 = vrot.lane.b32.xlu1 %v6808_v30, %s4564_s26  ;;  %2757 = vrot.lane.b32.xlu2 %v6810_v49, %s4564_s26  ;;  %v6904_v33 = vld [vmem:[#allocation3 + $0x82] sm:$0xff] }
 0x454   : > { %2753 = vrot.lane.b32.xlu0 %v6817_v16, %s4564_s26 }
 0x455   : > { %v2263_v18 = vadd.f32 %v6482_v1, %v2227_v36  ;;  %v6910_v36 = vld [vmem:[#allocation3 + $0x92] sm:$0xff] }
 0x457   : > { %v2295_v56 = vmax.f32 %v2263_v18, 0.0 }
 0x458   : > { %v6839_v37 = vld [vmem:[#allocation3 + $0x159] sm:$0xff] }
 0x459   : > { %2382 = vst.msk [vmem:[#allocation3 + $0x169] sm:$0xff] %vm311_vm0, %v2295_v56  ;;  %v6992_v47 = vld [vmem:[#allocation3 + $0x152] sm:$0xff] }
 0x45a   : > { %v2186_v54 = vpop.f32.mrf.mxu2  ;;  %8797 = vst [vmem:[#allocation96_spill] sm:$0xff] %v6992_v47 }
 0x45b   : > { %v2228_v10 = vmul.f32 %v6469_v55, %v2186_v54  ;;  %2763 = vrot.lane.b32.xlu2 %v6823_v29, %s4564_s26  ;;  %v6918_v54 = vpop.permute.xlu0 %2711 }
 0x45c   : > { %2759 = vrot.lane.b32.xlu0 %v6828_v61, %s4564_s26  ;;  %8784 = vst [vmem:[#allocation35_spill] sm:$0xff] %v6918_v54  ;;  %v6990_v54 = vld [vmem:[#allocation3 + $0x13a] sm:$0xff] }
 0x45d   : > { %v2264_v34 = vadd.f32 %v6482_v1, %v2228_v10  ;;  %v6914_v18 = vpop.permute.xlu1 %2719  ;;  %v6920_v10 = vld [vmem:[#allocation3 + $0xaa] sm:$0xff]  ;;  %8796 = vst [vmem:[#allocation95_spill] sm:$0xff] %v6990_v54 }
 0x45e   : > { %8782 = vst [vmem:[#allocation34_spill] sm:$0xff] %v6914_v18  ;;  %v6974_v18 = vld [vmem:[#allocation3 + $0x112] sm:$0xff] }
 0x45f   : > { %v2296_v58 = vmax.f32 %v2264_v34, 0.0  ;;  %v6922_v34 = vld [vmem:[#allocation3 + $0xc2] sm:$0xff] }
 0x460   : > { %v6833_v52 = vld [vmem:[#allocation3 + $0x169] sm:$0xff] }
 0x461   : > { %2383 = vst.msk [vmem:[#allocation3 + $0x171] sm:$0xff] %vm311_vm0, %v2296_v58  ;;  %2767 = vrot.lane.b32.xlu1 %v6833_v52, %s4564_s26  ;;  %v6928_v58 = vld [vmem:[#allocation3 + $0xb2] sm:$0xff] }
 0x462   : > { %v2189_v5 = vpop.f32.mrf.mxu2 }
 0x463   : > { %v2229_v24 = vmul.f32 %v6469_v55, %v2189_v5 }
 0x464   : > { %2765 = vrot.lane.b32.xlu0 %v6839_v37, %s4564_s26 }
 0x465   : > { %v2265_v15 = vadd.f32 %v6482_v1, %v2229_v24 }
 0x467   : > { %v2297_v44 = vmax.f32 %v2265_v15, 0.0  ;;  %v6936_v15 = vpop.permute.xlu0 %2717 }
 0x468   : > { %v6844_v63 = vld [vmem:[#allocation3 + $0x171] sm:$0xff]  ;;  %8787 = vst [vmem:[#allocation56_spill] sm:$0xff] %v6936_v15 }
 0x469   : > { %2384 = vst.msk [vmem:[#allocation3 + $0x181] sm:$0xff] %vm311_vm0, %v2297_v44  ;;  %2837 = vrot.lane.b32.xlu1 %v2451_v26, %s4565_s8  ;;  %2769 = vrot.lane.b32.xlu2 %v6844_v63, %s4564_s26  ;;  %v6938_v26 = vld [vmem:[#allocation3 + $0xca] sm:$0xff]  ;;  %v6940_v44 = vld [vmem:[#allocation3 + $0xe2] sm:$0xff] }
 0x46a   : > { %v2192_v60 = vpop.f32.mrf.mxu2  ;;  %v6976_v15 = vld [vmem:[#allocation3 + $0x12a] sm:$0xff] }
 0x46b   : > { %v2230_v48 = vmul.f32 %v6469_v55, %v2192_v60  ;;  %v6868_v55 = vpop.permute.xlu2 %2715  ;;  %8793 = vst [vmem:[#allocation111_spill] sm:$0xff] %v6976_v15 }
 0x46c   : > { %2835 = vrot.lane.b32.xlu0 %v2450_v62, %s4565_s8  ;;  %8777 = vst [vmem:[#allocation81_spill] sm:$0xff] %v6868_v55  ;;  %v6946_v62 = vld [vmem:[#allocation3 + $0xda] sm:$0xff]  ;;  %v6982_v55 = vld [vmem:[#allocation3 + $0x122] sm:$0xff] }
 0x46d   : > { %v2266_v39 = vadd.f32 %v6482_v1, %v2230_v48  ;;  %v6870_v1 = vld [vmem:[#allocation3 + $0x52] sm:$0xff] }
 0x46f   : > { %v2298_v4 = vmax.f32 %v2266_v39, 0.0  ;;  %v6954_v39 = vpop.permute.xlu0 %2723 }
 0x470   : > { %8790 = vst [vmem:[#allocation44_spill] sm:$0xff] %v6954_v39 }
 0x471   : > { %2385 = vst.msk [vmem:[#allocation3 + $0x189] sm:$0xff] %vm311_vm0, %v2298_v4  ;;  %2843 = vrot.lane.b32.xlu1 %v6855_v7, %s4565_s8  ;;  %2839 = vrot.lane.b32.xlu2 %v6857_v6, %s4565_s8  ;;  %v6956_v4 = vld [vmem:[#allocation3 + $0xf2] sm:$0xff] }
 0x473   : > { %v6884_v23 = vpop.permute.xlu2 %2721 }
 0x474   : > { %2841 = vrot.lane.b32.xlu0 %v6864_v42, %s4565_s8  ;;  %8779 = vst [vmem:[#allocation85_spill] sm:$0xff] %v6884_v23 }
 0x475   : > { %v6932_v5 = vpop.permute.xlu1 %2725 }
 0x476   : > { %8785 = vst [vmem:[#allocation91_spill] sm:$0xff] %v6932_v5  ;;  %v6964_v5 = vld [vmem:[#allocation3 + $0xfa] sm:$0xff] }
 0x479   : > { %2849 = vrot.lane.b32.xlu1 %v6870_v1, %s4565_s8  ;;  %2845 = vrot.lane.b32.xlu2 %v6872_v12, %s4565_s8 }
 0x47b   : > { %v6900_v9 = vpop.permute.xlu2 %2727 }
 0x47c   : > { %2847 = vrot.lane.b32.xlu0 %v6880_v46, %s4565_s8  ;;  %8781 = vst [vmem:[#allocation69_spill] sm:$0xff] %v6900_v9  ;;  %v6958_v9 = vld [vmem:[#allocation3 + $0x10a] sm:$0xff] }
 0x481   : > { %2855 = vrot.lane.b32.xlu1 %v6886_v43, %s4565_s8  ;;  %2851 = vrot.lane.b32.xlu2 %v6888_v28, %s4565_s8 }
 0x483   : > { %v6916_v56 = vpop.permute.xlu2 %2733 }
 0x484   : > { %2853 = vrot.lane.b32.xlu0 %v6894_v17, %s4565_s8  ;;  %8783 = vst [vmem:[#allocation86_spill] sm:$0xff] %v6916_v56  ;;  %v7008_v56 = vld [vmem:[#allocation3 + $0x15a] sm:$0xff] }
 0x485   : > { %v6970_v23 = vpop.permute.xlu0 %2729  ;;  %8802 = vst [vmem:[#allocation175_spill] sm:$0xff] %v7008_v56 }
 0x486   : > { %8791 = vst [vmem:[#allocation45_spill] sm:$0xff] %v6970_v23 }
 0x489   : > { %2861 = vrot.lane.b32.xlu1 %v6902_v31, %s4565_s8  ;;  %2857 = vrot.lane.b32.xlu2 %v6904_v33, %s4565_s8 }
 0x48c   : > { %2859 = vrot.lane.b32.xlu0 %v6910_v36, %s4565_s8 }
 0x48d   : > { %v6950_v60 = vpop.permute.xlu1 %2731 }
 0x48e   : > { %8788 = vst [vmem:[#allocation74_spill] sm:$0xff] %v6950_v60 }
 0x491   : > { %2863 = vrot.lane.b32.xlu2 %v6920_v10, %s4565_s8  ;;  %2867 = vrot.lane.b32.xlu1 %v6922_v34, %s4565_s8 }
 0x494   : > { %2865 = vrot.lane.b32.xlu0 %v6928_v58, %s4565_s8 }
 0x495   : > { %v6934_v24 = vpop.permute.xlu2 %2739 }
 0x496   : > { %8786 = vst [vmem:[#allocation43_spill] sm:$0xff] %v6934_v24  ;;  %v7000_v24 = vld [vmem:[#allocation3 + $0x142] sm:$0xff] }
 0x497   : > { %8799 = vst [vmem:[#allocation93_spill] sm:$0xff] %v7000_v24 }
 0x499   : > { %2869 = vrot.lane.b32.xlu2 %v6938_v26, %s4565_s8  ;;  %2873 = vrot.lane.b32.xlu1 %v6940_v44, %s4565_s8 }
 0x49c   : > { %2871 = vrot.lane.b32.xlu0 %v6946_v62, %s4565_s8 }
 0x49d   : > { %v6952_v48 = vpop.permute.xlu2 %2745  ;;  %v6988_v23 = vpop.permute.xlu0 %2735 }
 0x49e   : > { %8789 = vst [vmem:[#allocation108_spill] sm:$0xff] %v6952_v48 }
 0x49f   : > { %8795 = vst [vmem:[#allocation57_spill] sm:$0xff] %v6988_v23  ;;  %v2481_v23 = vld [vmem:[#allocation3 + $0x172] sm:$0xff] }
 0x4a1   : > { %2875 = vrot.lane.b32.xlu2 %v6956_v4, %s4565_s8  ;;  %2879 = vrot.lane.b32.xlu1 %v6958_v9, %s4565_s8 }
 0x4a4   : > { %2877 = vrot.lane.b32.xlu0 %v6964_v5, %s4565_s8 }
 0x4a5   : > { %v6968_v60 = vpop.permute.xlu1 %2737  ;;  %v6972_v39 = vpop.permute.xlu2 %2751 }
 0x4a6   : > { %8792 = vst [vmem:[#allocation92_spill] sm:$0xff] %v6972_v39 }
 0x4a9   : > { %2881 = vrot.lane.b32.xlu2 %v6974_v18, %s4565_s8  ;;  %2885 = vrot.lane.b32.xlu1 %v6976_v15, %s4565_s8 }
 0x4ac   : > { %2883 = vrot.lane.b32.xlu0 %v6982_v55, %s4565_s8 }
 0x4ad   : > { %v6986_v21 = vpop.permute.xlu1 %2743  ;;  %v6994_v25 = vpop.permute.xlu2 %2757 }
 0x4ae   : > { %8794 = vst [vmem:[#allocation37_spill] sm:$0xff] %v6986_v21 }
 0x4af   : > { %8798 = vst [vmem:[#allocation54_spill] sm:$0xff] %v6994_v25 }
 0x4b1   : > { %2887 = vrot.lane.b32.xlu2 %v6990_v54, %s4565_s8  ;;  %2891 = vrot.lane.b32.xlu1 %v6992_v47, %s4565_s8  ;;  %v2480_v47 = vld [vmem:[#allocation3 + $0x16a] sm:$0xff]  ;;  %v2388_v54 = vld [vmem:[#allocation3 + $0x18] sm:$0xff] }
 0x4b4   : > { %2889 = vrot.lane.b32.xlu0 %v7000_v24, %s4565_s8  ;;  %v2390_v24 = vld [vmem:[#allocation3 + $0x30] sm:$0xff] }
 0x4b5   : > { %v7006_v48 = vpop.permute.xlu1 %2749  ;;  %v7013_v25 = vpop.permute.xlu2 %2763 }
 0x4b6   : > { %v7004_v39 = vpop.permute.xlu0 %2741  ;;  %8801 = vst [vmem:[#allocation165_spill] sm:$0xff] %v7006_v48  ;;  %v2389_v48 = vld [vmem:[#allocation3 + $0x20] sm:$0xff] }
 0x4b7   : > { %8800 = vst [vmem:[#allocation94_spill] sm:$0xff] %v7004_v39 }
 0x4b8   : > { %8803 = vst [vmem:[#allocation184_spill] sm:$0xff] %v7013_v25  ;;  %v2393_v25 = vld [vmem:[#allocation3 + $0x50] sm:$0xff] }
 0x4b9   : > { %2893 = vrot.lane.b32.xlu2 %v7008_v56, %s4565_s8  ;;  %2897 = vrot.lane.b32.xlu1 %v2481_v23, %s4565_s8  ;;  %v2391_v56 = vld [vmem:[#allocation3 + $0x38] sm:$0xff] }
 0x4bc   : > { %2895 = vrot.lane.b32.xlu0 %v2480_v47, %s4565_s8  ;;  %v2392_v47 = vld [vmem:[#allocation3 + $0x48] sm:$0xff] }
 0x4bd   : > { %v7018_v39 = vpop.permute.xlu1 %2755 }
 0x4be   : > { %v7016_v21 = vpop.permute.xlu0 %2747  ;;  %8805 = vst [vmem:[#allocation46_spill] sm:$0xff] %v7018_v39 }
 0x4bf   : > { %8804 = vst [vmem:[#allocation196_spill] sm:$0xff] %v7016_v21 }
 0x4c1   : > { %2963 = vrot.lane.b32.xlu2 %v2388_v54, %s4566_s9  ;;  %2967 = vrot.lane.b32.xlu1 %v2390_v24, %s4566_s9  ;;  %v2396_v24 = vld [vmem:[#allocation3 + $0x78] sm:$0xff] }
 0x4c3   : > { %v7022_v15 = vpop.permute.xlu2 %2769 }
 0x4c4   : > { %8806 = vst [vmem:[#allocation62_spill] sm:$0xff] %v7022_v15  ;;  %2965 = vrot.lane.b32.xlu0 %v2389_v48, %s4566_s9  ;;  %v2394_v15 = vld [vmem:[#allocation3 + $0x60] sm:$0xff]  ;;  %v2395_v48 = vld [vmem:[#allocation3 + $0x68] sm:$0xff] }
 0x4c5   : > { %v7029_v21 = vpop.permute.xlu1 %2761 }
 0x4c6   : > { %v7025_v23 = vpop.permute.xlu0 %2753  ;;  %8808 = vst [vmem:[#allocation112_spill] sm:$0xff] %v7029_v21  ;;  %v7111_v21 = vld [vmem:[#allocation3 + $0x128] sm:$0xff] }
 0x4c7   : > { %8807 = vst [vmem:[#allocation79_spill] sm:$0xff] %v7025_v23 }
 0x4c8   : > { %8835 = vst [vmem:[#allocation101_spill] sm:$0xff] %v7111_v21 }
 0x4c9   : > { %2969 = vrot.lane.b32.xlu2 %v2391_v56, %s4566_s9  ;;  %2973 = vrot.lane.b32.xlu1 %v2393_v25, %s4566_s9 }
 0x4cb   : > { %v7031_v39 = vpop.permute.xlu2 %2839 }
 0x4cc   : > { %8809 = vst [vmem:[#allocation125_spill] sm:$0xff] %v7031_v39  ;;  %2971 = vrot.lane.b32.xlu0 %v2392_v47, %s4566_s9  ;;  %v7045_v39 = vld [vmem:[#allocation3 + $0x98] sm:$0xff]  ;;  %v2397_v47 = vld [vmem:[#allocation3 + $0x80] sm:$0xff] }
 0x4cd   : > { %8814 = vst [vmem:[#allocation153_spill] sm:$0xff] %v7045_v39 }
 0x4ce   : > { %v7034_v54 = vpop.permute.xlu0 %2759 }
 0x4cf   : > { %8810 = vst [vmem:[#allocation126_spill] sm:$0xff] %v7034_v54 }
 0x4d1   : > { %2975 = vrot.lane.b32.xlu2 %v2394_v15, %s4566_s9  ;;  %2979 = vrot.lane.b32.xlu1 %v2396_v24, %s4566_s9  ;;  %v2398_v15 = vld [vmem:[#allocation3 + $0x90] sm:$0xff] }
 0x4d3   : > { %v7038_v23 = vpop.permute.xlu1 %2767  ;;  %v7040_v56 = vpop.permute.xlu2 %2845 }
 0x4d4   : > { %8811 = vst [vmem:[#allocation145_spill] sm:$0xff] %v7038_v23  ;;  %2977 = vrot.lane.b32.xlu0 %v2395_v48, %s4566_s9  ;;  %v7057_v48 = vld [vmem:[#allocation3 + $0xc0] sm:$0xff]  ;;  %v7095_v23 = vld [vmem:[#allocation3 + $0xf0] sm:$0xff] }
 0x4d5   : > { %8812 = vst [vmem:[#allocation60_spill] sm:$0xff] %v7040_v56 }
 0x4d6   : > { %v7043_v25 = vpop.permute.xlu0 %2765  ;;  %8818 = vst [vmem:[#allocation47_spill] sm:$0xff] %v7057_v48 }
 0x4d7   : > { %8813 = vst [vmem:[#allocation78_spill] sm:$0xff] %v7043_v25  ;;  %v7059_v25 = vld [vmem:[#allocation3 + $0xa8] sm:$0xff] }
 0x4d8   : > { %8819 = vst [vmem:[#allocation48_spill] sm:$0xff] %v7059_v25 }
 0x4d9   : > { %2981 = vrot.lane.b32.xlu2 %v2397_v47, %s4566_s9  ;;  %2985 = vrot.lane.b32.xlu1 %v7045_v39, %s4566_s9  ;;  %v7065_v47 = vld [vmem:[#allocation3 + $0xb0] sm:$0xff]  ;;  %8830 = vst [vmem:[#allocation189_spill] sm:$0xff] %v7095_v23 }
 0x4db   : > { %v7050_v54 = vpop.permute.xlu1 %2837  ;;  %v7052_v24 = vpop.permute.xlu2 %2851 }
 0x4dc   : > { %8815 = vst [vmem:[#allocation166_spill] sm:$0xff] %v7050_v54  ;;  %2983 = vrot.lane.b32.xlu0 %v2398_v15, %s4566_s9 }
 0x4dd   : > { %8816 = vst [vmem:[#allocation167_spill] sm:$0xff] %v7052_v24  ;;  %v7075_v24 = vld [vmem:[#allocation3 + $0xe0] sm:$0xff] }
 0x4de   : > { %v7055_v56 = vpop.permute.xlu0 %2835  ;;  %8823 = vst [vmem:[#allocation134_spill] sm:$0xff] %v7075_v24 }
 0x4df   : > { %8817 = vst [vmem:[#allocation188_spill] sm:$0xff] %v7055_v56  ;;  %v7077_v56 = vld [vmem:[#allocation3 + $0xc8] sm:$0xff] }
 0x4e0   : > { %8824 = vst [vmem:[#allocation146_spill] sm:$0xff] %v7077_v56 }
 0x4e1   : > { %2987 = vrot.lane.b32.xlu2 %v7059_v25, %s4566_s9  ;;  %2991 = vrot.lane.b32.xlu1 %v7057_v48, %s4566_s9  ;;  %v7083_v48 = vld [vmem:[#allocation3 + $0xd8] sm:$0xff]  ;;  %v7093_v25 = vld [vmem:[#allocation3 + $0x108] sm:$0xff] }
 0x4e2   : > { %8825 = vst [vmem:[#allocation147_spill] sm:$0xff] %v7083_v48 }
 0x4e3   : > { %v7067_v39 = vpop.permute.xlu1 %2843  ;;  %v7069_v54 = vpop.permute.xlu2 %2857  ;;  %8829 = vst [vmem:[#allocation176_spill] sm:$0xff] %v7093_v25 }
 0x4e4   : > { %8820 = vst [vmem:[#allocation97_spill] sm:$0xff] %v7067_v39  ;;  %2989 = vrot.lane.b32.xlu0 %v7065_v47, %s4566_s9 }
 0x4e5   : > { %8821 = vst [vmem:[#allocation115_spill] sm:$0xff] %v7069_v54 }
 0x4e6   : > { %v7073_v15 = vpop.permute.xlu0 %2841 }
 0x4e7   : > { %8822 = vst [vmem:[#allocation123_spill] sm:$0xff] %v7073_v15 }
 0x4e9   : > { %2993 = vrot.lane.b32.xlu2 %v7077_v56, %s4566_s9  ;;  %2997 = vrot.lane.b32.xlu1 %v7075_v24, %s4566_s9  ;;  %v7101_v24 = vld [vmem:[#allocation3 + $0xf8] sm:$0xff]  ;;  %v7113_v56 = vld [vmem:[#allocation3 + $0x110] sm:$0xff] }
 0x4ea   : > { %8831 = vst [vmem:[#allocation190_spill] sm:$0xff] %v7101_v24 }
 0x4eb   : > { %v7085_v39 = vpop.permute.xlu1 %2849  ;;  %v7087_v54 = vpop.permute.xlu2 %2863  ;;  %8836 = vst [vmem:[#allocation127_spill] sm:$0xff] %v7113_v56 }
 0x4ec   : > { %8826 = vst [vmem:[#allocation98_spill] sm:$0xff] %v7085_v39  ;;  %2995 = vrot.lane.b32.xlu0 %v7083_v48, %s4566_s9  ;;  %v2513_v48 = vld [vmem:[#allocation3 + $0x188] sm:$0xff] }
 0x4ed   : > { %8827 = vst [vmem:[#allocation155_spill] sm:$0xff] %v7087_v54 }
 0x4ee   : > { %v7091_v15 = vpop.permute.xlu0 %2847 }
 0x4ef   : > { %8828 = vst [vmem:[#allocation163_spill] sm:$0xff] %v7091_v15 }
 0x4f1   : > { %2999 = vrot.lane.b32.xlu2 %v7095_v23, %s4566_s9  ;;  %3003 = vrot.lane.b32.xlu1 %v7093_v25, %s4566_s9  ;;  %v7119_v25 = vld [vmem:[#allocation3 + $0x120] sm:$0xff]  ;;  %v7129_v23 = vld [vmem:[#allocation3 + $0x138] sm:$0xff] }
 0x4f2   : > { %8837 = vst [vmem:[#allocation136_spill] sm:$0xff] %v7119_v25 }
 0x4f3   : > { %v7103_v39 = vpop.permute.xlu1 %2855  ;;  %v7105_v54 = vpop.permute.xlu2 %2869  ;;  %8841 = vst [vmem:[#allocation99_spill] sm:$0xff] %v7129_v23 }
 0x4f4   : > { %8832 = vst [vmem:[#allocation39_spill] sm:$0xff] %v7103_v39  ;;  %3001 = vrot.lane.b32.xlu0 %v7101_v24, %s4566_s9  ;;  %v2414_v24 = vld [vmem:[#allocation3 + $0x150] sm:$0xff] }
 0x4f5   : > { %8833 = vst [vmem:[#allocation63_spill] sm:$0xff] %v7105_v54 }
 0x4f6   : > { %v7109_v15 = vpop.permute.xlu0 %2853 }
 0x4f7   : > { %8834 = vst [vmem:[#allocation100_spill] sm:$0xff] %v7109_v15 }
 0x4f9   : > { %3005 = vrot.lane.b32.xlu2 %v7113_v56, %s4566_s9  ;;  %3009 = vrot.lane.b32.xlu1 %v7111_v21, %s4566_s9  ;;  %v7134_v21 = vld [vmem:[#allocation3 + $0x140] sm:$0xff] }
 0x4fa   : > { %8842 = vst [vmem:[#allocation168_spill] sm:$0xff] %v7134_v21 }
 0x4fb   : > { %v7121_v39 = vpop.permute.xlu1 %2861  ;;  %v7123_v54 = vpop.permute.xlu2 %2875 }
 0x4fc   : > { %8838 = vst [vmem:[#allocation143_spill] sm:$0xff] %v7121_v39  ;;  %3007 = vrot.lane.b32.xlu0 %v7119_v25, %s4566_s9  ;;  %v7144_v25 = vld [vmem:[#allocation3 + $0x158] sm:$0xff] }
 0x4fd   : > { %8839 = vst [vmem:[#allocation151_spill] sm:$0xff] %v7123_v54 }
 0x4fe   : > { %v7127_v15 = vpop.permute.xlu0 %2859  ;;  %8845 = vst [vmem:[#allocation49_spill] sm:$0xff] %v7144_v25 }
 0x4ff   : > { %8840 = vst [vmem:[#allocation104_spill] sm:$0xff] %v7127_v15  ;;  %v2417_v15 = vld [vmem:[#allocation3 + $0x170] sm:$0xff] }
 0x501   : > { %3011 = vrot.lane.b32.xlu2 %v7129_v23, %s4566_s9  ;;  %3015 = vrot.lane.b32.xlu1 %v2414_v24, %s4566_s9  ;;  %v7149_v24 = vld [vmem:[#allocation3 + $0x168] sm:$0xff] }
 0x503   : > { %v7136_v56 = vpop.permute.xlu2 %2881  ;;  %v7138_v39 = vpop.permute.xlu1 %2867 }
 0x504   : > { %8843 = vst [vmem:[#allocation178_spill] sm:$0xff] %v7136_v56  ;;  %3013 = vrot.lane.b32.xlu0 %v7134_v21, %s4566_s9  ;;  %v2512_v21 = vld [vmem:[#allocation3 + $0x180] sm:$0xff] }
 0x505   : > { %8844 = vst [vmem:[#allocation186_spill] sm:$0xff] %v7138_v39 }
 0x506   : > { %v7142_v54 = vpop.permute.xlu0 %2865 }
 0x509   : > { %3017 = vrot.lane.b32.xlu2 %v7144_v25, %s4566_s9  ;;  %3021 = vrot.lane.b32.xlu1 %v2417_v15, %s4566_s9 }
 0x50b   : > { %v7151_v23 = vpop.permute.xlu2 %2887  ;;  %v7153_v56 = vpop.permute.xlu1 %2873 }
 0x50c   : > { %8846 = vst [vmem:[#allocation65_spill] sm:$0xff] %v7151_v23  ;;  %3019 = vrot.lane.b32.xlu0 %v7149_v24, %s4566_s9 }
 0x50d   : > { %8847 = vst [vmem:[#allocation84_spill] sm:$0xff] %v7153_v56 }
 0x50e   : > { %v7157_v39 = vpop.permute.xlu0 %2871 }
 0x511   : > { %3023 = vrot.lane.b32.xlu2 %v2512_v21, %s4566_s9  ;;  %3091 = vrot.lane.b32.xlu1 %v6547_v40, %s4567_s10 }
 0x513   : > { %v7162_v25 = vpop.permute.xlu2 %2893  ;;  %v7164_v15 = vpop.permute.xlu1 %2879 }
 0x514   : > { %3025 = vrot.lane.b32.xlu0 %v2513_v48, %s4566_s9 }
 0x516   : > { %v7167_v23 = vpop.permute.xlu0 %2877 }
 0x519   : > { %3093 = vrot.lane.b32.xlu2 %v6608_v19, %s4567_s10  ;;  %3097 = vrot.lane.b32.xlu1 %v6654_v53, %s4567_s10 }
 0x51b   : > { %v7173_v56 = vpop.permute.xlu2 %2963  ;;  %v7175_v21 = vpop.permute.xlu1 %2885 }
 0x51c   : > { %3095 = vrot.lane.b32.xlu0 %v6631_v11, %s4567_s10 }
 0x51e   : > { %v7179_v40 = vpop.permute.xlu0 %2883 }
 0x521   : > { %3099 = vrot.lane.b32.xlu2 %v6669_v50, %s4567_s10  ;;  %3103 = vrot.lane.b32.xlu1 %v6686_v27, %s4567_s10 }
 0x523   : > { %v7185_v48 = vpop.permute.xlu2 %2969  ;;  %v7187_v19 = vpop.permute.xlu1 %2891 }
 0x524   : > { %8848 = vst [vmem:[#allocation116_spill] sm:$0xff] %v7187_v19  ;;  %3101 = vrot.lane.b32.xlu0 %v6676_v0, %s4567_s10 }
 0x526   : > { %v7191_v53 = vpop.permute.xlu0 %2889 }
 0x529   : > { %3105 = vrot.lane.b32.xlu2 %v6696_v38, %s4567_s10  ;;  %3109 = vrot.lane.b32.xlu1 %v6716_v13, %s4567_s10 }
 0x52b   : > { %v7197_v11 = vpop.permute.xlu2 %2975  ;;  %v7199_v50 = vpop.permute.xlu1 %2897 }
 0x52c   : > { %8849 = vst [vmem:[#allocation128_spill] sm:$0xff] %v7197_v11  ;;  %3107 = vrot.lane.b32.xlu0 %v6706_v22, %s4567_s10 }
 0x52d   : > { %8850 = vst [vmem:[#allocation129_spill] sm:$0xff] %v7199_v50  ;;  %v7277_v50 = vld [vmem:[#allocation3 + $0x181] sm:$0xff] }
 0x52e   : > { %v7203_v27 = vpop.permute.xlu0 %2895 }
 0x531   : > { %3111 = vrot.lane.b32.xlu2 %v6726_v8, %s4567_s10  ;;  %3115 = vrot.lane.b32.xlu1 %v6746_v51, %s4567_s10 }
 0x533   : > { %v7209_v0 = vpop.permute.xlu2 %2981  ;;  %v7211_v38 = vpop.permute.xlu1 %2967 }
 0x534   : > { %8851 = vst [vmem:[#allocation148_spill] sm:$0xff] %v7209_v0  ;;  %3113 = vrot.lane.b32.xlu0 %v6736_v20, %s4567_s10 }
 0x536   : > { %v7215_v13 = vpop.permute.xlu0 %2965 }
 0x539   : > { %3117 = vrot.lane.b32.xlu2 %v6756_v2, %s4567_s10  ;;  %3121 = vrot.lane.b32.xlu1 %v6782_v45, %s4567_s10 }
 0x53b   : > { %v7221_v22 = vpop.permute.xlu2 %2987  ;;  %v7223_v8 = vpop.permute.xlu1 %2973 }
 0x53c   : > { %8852 = vst [vmem:[#allocation67_spill] sm:$0xff] %v7221_v22  ;;  %3119 = vrot.lane.b32.xlu0 %v6768_v57, %s4567_s10 }
 0x53e   : > { %v7227_v51 = vpop.permute.xlu0 %2971 }
 0x541   : > { %3123 = vrot.lane.b32.xlu2 %v6766_v41, %s4567_s10  ;;  %3127 = vrot.lane.b32.xlu1 %v6802_v32, %s4567_s10 }
 0x543   : > { %v7233_v20 = vpop.permute.xlu2 %2993  ;;  %v7235_v2 = vpop.permute.xlu1 %2979 }
 0x544   : > { %8853 = vst [vmem:[#allocation83_spill] sm:$0xff] %v7235_v2  ;;  %3125 = vrot.lane.b32.xlu0 %v6780_v59, %s4567_s10 }
 0x546   : > { %v7239_v45 = vpop.permute.xlu0 %2977 }
 0x547   : > { %8854 = vst [vmem:[#allocation156_spill] sm:$0xff] %v7239_v45  ;;  %v8875_v45 = vld [vmem:[#allocation146_spill] sm:$0xff] }
 0x549   : > { %3129 = vrot.lane.b32.xlu2 %v6778_v3, %s4567_s10  ;;  %3133 = vrot.lane.b32.xlu1 %v6817_v16, %s4567_s10 }
 0x54b   : > { %v7245_v57 = vpop.permute.xlu2 %2999  ;;  %v7247_v41 = vpop.permute.xlu1 %2985 }
 0x54c   : > { %8855 = vst [vmem:[#allocation169_spill] sm:$0xff] %v7247_v41  ;;  %3131 = vrot.lane.b32.xlu0 %v6795_v14, %s4567_s10 }
 0x54e   : > { %v7251_v32 = vpop.permute.xlu0 %2983 }
 0x54f   : > { %8856 = vst [vmem:[#allocation170_spill] sm:$0xff] %v7251_v32 }
 0x551   : > { %3135 = vrot.lane.b32.xlu2 %v6793_v35, %s4567_s10  ;;  %3139 = vrot.lane.b32.xlu1 %v6828_v61, %s4567_s10 }
 0x553   : > { %v7257_v59 = vpop.permute.xlu2 %3005  ;;  %v7259_v3 = vpop.permute.xlu1 %2991 }
 0x554   : > { %3137 = vrot.lane.b32.xlu0 %v6810_v49, %s4567_s10 }
 0x556   : > { %v7263_v16 = vpop.permute.xlu0 %2989 }
 0x559   : > { %3141 = vrot.lane.b32.xlu2 %v6808_v30, %s4567_s10  ;;  %3145 = vrot.lane.b32.xlu1 %v6839_v37, %s4567_s10 }
 0x55b   : > { %v7269_v14 = vpop.permute.xlu2 %3011  ;;  %v7271_v35 = vpop.permute.xlu1 %2997 }
 0x55c   : > { %3143 = vrot.lane.b32.xlu0 %v6823_v29, %s4567_s10  ;;  %v7291_v29 = vld [vmem:[#allocation3 + $0x189] sm:$0xff] }
 0x55d   : > { %8857 = vst [vmem:[#allocation191_spill] sm:$0xff] %v7291_v29 }
 0x55e   : > { %v7275_v61 = vpop.permute.xlu0 %2995 }
 0x561   : > { %3147 = vrot.lane.b32.xlu2 %v6833_v52, %s4567_s10  ;;  %3151 = vrot.lane.b32.xlu1 %v7277_v50, %s4567_s10 }
 0x563   : > { %v7283_v30 = vpop.permute.xlu2 %3017  ;;  %v7285_v49 = vpop.permute.xlu1 %3003 }
 0x564   : > { %3149 = vrot.lane.b32.xlu0 %v6844_v63, %s4567_s10 }
 0x566   : > { %v7289_v37 = vpop.permute.xlu0 %3001 }
 0x569   : > { %3153 = vrot.lane.b32.xlu2 %v7291_v29, %s4567_s10  ;;  %3221 = vrot.lane.b32.xlu1 %v6864_v42, %s4568_s11  ;;  %v2579_v29 = vld [vmem:[#allocation3 + $0x30] sm:$0xff] }
 0x56b   : > { %v7297_v52 = vpop.permute.xlu2 %3023  ;;  %v7299_v22 = vpop.permute.xlu1 %3009 }
 0x56c   : > { %3219 = vrot.lane.b32.xlu0 %v6857_v6, %s4568_s11 }
 0x56e   : > { %v7303_v19 = vpop.permute.xlu0 %3007 }
 0x571   : > { %3223 = vrot.lane.b32.xlu2 %v6855_v7, %s4568_s11  ;;  %3227 = vrot.lane.b32.xlu1 %v6880_v46, %s4568_s11 }
 0x573   : > { %v7309_v63 = vpop.permute.xlu2 %3093  ;;  %v7311_v41 = vpop.permute.xlu1 %3015 }
 0x574   : > { %3225 = vrot.lane.b32.xlu0 %v6872_v12, %s4568_s11 }
 0x576   : > { %v7315_v42 = vpop.permute.xlu0 %3013 }
 0x579   : > { %3229 = vrot.lane.b32.xlu2 %v6870_v1, %s4568_s11  ;;  %3233 = vrot.lane.b32.xlu1 %v6894_v17, %s4568_s11 }
 0x57b   : > { %v7321_v6 = vpop.permute.xlu2 %3099  ;;  %v7323_v32 = vpop.permute.xlu1 %3021 }
 0x57c   : > { %3231 = vrot.lane.b32.xlu0 %v6888_v28, %s4568_s11 }
 0x57e   : > { %v7327_v46 = vpop.permute.xlu0 %3019 }
 0x57f   : > { %8858 = vst [vmem:[#allocation50_spill] sm:$0xff] %v7327_v46  ;;  %v3714_v46 = vsel %vm311_vm0, %v7065_v47, %v6968_v60  ;;  %v8869_v60 = vld [vmem:[#allocation95_spill] sm:$0xff] }
 0x581   : > { %3235 = vrot.lane.b32.xlu2 %v6886_v43, %s4568_s11  ;;  %3239 = vrot.lane.b32.xlu1 %v6910_v36, %s4568_s11 }
 0x583   : > { %v7333_v0 = vpop.permute.xlu2 %3105  ;;  %v7335_v1 = vpop.permute.xlu1 %3091 }
 0x584   : > { %8859 = vst [vmem:[#allocation51_spill] sm:$0xff] %v7333_v0  ;;  %3237 = vrot.lane.b32.xlu0 %v6904_v33, %s4568_s11  ;;  %v8871_v0 = vld [vmem:[#allocation147_spill] sm:$0xff] }
 0x586   : > { %v7339_v17 = vpop.permute.xlu0 %3025 }
 0x587   : > { %8860 = vst [vmem:[#allocation102_spill] sm:$0xff] %v7339_v17 }
 0x589   : > { %3241 = vrot.lane.b32.xlu2 %v6902_v31, %s4568_s11  ;;  %3245 = vrot.lane.b32.xlu1 %v6928_v58, %s4568_s11 }
 0x58b   : > { %v7345_v28 = vpop.permute.xlu2 %3111  ;;  %v7347_v43 = vpop.permute.xlu1 %3097 }
 0x58c   : > { %8861 = vst [vmem:[#allocation117_spill] sm:$0xff] %v7345_v28  ;;  %3243 = vrot.lane.b32.xlu0 %v6920_v10, %s4568_s11  ;;  %v8867_v28 = vld [vmem:[#allocation111_spill] sm:$0xff] }
 0x58e   : > { %v7351_v36 = vpop.permute.xlu0 %3095 }
 0x591   : > { %3247 = vrot.lane.b32.xlu2 %v6922_v34, %s4568_s11  ;;  %3251 = vrot.lane.b32.xlu1 %v6946_v62, %s4568_s11 }
 0x593   : > { %v7357_v33 = vpop.permute.xlu2 %3117  ;;  %v7359_v31 = vpop.permute.xlu1 %3103 }
 0x594   : > { %8862 = vst [vmem:[#allocation124_spill] sm:$0xff] %v7359_v31  ;;  %3249 = vrot.lane.b32.xlu0 %v6938_v26, %s4568_s11 }
 0x596   : > { %v7363_v58 = vpop.permute.xlu0 %3101 }
 0x599   : > { %3253 = vrot.lane.b32.xlu2 %v6940_v44, %s4568_s11  ;;  %3257 = vrot.lane.b32.xlu1 %v6964_v5, %s4568_s11 }
 0x59b   : > { %v7369_v10 = vpop.permute.xlu2 %3123  ;;  %v7371_v34 = vpop.permute.xlu1 %3109 }
 0x59c   : > { %8863 = vst [vmem:[#allocation137_spill] sm:$0xff] %v7371_v34  ;;  %3255 = vrot.lane.b32.xlu0 %v6956_v4, %s4568_s11  ;;  %v8868_v34 = vld [vmem:[#allocation93_spill] sm:$0xff] }
 0x59e   : > { %v7375_v62 = vpop.permute.xlu0 %3107 }
 0x59f   : > { %8864 = vst [vmem:[#allocation53_spill] sm:$0xff] %v7375_v62 }
 0x5a1   : > { %3259 = vrot.lane.b32.xlu2 %v6958_v9, %s4568_s11  ;;  %3263 = vrot.lane.b32.xlu1 %v6982_v55, %s4568_s11  ;;  %v3746_v55 = vsel %vm1745_vm2, %v3714_v46, %v7142_v54  ;;  %v8872_v54 = vld [vmem:[#allocation96_spill] sm:$0xff] }
 0x5a3   : > { %v7381_v26 = vpop.permute.xlu2 %3129  ;;  %v7383_v44 = vpop.permute.xlu1 %3115 }
 0x5a4   : > { %8865 = vst [vmem:[#allocation149_spill] sm:$0xff] %v7383_v44  ;;  %3261 = vrot.lane.b32.xlu0 %v6974_v18, %s4568_s11  ;;  %v3778_v44 = vsel %vm1778_vm3, %v3746_v55, %v7233_v20  ;;  %v8873_v20 = vld [vmem:[#allocation189_spill] sm:$0xff] }
 0x5a6   : > { %v7387_v17 = vpop.permute.xlu0 %3113 }
 0x5a7   : > { %8866 = vst [vmem:[#allocation103_spill] sm:$0xff] %v7387_v17 }
 0x5a9   : > { %3265 = vrot.lane.b32.xlu2 %v8867_v28, %s4568_s11  ;;  %3269 = vrot.lane.b32.xlu1 %v8868_v34, %s4568_s11  ;;  %v8870_v28 = vld [vmem:[#allocation37_spill] sm:$0xff] }
 0x5aa   : > { %v3717_v34 = vsel %vm311_vm0, %v8871_v0, %v8870_v28  ;;  %v8876_v28 = vld [vmem:[#allocation175_spill] sm:$0xff] }
 0x5ab   : > { %v7400_v62 = vpop.permute.xlu2 %3135  ;;  %v3122_v2 = vpop.permute.xlu1 %3121  ;;  %v3749_v46 = vsel %vm1745_vm2, %v3717_v34, %v7157_v39 }
 0x5ac   : > { %v7403_v17 = vsel %vm1811_vm5, %v3778_v44, %v3122_v2  ;;  %3267 = vrot.lane.b32.xlu0 %v8869_v60, %s4568_s11  ;;  %v3781_v2 = vsel %vm1778_vm3, %v3749_v46, %v7245_v57  ;;  %v8874_v60 = vld [vmem:[#allocation94_spill] sm:$0xff]  ;;  %v2627_v46 = vld [vmem:[#allocation3 + $0xf1] sm:$0xff] }
 0x5ad   : > { %v3716_v31 = vsel %vm311_vm0, %v8875_v45, %v8874_v60 }
 0x5ae   : > { %v7407_v47 = vpop.permute.xlu0 %3119 }
 0x5b1   : > { %3271 = vrot.lane.b32.xlu2 %v8872_v54, %s4568_s11  ;;  %3379 = vrot.lane.b32.xlu1 %v8873_v20, %s4569_s12  ;;  %v8877_v54 = vld [vmem:[#allocation63_spill] sm:$0xff] }
 0x5b2   : > { %v3748_v11 = vsel %vm1745_vm2, %v3716_v31, %v8877_v54  ;;  %v2580_v54 = vld [vmem:[#allocation3 + $0x38] sm:$0xff] }
 0x5b3   : > { %v7420_v44 = vpop.permute.xlu2 %3141  ;;  %v3128_v55 = vpop.permute.xlu1 %3127  ;;  %v3780_v39 = vsel %vm1778_vm3, %v3748_v11, %v7271_v35  ;;  %v2611_v11 = vld [vmem:[#allocation3 + $0x31] sm:$0xff] }
 0x5b4   : > { %v7426_v0 = vsel %vm1811_vm5, %v3781_v2, %v3128_v55  ;;  %3273 = vrot.lane.b32.xlu0 %v8876_v28, %s4568_s11  ;;  %v2628_v28 = vld [vmem:[#allocation3 + $0xf9] sm:$0xff] }
 0x5b6   : > { %v3126_v57 = vpop.permute.xlu0 %3125 }
 0x5b7   : > { %v7435_v34 = vsel %vm1811_vm5, %v3780_v39, %v3126_v57  ;;  %v8882_v39 = vld [vmem:[#allocation168_spill] sm:$0xff] }
 0x5b9   : > { %3507 = vrot.lane.b32.xlu2 %v2627_v46, %s4570_s13  ;;  %3347 = vrot.lane.b32.xlu1 %v2579_v29, %s4569_s12  ;;  %v8880_v29 = vld [vmem:[#allocation190_spill] sm:$0xff] }
 0x5bb   : > { %v7439_v45 = vpop.permute.xlu2 %3147  ;;  %v7441_v2 = vpop.permute.xlu1 %3133 }
 0x5bc   : > { %8878 = vst [vmem:[#allocation157_spill] sm:$0xff] %v7439_v45  ;;  %3635 = vrot.lane.b32.xlu0 %v6956_v4, %s4571_s14  ;;  %v8881_v4 = vld [vmem:[#allocation112_spill] sm:$0xff] }
 0x5bd   : > { %v3726_v57 = vsel %vm311_vm0, %v8882_v39, %v8881_v4  ;;  %v8883_v39 = vld [vmem:[#allocation145_spill] sm:$0xff] }
 0x5be   : > { %v7445_v31 = vpop.permute.xlu0 %3131 }
 0x5c1   : > { %3475 = vrot.lane.b32.xlu2 %v2611_v11, %s4570_s13  ;;  %3603 = vrot.lane.b32.xlu1 %v6855_v7, %s4571_s14  ;;  %v3758_v7 = vsel %vm1745_vm2, %v3726_v57, %v7191_v53  ;;  %v8885_v57 = vld [vmem:[#allocation78_spill] sm:$0xff] }
 0x5c2   : > { %v3790_v46 = vsel %vm1778_vm3, %v3758_v7, %v7283_v30  ;;  %v8886_v7 = vld [vmem:[#allocation49_spill] sm:$0xff] }
 0x5c3   : > { %v7450_v35 = vpop.permute.xlu2 %3153  ;;  %v7452_v55 = vpop.permute.xlu1 %3139 }
 0x5c4   : > { %8879 = vst [vmem:[#allocation164_spill] sm:$0xff] %v7450_v35  ;;  %3381 = vrot.lane.b32.xlu0 %v8880_v29, %s4569_s12 }
 0x5c6   : > { %v7456_v60 = vpop.permute.xlu0 %3137 }
 0x5c9   : > { %3509 = vrot.lane.b32.xlu2 %v2628_v28, %s4570_s13  ;;  %3349 = vrot.lane.b32.xlu1 %v2580_v54, %s4569_s12  ;;  %v2612_v28 = vld [vmem:[#allocation3 + $0x39] sm:$0xff]  ;;  %v3729_v54 = vsel %vm311_vm0, %v7149_v24, %v8883_v39 }
 0x5ca   : > { %v3761_v53 = vsel %vm1745_vm2, %v3729_v54, %v7203_v27  ;;  %v2629_v54 = vld [vmem:[#allocation3 + $0x109] sm:$0xff] }
 0x5cb   : > { %v7467_v11 = vpop.permute.xlu2 %3223  ;;  %v3146_v35 = vpop.permute.xlu1 %3145  ;;  %v3793_v30 = vsel %vm1778_vm3, %v3761_v53, %v7297_v52  ;;  %v2581_v53 = vld [vmem:[#allocation3 + $0x48] sm:$0xff] }
 0x5cc   : > { %v7470_v45 = vsel %vm1811_vm5, %v3790_v46, %v3146_v35  ;;  %3637 = vrot.lane.b32.xlu0 %v6964_v5, %s4571_s14  ;;  %v3728_v46 = vsel %vm311_vm0, %v8886_v7, %v8885_v57  ;;  %v2645_v57 = vld [vmem:[#allocation3 + $0x4a] sm:$0xff] }
 0x5ce   : > { %v7474_v4 = vpop.permute.xlu0 %3143 }
 0x5d1   : > { %3477 = vrot.lane.b32.xlu2 %v2612_v28, %s4570_s13  ;;  %3605 = vrot.lane.b32.xlu1 %v6872_v12, %s4571_s14  ;;  %v8888_v28 = vld [vmem:[#allocation176_spill] sm:$0xff]  ;;  %v3760_v12 = vsel %vm1745_vm2, %v3728_v46, %v7162_v25 }
 0x5d2   : > { %v3792_v27 = vsel %vm1778_vm3, %v3760_v12, %v7323_v32  ;;  %v2613_v32 = vld [vmem:[#allocation3 + $0x49] sm:$0xff] }
 0x5d3   : > { %v7486_v35 = vpop.permute.xlu2 %3229  ;;  %v3152_v5 = vpop.permute.xlu1 %3151  ;;  %v8892_v12 = vld [vmem:[#allocation127_spill] sm:$0xff] }
 0x5d4   : > { %8884 = vst [vmem:[#allocation179_spill] sm:$0xff] %v7486_v35  ;;  %v7492_v24 = vsel %vm1811_vm5, %v3793_v30, %v3152_v5  ;;  %3383 = vrot.lane.b32.xlu0 %v8888_v28, %s4569_s12 }
 0x5d5   : > { %8887 = vst [vmem:[#allocation192_spill] sm:$0xff] %v7492_v24  ;;  %v2582_v24 = vld [vmem:[#allocation3 + $0x50] sm:$0xff] }
 0x5d6   : > { %v3150_v52 = vpop.permute.xlu0 %3149 }
 0x5d7   : > { %v7501_v39 = vsel %vm1811_vm5, %v3792_v27, %v3150_v52  ;;  %v8893_v52 = vld [vmem:[#allocation57_spill] sm:$0xff] }
 0x5d8   : > { %8889 = vst [vmem:[#allocation193_spill] sm:$0xff] %v7501_v39  ;;  %v8895_v39 = vld [vmem:[#allocation155_spill] sm:$0xff] }
 0x5d9   : > { %3511 = vrot.lane.b32.xlu2 %v2629_v54, %s4570_s13  ;;  %3351 = vrot.lane.b32.xlu1 %v2581_v53, %s4569_s12  ;;  %v8894_v54 = vld [vmem:[#allocation48_spill] sm:$0xff] }
 0x5da   : > { %v2630_v53 = vld [vmem:[#allocation3 + $0x111] sm:$0xff] }
 0x5db   : > { %v7505_v30 = vpop.permute.xlu2 %3235  ;;  %v7507_v5 = vpop.permute.xlu1 %3221 }
 0x5dc   : > { %8890 = vst [vmem:[#allocation41_spill] sm:$0xff] %v7505_v30  ;;  %3639 = vrot.lane.b32.xlu0 %v6958_v9, %s4571_s14  ;;  %v3713_v9 = vsel %vm311_vm0, %v8894_v54, %v8893_v52  ;;  %v2614_v54 = vld [vmem:[#allocation3 + $0x51] sm:$0xff] }
 0x5de   : > { %v7511_v25 = vpop.permute.xlu0 %3219 }
 0x5e1   : > { %3479 = vrot.lane.b32.xlu2 %v2613_v32, %s4570_s13  ;;  %3607 = vrot.lane.b32.xlu1 %v2645_v57, %s4571_s14  ;;  %v3745_v32 = vsel %vm1745_vm2, %v3713_v9, %v8895_v39  ;;  %v2646_v9 = vld [vmem:[#allocation3 + $0x52] sm:$0xff] }
 0x5e2   : > { %v3777_v57 = vsel %vm1778_vm3, %v3745_v32, %v7259_v3  ;;  %v8904_v32 = vld [vmem:[#allocation196_spill] sm:$0xff] }
 0x5e3   : > { %v7515_v7 = vpop.permute.xlu2 %3241  ;;  %v7517_v46 = vpop.permute.xlu1 %3227 }
 0x5e4   : > { %8891 = vst [vmem:[#allocation66_spill] sm:$0xff] %v7515_v7  ;;  %3385 = vrot.lane.b32.xlu0 %v8892_v12, %s4569_s12  ;;  %v3809_v7 = vsel %vm1811_vm5, %v3777_v57, %v7407_v47  ;;  %v3719_v57 = vsel %vm311_vm0, %v8873_v20, %v8904_v32 }
 0x5e6   : > { %v7521_v27 = vpop.permute.xlu0 %3225 }
 0x5e9   : > { %3513 = vrot.lane.b32.xlu2 %v2630_v53, %s4570_s13  ;;  %3353 = vrot.lane.b32.xlu1 %v2582_v24, %s4569_s12  ;;  %v8900_v24 = vld [vmem:[#allocation136_spill] sm:$0xff]  ;;  %v8903_v53 = vld [vmem:[#allocation153_spill] sm:$0xff] }
 0x5eb   : > { %v3248_v30 = vpop.permute.xlu2 %3247  ;;  %v7534_v35 = vpop.permute.xlu1 %3233 }
 0x5ec   : > { %8896 = vst [vmem:[#allocation106_spill] sm:$0xff] %v7534_v35  ;;  %v7537_v52 = vsel %vm1844_vm4, %v3809_v7, %v3248_v30  ;;  %3641 = vrot.lane.b32.xlu0 %v6974_v18, %s4571_s14  ;;  %v8902_v7 = vld [vmem:[#allocation86_spill] sm:$0xff] }
 0x5ed   : > { %8897 = vst [vmem:[#allocation107_spill] sm:$0xff] %v7537_v52  ;;  %v3712_v18 = vsel %vm311_vm0, %v8903_v53, %v8902_v7  ;;  %v2583_v52 = vld [vmem:[#allocation3 + $0x60] sm:$0xff] }
 0x5ee   : > { %v7541_v39 = vpop.permute.xlu0 %3231 }
 0x5ef   : > { %8898 = vst [vmem:[#allocation130_spill] sm:$0xff] %v7541_v39  ;;  %v8906_v39 = vld [vmem:[#allocation151_spill] sm:$0xff] }
 0x5f1   : > { %3481 = vrot.lane.b32.xlu2 %v2614_v54, %s4570_s13  ;;  %3609 = vrot.lane.b32.xlu1 %v2646_v9, %s4571_s14  ;;  %v2631_v54 = vld [vmem:[#allocation3 + $0x121] sm:$0xff] }
 0x5f2   : > { %v8905_v9 = vld [vmem:[#allocation143_spill] sm:$0xff] }
 0x5f3   : > { %v7545_v3 = vpop.permute.xlu2 %3253  ;;  %v7547_v47 = vpop.permute.xlu1 %3239  ;;  %v3744_v35 = vsel %vm1745_vm2, %v3712_v18, %v8905_v9  ;;  %v2663_v9 = vld [vmem:[#allocation3 + $0x122] sm:$0xff] }
 0x5f4   : > { %8899 = vst [vmem:[#allocation138_spill] sm:$0xff] %v7547_v47  ;;  %3387 = vrot.lane.b32.xlu0 %v8900_v24, %s4569_s12  ;;  %v3751_v47 = vsel %vm1745_vm2, %v3719_v57, %v8906_v39  ;;  %v8908_v57 = vld [vmem:[#allocation178_spill] sm:$0xff] }
 0x5f5   : > { %v3783_v7 = vsel %vm1778_vm3, %v3751_v47, %v7285_v49  ;;  %v3963_v49 = vld [vmem:[%s8282_s4 + $0x40] sm:$0xff]  ;;  %v2615_v47 = vld [vmem:[#allocation3 + $0x61] sm:$0xff] }
 0x5f6   : > { %v7551_v30 = vpop.permute.xlu0 %3237  ;;  %v3815_v53 = vsel %vm1811_vm5, %v3783_v7, %v7445_v31  ;;  %v8907_v31 = vld [vmem:[#allocation79_spill] sm:$0xff]  ;;  %4482 = vmatpush.msra.mxu3 %v3963_v49  ;;  %4067 = vmatpush.msra.mxu1 %v3963_v49  ;;  %v3961_v7 = vld [vmem:[%s8282_s4 + $0x30] sm:$0xff]  ;;  %v3960_v49 = vld [vmem:[%s8282_s4 + $0x28] sm:$0xff] }
 0x5f7   : > { %8901 = vst [vmem:[#allocation144_spill] sm:$0xff] %v7551_v30  ;;  %v3776_v30 = vsel %vm1778_vm3, %v3744_v35, %v7263_v16  ;;  %v3722_v35 = vsel %vm311_vm0, %v8892_v12, %v8907_v31  ;;  %v3958_v31 = vld [vmem:[%s8282_s4 + $0x18] sm:$0xff] }
 0x5f8   : > { %v3808_v20 = vsel %vm1811_vm5, %v3776_v30, %v7357_v33  ;;  %v3962_v33 = vld [vmem:[%s8282_s4 + $0x38] sm:$0xff] }
 0x5f9   : > { %3515 = vrot.lane.b32.xlu2 %v2631_v54, %s4570_s13  ;;  %3355 = vrot.lane.b32.xlu1 %v2583_v52, %s4569_s12  ;;  %v2647_v30 = vld [vmem:[#allocation3 + $0x62] sm:$0xff]  ;;  %v3754_v54 = vsel %vm1745_vm2, %v3722_v35, %v8908_v57  ;;  %v8909_v35 = vld [vmem:[#allocation108_spill] sm:$0xff] }
 0x5fa   : > { %4483 = vmatpush.msra.mxu3 %v3962_v33  ;;  %4068 = vmatpush.msra.mxu1 %v3962_v33  ;;  %v3959_v33 = vld [vmem:[%s8282_s4 + $0x20] sm:$0xff]  ;;  %v8911_v57 = vld [vmem:[#allocation126_spill] sm:$0xff] }
 0x5fb   : > { %v3260_v18 = vpop.permute.xlu2 %3259  ;;  %v3246_v32 = vpop.permute.xlu1 %3245 }
 0x5fc   : > { %v7574_v39 = vsel %vm1844_vm4, %v3815_v53, %v3260_v18  ;;  %v7577_v52 = vsel %vm1844_vm4, %v3808_v20, %v3246_v32  ;;  %3643 = vrot.lane.b32.xlu0 %v2663_v9, %s4571_s14  ;;  %v3786_v20 = vsel %vm1778_vm3, %v3754_v54, %v7299_v22  ;;  %v2600_v32 = vld [vmem:[#allocation3 + $0x128] sm:$0xff]  ;;  %4484 = vmatpush.msra.mxu3 %v3961_v7 }
 0x5fd   : > { %v3818_v12 = vsel %vm1811_vm5, %v3786_v20, %v7456_v60  ;;  %4069 = vmatpush.msra.mxu1 %v3961_v7  ;;  %v8912_v54 = vld [vmem:[#allocation99_spill] sm:$0xff] }
 0x5fe   : > { %v7580_v16 = vpop.permute.xlu0 %3243  ;;  %4485 = vmatpush.msra.mxu3 %v3960_v49  ;;  %v3725_v7 = vsel %vm311_vm0, %v8912_v54, %v8911_v57  ;;  %v2632_v20 = vld [vmem:[#allocation3 + $0x129] sm:$0xff] }
 0x5ff   : > { %4070 = vmatpush.msra.mxu1 %v3960_v49  ;;  %v3957_v49 = vld [vmem:[%s8282_s4 + $0x10] sm:$0xff] }
 0x600   : > { %4486 = vmatpush.msra.mxu3 %v3959_v33 }
 0x601   : > { %3483 = vrot.lane.b32.xlu2 %v2615_v47, %s4570_s13  ;;  %3611 = vrot.lane.b32.xlu1 %v2647_v30, %s4571_s14  ;;  %v8910_v47 = vld [vmem:[#allocation134_spill] sm:$0xff] }
 0x602   : > { %v3718_v30 = vsel %vm311_vm0, %v8910_v47, %v8909_v35  ;;  %4487 = vmatpush.msra.mxu3 %v3958_v31  ;;  %4071 = vmatpush.msra.mxu1 %v3959_v33 }
 0x603   : > { %v3266_v53 = vpop.permute.xlu2 %3265  ;;  %v7602_v18 = vpop.permute.xlu1 %3251 }
 0x604   : > { %v7605_v9 = vsel %vm1844_vm4, %v3818_v12, %v3266_v53  ;;  %3389 = vrot.lane.b32.xlu0 %v2600_v32, %s4569_s12  ;;  %v8913_v12 = vld [vmem:[#allocation65_spill] sm:$0xff]  ;;  %v8914_v32 = vld [vmem:[#allocation84_spill] sm:$0xff]  ;;  %4488 = vmatpush.msra.mxu3 %v3957_v49 }
 0x605   : > { %v3757_v53 = vsel %vm1745_vm2, %v3725_v7, %v8913_v12  ;;  %4072 = vmatpush.msra.mxu1 %v3958_v31 }
 0x606   : > { %v3250_v22 = vpop.permute.xlu0 %3249  ;;  %v3789_v47 = vsel %vm1778_vm3, %v3757_v53, %v7311_v41  ;;  %v3956_v41 = vld [vmem:[%s8282_s4 + $0x8] sm:$0xff]  ;;  %v2616_v53 = vld [vmem:[#allocation3 + $0x69] sm:$0xff] }
 0x607   : > { %v7613_v60 = vsel %vm1844_vm4, %v7403_v17, %v3250_v22  ;;  %v2584_v17 = vld [vmem:[#allocation3 + $0x68] sm:$0xff]  ;;  %v3750_v22 = vsel %vm1745_vm2, %v3718_v30, %v8914_v32  ;;  %v3821_v30 = vsel %vm1811_vm5, %v3789_v47, %v7474_v4  ;;  %4489 = vmatpush.msra.mxu3 %v3956_v41  ;;  %4073 = vmatpush.msra.mxu1 %v3957_v49  ;;  %v8915_v4 = vld [vmem:[#allocation92_spill] sm:$0xff]  ;;  %v8916_v47 = vld [vmem:[#allocation165_spill] sm:$0xff] }
 0x608   : > { %v3782_v35 = vsel %vm1778_vm3, %v3750_v22, %v7289_v37  ;;  %v3721_v33 = vsel %vm311_vm0, %v8888_v28, %v8915_v4  ;;  %v2648_v22 = vld [vmem:[#allocation3 + $0x6a] sm:$0xff]  ;;  %v3720_v49 = vsel %vm311_vm0, %v8880_v29, %v8916_v47  ;;  %v2633_v4 = vld [vmem:[#allocation3 + $0x139] sm:$0xff] }
 0x609   : > { %3517 = vrot.lane.b32.xlu2 %v2632_v20, %s4570_s13  ;;  %3357 = vrot.lane.b32.xlu1 %v2584_v17, %s4569_s12  ;;  %v3814_v57 = vsel %vm1811_vm5, %v3782_v35, %v7381_v26  ;;  %v2664_v17 = vld [vmem:[#allocation3 + $0x12a] sm:$0xff]  ;;  %v3753_v35 = vsel %vm1745_vm2, %v3721_v33, %v7164_v15  ;;  %v3752_v15 = vsel %vm1745_vm2, %v3720_v49, %v7167_v23  ;;  %v2585_v33 = vld [vmem:[#allocation3 + $0x78] sm:$0xff] }
 0x60a   : > { %v3955_v26 = vld [vmem:[%s8282_s4] sm:$0xff]  ;;  %v3785_v31 = vsel %vm1778_vm3, %v3753_v35, %v7303_v19  ;;  %4074 = vmatpush.msra.mxu1 %v3956_v41  ;;  %v3784_v19 = vsel %vm1778_vm3, %v3752_v15, %v7257_v59  ;;  %v8918_v41 = vld [vmem:[#allocation101_spill] sm:$0xff] }
 0x60b   : > { %v3272_v7 = vpop.permute.xlu2 %3271  ;;  %v3258_v20 = vpop.permute.xlu1 %3257  ;;  %4490 = vmatpush.msra.mxu3 %v3955_v26  ;;  %v3817_v28 = vsel %vm1811_vm5, %v3785_v31, %v7400_v62  ;;  %v3816_v29 = vsel %vm1811_vm5, %v3784_v19, %v7441_v2  ;;  %v8919_v2 = vld [vmem:[#allocation46_spill] sm:$0xff] }
 0x60c   : > { %v7645_v12 = vsel %vm1844_vm4, %v3821_v30, %v3272_v7  ;;  %v7648_v32 = vsel %vm1844_vm4, %v3814_v57, %v3258_v20  ;;  %3645 = vrot.lane.b32.xlu0 %v2664_v17, %s4571_s14  ;;  %4075 = vmatpush.msra.mxu1 %v3955_v26  ;;  %v8917_v17 = vld [vmem:[#allocation54_spill] sm:$0xff]  ;;  %v3723_v26 = vsel %vm311_vm0, %v8900_v24, %v8919_v2 }
 0x60d   : > { %v3724_v23 = vsel %vm311_vm0, %v8918_v41, %v8917_v17  ;;  %v2665_v31 = vld [vmem:[#allocation3 + $0x13a] sm:$0xff] }
 0x60e   : > { %v7654_v37 = vpop.permute.xlu0 %3255  ;;  %v2602_v19 = vld [vmem:[#allocation3 + $0x140] sm:$0xff] }
 0x60f   : > { %v8922_v17 = vld [vmem:[#allocation186_spill] sm:$0xff] }
 0x611   : > { %3485 = vrot.lane.b32.xlu2 %v2616_v53, %s4570_s13  ;;  %3613 = vrot.lane.b32.xlu1 %v2648_v22, %s4571_s14 }
 0x613   : > { %v3508_v57 = vpop.permute.xlu2 %3507  ;;  %v3264_v30 = vpop.permute.xlu1 %3263 }
 0x614   : > { %v7676_v7 = vsel %vm1844_vm4, %v3817_v28, %v3264_v30  ;;  %3391 = vrot.lane.b32.xlu0 %v8912_v54, %s4569_s12  ;;  %v3756_v54 = vsel %vm1745_vm2, %v3724_v23, %v7175_v21  ;;  %v3755_v21 = vsel %vm1745_vm2, %v3723_v26, %v7179_v40  ;;  %v2617_v28 = vld [vmem:[#allocation3 + $0x79] sm:$0xff] }
 0x615   : > { %v3788_v59 = vsel %vm1778_vm3, %v3756_v54, %v7315_v42  ;;  %v3787_v42 = vsel %vm1778_vm3, %v3755_v21, %v7269_v14  ;;  %v2649_v30 = vld [vmem:[#allocation3 + $0x7a] sm:$0xff]  ;;  %v8921_v14 = vld [vmem:[#allocation47_spill] sm:$0xff] }
 0x616   : > { %v3262_v20 = vpop.permute.xlu0 %3261  ;;  %v3820_v53 = vsel %vm1811_vm5, %v3788_v59, %v7420_v44  ;;  %v3819_v24 = vsel %vm1811_vm5, %v3787_v42, %v7452_v55  ;;  %v2634_v54 = vld [vmem:[#allocation3 + $0x141] sm:$0xff]  ;;  %v8924_v42 = vld [vmem:[#allocation188_spill] sm:$0xff] }
 0x617   : > { %v7685_v62 = vsel %vm1844_vm4, %v3816_v29, %v3262_v20  ;;  %v8920_v29 = vld [vmem:[#allocation43_spill] sm:$0xff]  ;;  %v2586_v59 = vld [vmem:[#allocation3 + $0x80] sm:$0xff] }
 0x618   : > { %v3715_v20 = vsel %vm311_vm0, %v8921_v14, %v8920_v29  ;;  %v2618_v29 = vld [vmem:[#allocation3 + $0x81] sm:$0xff] }
 0x619   : > { %3519 = vrot.lane.b32.xlu2 %v2633_v4, %s4570_s13  ;;  %3359 = vrot.lane.b32.xlu1 %v2585_v33, %s4569_s12  ;;  %v3747_v41 = vsel %vm1745_vm2, %v3715_v20, %v8922_v17  ;;  %v2386_v4 = vld [vmem:[#allocation3] sm:$0xff]  ;;  %v2603_v20 = vld [vmem:[#allocation3 + $0x150] sm:$0xff]  ;;  %v2387_v17 = vld [vmem:[#allocation3 + $0x8] sm:$0xff] }
 0x61a   : > { %v3779_v33 = vsel %vm1778_vm3, %v3747_v41, %v7275_v61  ;;  %v2666_v61 = vld [vmem:[#allocation3 + $0x142] sm:$0xff]  ;;  %v2635_v41 = vld [vmem:[#allocation3 + $0x151] sm:$0xff] }
 0x61b   : > { %v3476_v22 = vpop.permute.xlu2 %3475  ;;  %v3270_v35 = vpop.permute.xlu1 %3269  ;;  %v3811_v2 = vsel %vm1811_vm5, %v3779_v33, %v7369_v10  ;;  %v2650_v14 = vld [vmem:[#allocation3 + $0x82] sm:$0xff]  ;;  %v3844_v33 = vsel %vm1844_vm4, %v7435_v34, %v7545_v3 }
 0x61c   : > { %v7704_v47 = vsel %vm1844_vm4, %v3820_v53, %v3270_v35  ;;  %3647 = vrot.lane.b32.xlu0 %v2665_v31, %s4571_s14  ;;  %v3843_v26 = vsel %vm1844_vm4, %v3811_v2, %v7602_v18  ;;  %v8923_v53 = vld [vmem:[#allocation38_spill] sm:$0xff] }
 0x61e   : > { %v3268_v49 = vpop.permute.xlu0 %3267 }
 0x61f   : > { %v7712_v44 = vsel %vm1844_vm4, %v3819_v24, %v3268_v49 }
 0x621   : > { %3487 = vrot.lane.b32.xlu2 %v2617_v28, %s4570_s13  ;;  %3615 = vrot.lane.b32.xlu1 %v2649_v30, %s4571_s14 }
 0x623   : > { %v3510_v40 = vpop.permute.xlu2 %3509  ;;  %v3380_v15 = vpop.permute.xlu1 %3379 }
 0x624   : > { %3393 = vrot.lane.b32.xlu0 %v2602_v19, %s4569_s12  ;;  %v3875_v35 = vsel %vm1877_vm6, %v3843_v26, %v3380_v15 }
 0x625   : > { %v3907_v28 = vsel %vm1910_vm8, %v3875_v35, %v3508_v57 }
 0x626   : > { %v3274_v55 = vpop.permute.xlu0 %3273 }
 0x627   : > { %v7724_v23 = vsel %vm1844_vm4, %v7470_v45, %v3274_v55  ;;  %v3699_v45 = vsel %vm311_vm0, %v2386_v4, %v8923_v53  ;;  %v2587_v4 = vld [vmem:[#allocation3 + $0x90] sm:$0xff] }
 0x628   : > { %v3731_v24 = vsel %vm1745_vm2, %v3699_v45, %v8924_v42  ;;  %v2667_v53 = vld [vmem:[#allocation3 + $0x152] sm:$0xff]  ;;  %v8926_v45 = vld [vmem:[#allocation166_spill] sm:$0xff] }
 0x629   : > { %3521 = vrot.lane.b32.xlu2 %v2634_v54, %s4570_s13  ;;  %3361 = vrot.lane.b32.xlu1 %v2586_v59, %s4569_s12  ;;  %v3763_v10 = vsel %vm1778_vm3, %v3731_v24, %v7173_v56  ;;  %v8925_v54 = vld [vmem:[#allocation40_spill] sm:$0xff] }
 0x62a   : > { %v3795_v49 = vsel %vm1811_vm5, %v3763_v10, %v7335_v1 }
 0x62b   : > { %v3478_v31 = vpop.permute.xlu2 %3477  ;;  %v3348_v21 = vpop.permute.xlu1 %3347  ;;  %v3827_v30 = vsel %vm1844_vm4, %v3795_v49, %v7511_v25  ;;  %v2619_v49 = vld [vmem:[#allocation3 + $0x91] sm:$0xff] }
 0x62c   : > { %3649 = vrot.lane.b32.xlu0 %v2666_v61, %s4571_s14  ;;  %v3859_v19 = vsel %vm1877_vm6, %v3827_v30, %v3348_v21 }
 0x62d   : > { %v3891_v57 = vsel %vm1910_vm8, %v3859_v19, %v3476_v22  ;;  %v3700_v22 = vsel %vm311_vm0, %v2387_v17, %v8925_v54  ;;  %v2588_v19 = vld [vmem:[#allocation3 + $0x98] sm:$0xff] }
 0x62e   : > { %v3636_v18 = vpop.permute.xlu0 %3635  ;;  %v3732_v35 = vsel %vm1745_vm2, %v3700_v22, %v8926_v45  ;;  %v8928_v17 = vld [vmem:[#allocation125_spill] sm:$0xff]  ;;  %v2605_v45 = vld [vmem:[#allocation3 + $0x168] sm:$0xff] }
 0x62f   : > { %v3939_v15 = vsel %vm1943_vm7, %v3907_v28, %v3636_v18  ;;  %v3764_v21 = vsel %vm1778_vm3, %v3732_v35, %v7215_v13  ;;  %v2651_v18 = vld [vmem:[#allocation3 + $0x92] sm:$0xff] }
 0x630   : > { %4453 = vmatmul.msk.f32.vlgmr.msra.gmra.mxu3 %vm1985_vm9, %v3939_v15  ;;  %v3796_v61 = vsel %vm1811_vm5, %v3764_v21, %v7309_v63  ;;  %v2604_v28 = vld [vmem:[#allocation3 + $0x158] sm:$0xff]  ;;  %v2637_v21 = vld [vmem:[#allocation3 + $0x169] sm:$0xff] }
 0x631   : > { %3489 = vrot.lane.b32.xlu2 %v2618_v29, %s4570_s13  ;;  %3617 = vrot.lane.b32.xlu1 %v2650_v14, %s4571_s14  ;;  %v3828_v42 = vsel %vm1844_vm4, %v3796_v61, %v7507_v5  ;;  %v2636_v15 = vld [vmem:[#allocation3 + $0x159] sm:$0xff]  ;;  %v3845_v29 = vsel %vm1844_vm4, %v7426_v0, %v7654_v37  ;;  %v2589_v61 = vld [vmem:[#allocation3 + $0xa8] sm:$0xff] }
 0x632   : > { %v4542_v14 = vld [vmem:[#allocation3 + $0x18] sm:$0xff] }
 0x633   : > { %v3512_v56 = vpop.permute.xlu2 %3511  ;;  %v3604_v1 = vpop.permute.xlu1 %3603 }
 0x634   : > { %3395 = vrot.lane.b32.xlu0 %v2603_v20, %s4569_s12  ;;  %v3923_v25 = vsel %vm1943_vm7, %v3891_v57, %v3604_v1  ;;  %v8927_v1 = vld [vmem:[#allocation35_spill] sm:$0xff] }
 0x635   : > { %4437 = vmatmul.msk.f32.vlgmr.msra.gmra.mxu1 %vm1985_vm9, %v3923_v25 }
 0x636   : > { %v3382_v55 = vpop.permute.xlu0 %3381 }
 0x637   : > { %v3876_v59 = vsel %vm1877_vm6, %v3844_v33, %v3382_v55  ;;  %v2668_v55 = vld [vmem:[#allocation3 + $0x15a] sm:$0xff] }
 0x638   : > { %v3908_v3 = vsel %vm1910_vm8, %v3876_v59, %v3510_v40 }
 0x639   : > { %3523 = vrot.lane.b32.xlu2 %v2635_v41, %s4570_s13  ;;  %3363 = vrot.lane.b32.xlu1 %v2587_v4, %s4569_s12 }
 0x63b   : > { %v3480_v2 = vpop.permute.xlu2 %3479  ;;  %v3350_v26 = vpop.permute.xlu1 %3349 }
 0x63c   : > { %3651 = vrot.lane.b32.xlu0 %v2667_v53, %s4571_s14  ;;  %v3860_v10 = vsel %vm1877_vm6, %v3828_v42, %v3350_v26  ;;  %v2620_v26 = vld [vmem:[#allocation3 + $0x99] sm:$0xff] }
 0x63d   : > { %v3892_v40 = vsel %vm1910_vm8, %v3860_v10, %v3478_v31  ;;  %v3701_v31 = vsel %vm311_vm0, %v4542_v14, %v8927_v1  ;;  %v2652_v53 = vld [vmem:[#allocation3 + $0x9a] sm:$0xff]  ;;  %v2653_v14 = vld [vmem:[#allocation3 + $0xaa] sm:$0xff] }
 0x63e   : > { %v3638_v34 = vpop.permute.xlu0 %3637  ;;  %v3733_v41 = vsel %vm1745_vm2, %v3701_v31, %v8928_v17  ;;  %v2606_v1 = vld [vmem:[#allocation3 + $0x170] sm:$0xff]  ;;  %v8931_v17 = vld [vmem:[#allocation81_spill] sm:$0xff] }
 0x63f   : > { %v3940_v24 = vsel %vm1943_vm7, %v3908_v3, %v3638_v34  ;;  %v3765_v4 = vsel %vm1778_vm3, %v3733_v41, %v7211_v38  ;;  %v4543_v34 = vld [vmem:[#allocation3 + $0x20] sm:$0xff] }
 0x640   : > { %4454 = vmatmul.msk.f32.gmra.mxu3 %vm1985_vm9, %v3940_v24  ;;  %v3797_v0 = vsel %vm1811_vm5, %v3765_v4, %v7351_v36  ;;  %v8929_v3 = vld [vmem:[#allocation42_spill] sm:$0xff] }
 0x641   : > { %3491 = vrot.lane.b32.xlu2 %v2619_v49, %s4570_s13  ;;  %3619 = vrot.lane.b32.xlu1 %v2651_v18, %s4571_s14  ;;  %v3829_v54 = vsel %vm1844_vm4, %v3797_v0, %v7467_v11  ;;  %v3702_v42 = vsel %vm311_vm0, %v4543_v34, %v8929_v3  ;;  %v2669_v49 = vld [vmem:[#allocation3 + $0x16a] sm:$0xff]  ;;  %v4545_v34 = vld [vmem:[#allocation3 + $0x38] sm:$0xff] }
 0x642   : > { %v8930_v18 = vld [vmem:[#allocation123_spill] sm:$0xff]  ;;  %v8933_v3 = vld [vmem:[#allocation56_spill] sm:$0xff] }
 0x643   : > { %v3514_v13 = vpop.permute.xlu2 %3513  ;;  %v3606_v63 = vpop.permute.xlu1 %3605 }
 0x644   : > { %3397 = vrot.lane.b32.xlu0 %v2604_v28, %s4569_s12  ;;  %v3924_v5 = vsel %vm1943_vm7, %v3892_v40, %v3606_v63  ;;  %v3734_v63 = vsel %vm1745_vm2, %v3702_v42, %v8930_v18  ;;  %v3704_v42 = vsel %vm311_vm0, %v4545_v34, %v8933_v3 }
 0x645   : > { %4438 = vmatmul.msk.f32.gmra.mxu1 %vm1985_vm9, %v3924_v5  ;;  %v3766_v28 = vsel %vm1778_vm3, %v3734_v63, %v7185_v48 }
 0x646   : > { %v3384_v30 = vpop.permute.xlu0 %3383  ;;  %v3798_v40 = vsel %vm1811_vm5, %v3766_v28, %v7347_v43 }
 0x647   : > { %v3877_v20 = vsel %vm1877_vm6, %v3845_v29, %v3384_v30  ;;  %v2621_v29 = vld [vmem:[#allocation3 + $0xa9] sm:$0xff] }
 0x648   : > { %v3909_v33 = vsel %vm1910_vm8, %v3877_v20, %v3512_v56  ;;  %v2638_v20 = vld [vmem:[#allocation3 + $0x171] sm:$0xff] }
 0x649   : > { %3525 = vrot.lane.b32.xlu2 %v2636_v15, %s4570_s13  ;;  %3365 = vrot.lane.b32.xlu1 %v2588_v19, %s4569_s12 }
 0x64b   : > { %v3482_v57 = vpop.permute.xlu2 %3481  ;;  %v3352_v25 = vpop.permute.xlu1 %3351 }
 0x64c   : > { %3653 = vrot.lane.b32.xlu0 %v2668_v55, %s4571_s14  ;;  %v3861_v59 = vsel %vm1877_vm6, %v3829_v54, %v3352_v25  ;;  %v2590_v25 = vld [vmem:[#allocation3 + $0xb0] sm:$0xff] }
 0x64d   : > { %v3893_v56 = vsel %vm1910_vm8, %v3861_v59, %v3480_v2  ;;  %v4544_v55 = vld [vmem:[#allocation3 + $0x30] sm:$0xff] }
 0x64e   : > { %v3640_v37 = vpop.permute.xlu0 %3639  ;;  %v3703_v41 = vsel %vm311_vm0, %v4544_v55, %v8931_v17  ;;  %v2655_v17 = vld [vmem:[#allocation3 + $0xc2] sm:$0xff] }
 0x64f   : > { %v3941_v22 = vsel %vm1943_vm7, %v3909_v33, %v3640_v37  ;;  %v2670_v37 = vld [vmem:[#allocation3 + $0x172] sm:$0xff] }
 0x650   : > { %4455 = vmatmul.msk.f32.gmra.mxu3 %vm1985_vm9, %v3941_v22  ;;  %v8932_v33 = vld [vmem:[#allocation97_spill] sm:$0xff] }
 0x651   : > { %3493 = vrot.lane.b32.xlu2 %v2620_v26, %s4570_s13  ;;  %3621 = vrot.lane.b32.xlu1 %v2652_v53, %s4571_s14  ;;  %v3735_v54 = vsel %vm1745_vm2, %v3703_v41, %v8932_v33  ;;  %v8938_v41 = vld [vmem:[#allocation163_spill] sm:$0xff] }
 0x652   : > { %v3767_v22 = vsel %vm1778_vm3, %v3735_v54, %v7227_v51 }
 0x653   : > { %v3516_v38 = vpop.permute.xlu2 %3515  ;;  %v3608_v36 = vpop.permute.xlu1 %3607  ;;  %v3799_v59 = vsel %vm1811_vm5, %v3767_v22, %v7321_v6  ;;  %v2622_v6 = vld [vmem:[#allocation3 + $0xb1] sm:$0xff] }
 0x654   : > { %3399 = vrot.lane.b32.xlu0 %v2605_v45, %s4569_s12  ;;  %v3925_v11 = vsel %vm1943_vm7, %v3893_v56, %v3608_v36  ;;  %v2607_v56 = vld [vmem:[#allocation3 + $0x180] sm:$0xff] }
 0x655   : > { %4439 = vmatmul.msk.f32.gmra.mxu1 %vm1985_vm9, %v3925_v11 }
 0x656   : > { %v3386_v35 = vpop.permute.xlu0 %3385 }
 0x657   : > { %v3878_v2 = vsel %vm1877_vm6, %v7648_v32, %v3386_v35  ;;  %v3830_v32 = vsel %vm1844_vm4, %v3798_v40, %v7521_v27 }
 0x658   : > { %v3910_v30 = vsel %vm1910_vm8, %v3878_v2, %v3514_v13 }
 0x659   : > { %3527 = vrot.lane.b32.xlu2 %v2637_v21, %s4570_s13  ;;  %3367 = vrot.lane.b32.xlu1 %v2589_v61, %s4569_s12  ;;  %v2654_v21 = vld [vmem:[#allocation3 + $0xb2] sm:$0xff]  ;;  %v2671_v61 = vld [vmem:[#allocation3 + $0x182] sm:$0xff] }
 0x65b   : > { %v3484_v24 = vpop.permute.xlu2 %3483  ;;  %v3354_v10 = vpop.permute.xlu1 %3353 }
 0x65c   : > { %3655 = vrot.lane.b32.xlu0 %v2669_v49, %s4571_s14  ;;  %v3862_v19 = vsel %vm1877_vm6, %v3830_v32, %v3354_v10 }
 0x65d   : > { %v3894_v13 = vsel %vm1910_vm8, %v3862_v19, %v3482_v57  ;;  %v2591_v19 = vld [vmem:[#allocation3 + $0xc0] sm:$0xff] }
 0x65e   : > { %v3642_v5 = vpop.permute.xlu0 %3641 }
 0x65f   : > { %v3942_v15 = vsel %vm1943_vm7, %v3910_v30, %v3642_v5  ;;  %v8935_v30 = vld [vmem:[#allocation179_spill] sm:$0xff] }
 0x660   : > { %4456 = vmatmul.msk.f32.gmra.mxu3 %vm1985_vm9, %v3942_v15 }
 0x661   : > { %3495 = vrot.lane.b32.xlu2 %v2621_v29, %s4570_s13  ;;  %3623 = vrot.lane.b32.xlu1 %v2653_v14, %s4571_s14 }
 0x663   : > { %v3518_v48 = vpop.permute.xlu2 %3517  ;;  %v3610_v43 = vpop.permute.xlu1 %3609 }
 0x664   : > { %3401 = vrot.lane.b32.xlu0 %v2606_v1, %s4569_s12  ;;  %v3926_v27 = vsel %vm1943_vm7, %v3894_v13, %v3610_v43  ;;  %v2608_v43 = vld [vmem:[#allocation3 + $0x188] sm:$0xff] }
 0x665   : > { %4440 = vmatmul.msk.f32.gmra.mxu1 %vm1985_vm9, %v3926_v27  ;;  %v8936_v1 = vld [vmem:[#allocation191_spill] sm:$0xff]  ;;  %v8937_v27 = vld [vmem:[#allocation34_spill] sm:$0xff] }
 0x666   : > { %v3388_v31 = vpop.permute.xlu0 %3387  ;;  %v4546_v13 = vld [vmem:[#allocation3 + $0x48] sm:$0xff] }
 0x667   : > { %v3879_v57 = vsel %vm1877_vm6, %v7574_v39, %v3388_v31  ;;  %v3831_v39 = vsel %vm1844_vm4, %v3799_v59, %v7517_v46  ;;  %v3705_v31 = vsel %vm311_vm0, %v4546_v13, %v8937_v27  ;;  %v8941_v59 = vld [vmem:[#allocation130_spill] sm:$0xff] }
 0x668   : > { %v3911_v53 = vsel %vm1910_vm8, %v3879_v57, %v3516_v38  ;;  %v3737_v57 = vsel %vm1745_vm2, %v3705_v31, %v8938_v41  ;;  %v2625_v31 = vld [vmem:[#allocation3 + $0xd9] sm:$0xff] }
 0x669   : > { %3529 = vrot.lane.b32.xlu2 %v2638_v20, %s4570_s13  ;;  %3369 = vrot.lane.b32.xlu1 %v2590_v25, %s4569_s12 }
 0x66b   : > { %v3486_v4 = vpop.permute.xlu2 %3485  ;;  %v3356_v0 = vpop.permute.xlu1 %3355 }
 0x66c   : > { %3657 = vrot.lane.b32.xlu0 %v2670_v37, %s4571_s14  ;;  %v3863_v45 = vsel %vm1877_vm6, %v3831_v39, %v3356_v0  ;;  %v2672_v39 = vld [vmem:[#allocation3 + $0x18a] sm:$0xff] }
 0x66d   : > { %v3895_v35 = vsel %vm1910_vm8, %v3863_v45, %v3484_v24 }
 0x66e   : > { %v3644_v26 = vpop.permute.xlu0 %3643 }
 0x66f   : > { %v3943_v36 = vsel %vm1943_vm7, %v3911_v53, %v3644_v26 }
 0x670   : > { %4457 = vmatmul.msk.f32.gmra.mxu3 %vm1985_vm9, %v3943_v36 }
 0x671   : > { %3275 = vrot.lane.b32.xlu2 %v2669_v49, %s4568_s11  ;;  %3403 = vrot.lane.b32.xlu1 %v2607_v56, %s4569_s12  ;;  %v8934_v49 = vld [vmem:[#allocation60_spill] sm:$0xff]  ;;  %v2592_v56 = vld [vmem:[#allocation3 + $0xc8] sm:$0xff] }
 0x672   : > { %v3736_v18 = vsel %vm1745_vm2, %v3704_v42, %v8934_v49  ;;  %v8944_v49 = vld [vmem:[#allocation156_spill] sm:$0xff] }
 0x673   : > { %v3520_v51 = vpop.permute.xlu2 %3519  ;;  %v3612_v11 = vpop.permute.xlu1 %3611  ;;  %v3768_v63 = vsel %vm1778_vm3, %v3736_v18, %v7223_v8 }
 0x674   : > { %3497 = vrot.lane.b32.xlu0 %v2622_v6, %s4570_s13  ;;  %v3927_v46 = vsel %vm1943_vm7, %v3895_v35, %v3612_v11  ;;  %v3800_v28 = vsel %vm1811_vm5, %v3768_v63, %v7363_v58  ;;  %v2624_v35 = vld [vmem:[#allocation3 + $0xc9] sm:$0xff] }
 0x675   : > { %4441 = vmatmul.msk.f32.gmra.mxu1 %vm1985_vm9, %v3927_v46  ;;  %v2656_v46 = vld [vmem:[#allocation3 + $0xca] sm:$0xff] }
 0x676   : > { %v3390_v38 = vpop.permute.xlu0 %3389  ;;  %v8945_v63 = vld [vmem:[#allocation51_spill] sm:$0xff] }
 0x677   : > { %v3880_v2 = vsel %vm1877_vm6, %v7685_v62, %v3390_v38  ;;  %v3832_v62 = vsel %vm1844_vm4, %v3800_v28, %v8935_v30  ;;  %v2609_v38 = vld [vmem:[#allocation3 + $0x198] sm:$0xff] }
 0x678   : > { %v3912_v5 = vsel %vm1910_vm8, %v3880_v2, %v3518_v48  ;;  %v2641_v30 = vld [vmem:[#allocation3 + $0x199] sm:$0xff] }
 0x679   : > { %3625 = vrot.lane.b32.xlu2 %v2654_v21, %s4571_s14  ;;  %3659 = vrot.lane.b32.xlu1 %v2671_v61, %s4571_s14  ;;  %v4547_v21 = vld [vmem:[#allocation3 + $0x50] sm:$0xff] }
 0x67b   : > { %v3488_v24 = vpop.permute.xlu2 %3487  ;;  %v3358_v10 = vpop.permute.xlu1 %3357 }
 0x67c   : > { %3531 = vrot.lane.b32.xlu0 %v7277_v50, %s4570_s13  ;;  %v3864_v15 = vsel %vm1877_vm6, %v3832_v62, %v3358_v10  ;;  %v2623_v50 = vld [vmem:[#allocation3 + $0xc1] sm:$0xff] }
 0x67d   : > { %v3896_v29 = vsel %vm1910_vm8, %v3864_v15, %v3486_v4  ;;  %v8939_v4 = vld [vmem:[#allocation128_spill] sm:$0xff]  ;;  %v8946_v62 = vld [vmem:[#allocation106_spill] sm:$0xff] }
 0x67e   : > { %v3646_v40 = vpop.permute.xlu0 %3645  ;;  %v3769_v0 = vsel %vm1778_vm3, %v3737_v57, %v8939_v4  ;;  %v8949_v57 = vld [vmem:[#allocation83_spill] sm:$0xff] }
 0x67f   : > { %v3944_v32 = vsel %vm1943_vm7, %v3912_v5, %v3646_v40 }
 0x680   : > { %4458 = vmatmul.msk.f32.gmra.mxu3 %vm1985_vm9, %v3944_v32 }
 0x681   : > { %3371 = vrot.lane.b32.xlu2 %v2591_v19, %s4569_s12  ;;  %3499 = vrot.lane.b32.xlu1 %v2623_v50, %s4570_s13  ;;  %v2593_v19 = vld [vmem:[#allocation3 + $0xd8] sm:$0xff] }
 0x682   : > { %v2673_v50 = vld [vmem:[#allocation3 + $0x19a] sm:$0xff] }
 0x683   : > { %v3522_v8 = vpop.permute.xlu2 %3521  ;;  %v3614_v58 = vpop.permute.xlu1 %3613 }
 0x684   : > { %3277 = vrot.lane.b32.xlu0 %v2670_v37, %s4568_s11  ;;  %v3928_v14 = vsel %vm1943_vm7, %v3896_v29, %v3614_v58  ;;  %v8940_v37 = vld [vmem:[#allocation124_spill] sm:$0xff] }
 0x685   : > { %4442 = vmatmul.msk.f32.gmra.mxu1 %vm1985_vm9, %v3928_v14  ;;  %v3801_v33 = vsel %vm1811_vm5, %v3769_v0, %v8940_v37 }
 0x686   : > { %v3392_v48 = vpop.permute.xlu0 %3391 }
 0x687   : > { %v3881_v20 = vsel %vm1877_vm6, %v7676_v7, %v3392_v48  ;;  %v3833_v7 = vsel %vm1844_vm4, %v3801_v33, %v8941_v59  ;;  %v8950_v33 = vld [vmem:[#allocation53_spill] sm:$0xff]  ;;  %v7959_v59 = vld [vmem:[%s8283_s5] ss:$0 sm:$0xff] }
 0x688   : > { %v3913_v22 = vsel %vm1910_vm8, %v3881_v20, %v3520_v51  ;;  %v4548_v20 = vld [vmem:[#allocation3 + $0x60] sm:$0xff] }
 0x689   : > { %3405 = vrot.lane.b32.xlu2 %v2608_v43, %s4569_s12  ;;  %3533 = vrot.lane.b32.xlu1 %v8936_v1, %s4570_s13  ;;  %v2610_v43 = vld [vmem:[#allocation3 + $0x1a0] sm:$0xff] }
 0x68b   : > { %v3490_v25 = vpop.permute.xlu2 %3489  ;;  %v3360_v55 = vpop.permute.xlu1 %3359 }
 0x68c   : > { %3627 = vrot.lane.b32.xlu0 %v2655_v17, %s4571_s14  ;;  %v3865_v53 = vsel %vm1877_vm6, %v3833_v7, %v3360_v55  ;;  %v8948_v17 = vld [vmem:[#allocation167_spill] sm:$0xff]  ;;  %v8951_v7 = vld [vmem:[#allocation41_spill] sm:$0xff] }
 0x68d   : > { %v3897_v11 = vsel %vm1910_vm8, %v3865_v53, %v3488_v24  ;;  %v8943_v24 = vld [vmem:[#allocation98_spill] sm:$0xff] }
 0x68e   : > { %v3648_v54 = vpop.permute.xlu0 %3647  ;;  %v2657_v53 = vld [vmem:[#allocation3 + $0xda] sm:$0xff] }
 0x68f   : > { %v3945_v26 = vsel %vm1943_vm7, %v3913_v22, %v3648_v54 }
 0x690   : > { %4459 = vmatmul.msk.f32.gmra.mxu3 %vm1985_vm9, %v3945_v26 }
 0x691   : > { %3661 = vrot.lane.b32.xlu2 %v2672_v39, %s4571_s14  ;;  %3279 = vrot.lane.b32.xlu1 %v2671_v61, %s4568_s11  ;;  %v8942_v61 = vld [vmem:[#allocation85_spill] sm:$0xff] }
 0x692   : > { %v3706_v34 = vsel %vm311_vm0, %v4547_v21, %v8942_v61 }
 0x693   : > { %v3524_v36 = vpop.permute.xlu2 %3523  ;;  %v3616_v45 = vpop.permute.xlu1 %3615  ;;  %v3738_v10 = vsel %vm1745_vm2, %v3706_v34, %v8943_v24 }
 0x694   : > { %3373 = vrot.lane.b32.xlu0 %v2592_v56, %s4569_s12  ;;  %v3929_v51 = vsel %vm1943_vm7, %v3897_v11, %v3616_v45  ;;  %v3770_v18 = vsel %vm1778_vm3, %v3738_v10, %v8944_v49  ;;  %v2642_v45 = vld [vmem:[#allocation3 + $0x1a1] sm:$0xff]  ;;  %v8953_v10 = vld [vmem:[#allocation20_spill] sm:$0xff] }
 0x695   : > { %4443 = vmatmul.msk.f32.gmra.mxu1 %vm1985_vm9, %v3929_v51  ;;  %v3802_v28 = vsel %vm1811_vm5, %v3770_v18, %v8945_v63  ;;  %v2594_v49 = vld [vmem:[#allocation3 + $0xe0] sm:$0xff] }
 0x696   : > { %v3394_v6 = vpop.permute.xlu0 %3393  ;;  %v2658_v18 = vld [vmem:[#allocation3 + $0xe2] sm:$0xff] }
 0x697   : > { %v3882_v3 = vsel %vm1877_vm6, %v7605_v9, %v3394_v6  ;;  %v3834_v9 = vsel %vm1844_vm4, %v3802_v28, %v8946_v62  ;;  %v4549_v62 = vld [vmem:[#allocation3 + $0x68] sm:$0xff] }
 0x698   : > { %v3914_v5 = vsel %vm1910_vm8, %v3882_v3, %v3522_v8 }
 0x699   : > { %3501 = vrot.lane.b32.xlu2 %v2624_v35, %s4570_s13  ;;  %3629 = vrot.lane.b32.xlu1 %v2656_v46, %s4571_s14 }
 0x69b   : > { %v3492_v42 = vpop.permute.xlu2 %3491  ;;  %v3362_v2 = vpop.permute.xlu1 %3361 }
 0x69c   : > { %3407 = vrot.lane.b32.xlu0 %v2609_v38, %s4569_s12  ;;  %v3866_v15 = vsel %vm1877_vm6, %v3834_v9, %v3362_v2  ;;  %v8952_v2 = vld [vmem:[#allocation5_spill] sm:$0xff]  ;;  %v8954_v9 = vld [vmem:[#allocation91_spill] sm:$0xff] }
 0x69d   : > { %v3898_v8 = vsel %vm1910_vm8, %v3866_v15, %v3490_v25  ;;  %v8947_v25 = vld [vmem:[#allocation44_spill] sm:$0xff] }
 0x69e   : > { %v3650_v40 = vpop.permute.xlu0 %3649  ;;  %v3707_v55 = vsel %vm311_vm0, %v4548_v20, %v8947_v25 }
 0x69f   : > { %v3946_v32 = vsel %vm1943_vm7, %v3914_v5, %v3650_v40  ;;  %v3739_v41 = vsel %vm1745_vm2, %v3707_v55, %v8948_v17 }
 0x6a0   : > { %4460 = vmatmul.msk.f32.gmra.mxu3 %vm1985_vm9, %v3946_v32  ;;  %v3771_v4 = vsel %vm1778_vm3, %v3739_v41, %v8949_v57  ;;  %v3708_v32 = vsel %vm311_vm0, %v4549_v62, %v8954_v9 }
 0x6a1   : > { %3535 = vrot.lane.b32.xlu2 %v2641_v30, %s4570_s13  ;;  %3375 = vrot.lane.b32.xlu1 %v2593_v19, %s4569_s12  ;;  %v3803_v54 = vsel %vm1811_vm5, %v3771_v4, %v8950_v33  ;;  %v2626_v30 = vld [vmem:[#allocation3 + $0xe1] sm:$0xff]  ;;  %v8955_v19 = vld [vmem:[#allocation100_spill] sm:$0xff] }
 0x6a2   : > { %v3835_v26 = vsel %vm1844_vm4, %v3803_v54, %v8951_v7  ;;  %v8959_v54 = vld [vmem:[#allocation7_spill] sm:$0xff]  ;;  %v8960_v7 = vld [vmem:[#allocation22_spill] sm:$0xff] }
 0x6a3   : > { %v7933_v58 = vpop.permute.xlu2 %3525  ;;  %v3618_v29 = vpop.permute.xlu1 %3617 }
 0x6a4   : > { %3663 = vrot.lane.b32.xlu0 %v2673_v50, %s4571_s14  ;;  %v3930_v14 = vsel %vm1943_vm7, %v3898_v8, %v3618_v29  ;;  %v3740_v50 = vsel %vm1745_vm2, %v3708_v32, %v8955_v19  ;;  %v8956_v29 = vld [vmem:[#allocation148_spill] sm:$0xff] }
 0x6a5   : > { %4444 = vmatmul.msk.f32.gmra.mxu1 %vm1985_vm9, %v3930_v14  ;;  %v3772_v8 = vsel %vm1778_vm3, %v3740_v50, %v8956_v29  ;;  %v8966_v19 = vld [vmem:[#allocation4_spill] sm:$0xff]  ;;  %v8967_v29 = vld [vmem:[#allocation21_spill] sm:$0xff] }
 0x6a6   : > { %v3396_v48 = vpop.permute.xlu0 %3395 }
 0x6a7   : > { %v3883_v1 = vsel %vm1877_vm6, %v7712_v44, %v3396_v48  ;;  %v2674_v44 = vld [vmem:[#allocation3 + $0x1a2] sm:$0xff]  ;;  %v8957_v48 = vld [vmem:[#allocation137_spill] sm:$0xff] }
 0x6a8   : > { %v3915_v37 = vsel %vm1910_vm8, %v3883_v1, %v3524_v36  ;;  %v7970_v36 = vld [vmem:[%s8284_s6] ss:$0 sm:$0xff] }
 0x6a9   : > { %3281 = vrot.lane.b32.xlu2 %v2672_v39, %s4568_s11  ;;  %3409 = vrot.lane.b32.xlu1 %v2610_v43, %s4569_s12  ;;  %v3804_v43 = vsel %vm1811_vm5, %v3772_v8, %v8957_v48 }
 0x6ab   : > { %v7943_v13 = vpop.permute.xlu2 %3493  ;;  %v3364_v27 = vpop.permute.xlu1 %3363 }
 0x6ac   : > { %3503 = vrot.lane.b32.xlu0 %v2625_v31, %s4570_s13  ;;  %v3867_v39 = vsel %vm1877_vm6, %v3835_v26, %v3364_v27  ;;  %v8958_v27 = vld [vmem:[#allocation144_spill] sm:$0xff] }
 0x6ad   : > { %v3899_v38 = vsel %vm1910_vm8, %v3867_v39, %v3492_v42  ;;  %v3836_v31 = vsel %vm1844_vm4, %v3804_v43, %v8958_v27 }
 0x6ae   : > { %v3652_v0 = vpop.permute.xlu0 %3651 }
 0x6af   : > { %v3947_v22 = vsel %vm1943_vm7, %v3915_v37, %v3652_v0 }
 0x6b0   : > { %4461 = vmatmul.msk.f32.gmra.mxu3 %vm1985_vm9, %v3947_v22 }
 0x6b1   : > { %3631 = vrot.lane.b32.xlu2 %v2657_v53, %s4571_s14  ;;  %3665 = vrot.lane.b32.xlu1 %v2674_v44, %s4571_s14 }
 0x6b2   : > { %v4077_v56 = vpop.f32.mrf.mxu1 }
 0x6b3   : > { %v4177_v11 = vmul.f32 %v7959_v59, %v4077_v56  ;;  %v4125_v51 = vpop.f32.mrf.mxu3  ;;  %v7973_v6 = vpop.permute.xlu2 %3527  ;;  %v8961_v56 = vld [vmem:[#allocation69_spill] sm:$0xff] }
 0x6b4   : > { %v4193_v35 = vmul.f32 %v7959_v59, %v4125_v51  ;;  %v3620_v46 = vpop.permute.xlu1 %3619  ;;  %3537 = vrot.lane.b32.xlu0 %v2642_v45, %s4570_s13  ;;  %v4550_v45 = vld [vmem:[#allocation3 + $0x78] sm:$0xff] }
 0x6b5   : > { %v4213_v21 = vadd.f32 %v7970_v36, %v4177_v11  ;;  %v3931_v61 = vsel %vm1943_vm7, %v3899_v38, %v3620_v46  ;;  %v3709_v11 = vsel %vm311_vm0, %v4550_v45, %v8961_v56  ;;  %v8963_v38 = vld [vmem:[#allocation170_spill] sm:$0xff] }
 0x6b6   : > { %v4229_v34 = vadd.f32 %v7970_v36, %v4193_v35  ;;  %4445 = vmatmul.msk.f32.gmra.mxu1 %vm1985_vm9, %v3931_v61  ;;  %v3398_v3 = vpop.permute.xlu0 %3397  ;;  %v8962_v35 = vld [vmem:[#allocation39_spill] sm:$0xff]  ;;  %v8973_v56 = vld [vmem:[#allocation6_spill] sm:$0xff] }
 0x6b7   : > { %v4245_v24 = vadd.f32 %v4213_v21, %v8952_v2  ;;  %v3884_v40 = vsel %vm1877_vm6, %v7704_v47, %v3398_v3  ;;  %v3741_v46 = vsel %vm1745_vm2, %v3709_v11, %v8962_v35  ;;  %v8964_v3 = vld [vmem:[#allocation117_spill] sm:$0xff]  ;;  %v8974_v35 = vld [vmem:[#allocation23_spill] sm:$0xff] }
 0x6b8   : > { %v4261_v42 = vadd.f32 %v4229_v34, %v8953_v10  ;;  %v3916_v47 = vsel %vm1910_vm8, %v3884_v40, %v7933_v58  ;;  %v3773_v21 = vsel %vm1778_vm3, %v3741_v46, %v8963_v38  ;;  %v8965_v10 = vld [vmem:[#allocation138_spill] sm:$0xff] }
 0x6b9   : > { %v4277_v63 = vmax.f32 %v4245_v24, 0.0  ;;  %3377 = vrot.lane.b32.xlu2 %v2594_v49, %s4569_s12  ;;  %3633 = vrot.lane.b32.xlu1 %v2658_v18, %s4571_s14 }
 0x6ba   : > { %v4293_v28 = vmax.f32 %v4261_v42, 0.0 }
 0x6bb   : > { %4309 = vst.msk [vmem:[%s7988_s16] sm:$0xff] %vm311_vm0, %v4277_v63  ;;  %v3496_v5 = vpop.permute.xlu2 %3495 }
 0x6bc   : > { %4325 = vst.msk [vmem:[%s7988_s16 + $0x80] sm:$0xff] %vm311_vm0, %v4293_v28  ;;  %v3366_v15 = vpop.permute.xlu1 %3365  ;;  %3505 = vrot.lane.b32.xlu0 %v2626_v30, %s4570_s13 }
 0x6bd   : > { %v3868_v20 = vsel %vm1877_vm6, %v3836_v31, %v3366_v15 }
 0x6be   : > { %v3654_v14 = vpop.permute.xlu0 %3653  ;;  %v3900_v57 = vsel %vm1910_vm8, %v3868_v20, %v7943_v13  ;;  %v4551_v20 = vld [vmem:[#allocation3 + $0x80] sm:$0xff] }
 0x6bf   : > { %v3948_v1 = vsel %vm1943_vm7, %v3916_v47, %v3654_v14 }
 0x6c0   : > { %4462 = vmatmul.msk.f32.gmra.mxu3 %vm1985_vm9, %v3948_v1 }
 0x6c2   : > { %v4080_v25 = vpop.f32.mrf.mxu1 }
 0x6c3   : > { %v4178_v55 = vmul.f32 %v7959_v59, %v4080_v25  ;;  %v4128_v17 = vpop.f32.mrf.mxu3  ;;  %v3530_v0 = vpop.permute.xlu2 %3529  ;;  %v8968_v25 = vld [vmem:[#allocation45_spill] sm:$0xff] }
 0x6c4   : > { %v4194_v41 = vmul.f32 %v7959_v59, %v4128_v17  ;;  %v3622_v58 = vpop.permute.xlu1 %3621  ;;  %v8969_v17 = vld [vmem:[#allocation115_spill] sm:$0xff] }
 0x6c5   : > { %v4214_v4 = vadd.f32 %v7970_v36, %v4178_v55  ;;  %v3932_v37 = vsel %vm1943_vm7, %v3900_v57, %v3622_v58  ;;  %v3710_v55 = vsel %vm311_vm0, %v4551_v20, %v8968_v25  ;;  %v8970_v57 = vld [vmem:[#allocation169_spill] sm:$0xff] }
 0x6c6   : > { %v4230_v44 = vadd.f32 %v7970_v36, %v4194_v41  ;;  %4446 = vmatmul.msk.f32.gmra.mxu1 %vm1985_vm9, %v3932_v37  ;;  %v3400_v33 = vpop.permute.xlu0 %3399  ;;  %v3742_v41 = vsel %vm1745_vm2, %v3710_v55, %v8969_v17  ;;  %v8981_v20 = vld [vmem:[#allocation25_spill] sm:$0xff]  ;;  %v8982_v55 = vld [vmem:[#allocation104_spill] sm:$0xff] }
 0x6c7   : > { %v4246_v22 = vadd.f32 %v4214_v4, %v8959_v54  ;;  %v3885_v13 = vsel %vm1877_vm6, %v7645_v12, %v3400_v33  ;;  %v3805_v12 = vsel %vm1811_vm5, %v3773_v21, %v8964_v3  ;;  %v4552_v21 = vld [vmem:[#allocation3 + $0x150] sm:$0xff] }
 0x6c8   : > { %v4262_v26 = vadd.f32 %v4230_v44, %v8960_v7  ;;  %v3917_v34 = vsel %vm1910_vm8, %v3885_v13, %v7973_v6  ;;  %v3837_v42 = vsel %vm1844_vm4, %v3805_v12, %v8965_v10  ;;  %v8972_v7 = vld [vmem:[#allocation66_spill] sm:$0xff]  ;;  %v8976_v12 = vld [vmem:[#allocation116_spill] sm:$0xff] }
 0x6c9   : > { %v4278_v53 = vmax.f32 %v4246_v22, 0.0 }
 0x6ca   : > { %v4294_v39 = vmax.f32 %v4262_v26, 0.0 }
 0x6cb   : > { %4310 = vst.msk [vmem:[%s7988_s16 + $0x8] sm:$0xff] %vm311_vm0, %v4278_v53  ;;  %v3276_v2 = vpop.permute.xlu2 %3275 }
 0x6cc   : > { %4326 = vst.msk [vmem:[%s7988_s16 + $0x88] sm:$0xff] %vm311_vm0, %v4294_v39  ;;  %v3368_v51 = vpop.permute.xlu1 %3367 }
 0x6cd   : > { %v3869_v49 = vsel %vm1877_vm6, %v3837_v42, %v3368_v51  ;;  %v8977_v42 = vld [vmem:[#allocation50_spill] sm:$0xff] }
 0x6ce   : > { %v3656_v61 = vpop.permute.xlu0 %3655  ;;  %v3901_v30 = vsel %vm1910_vm8, %v3869_v49, %v3496_v5 }
 0x6cf   : > { %v3949_v24 = vsel %vm1943_vm7, %v3917_v34, %v3656_v61  ;;  %v8975_v61 = vld [vmem:[#allocation184_spill] sm:$0xff] }
 0x6d0   : > { %4463 = vmatmul.msk.f32.gmra.mxu3 %vm1985_vm9, %v3949_v24  ;;  %v3727_v34 = vsel %vm311_vm0, %v4552_v21, %v8975_v61 }
 0x6d1   : > { %v3759_v24 = vsel %vm1745_vm2, %v3727_v34, %v8976_v12  ;;  %v8986_v34 = vld [vmem:[#allocation10_spill] sm:$0xff]  ;;  %v8987_v12 = vld [vmem:[#allocation24_spill] sm:$0xff] }
 0x6d2   : > { %v4083_v18 = vpop.f32.mrf.mxu1  ;;  %v3791_v49 = vsel %vm1778_vm3, %v3759_v24, %v8977_v42 }
 0x6d3   : > { %v4179_v63 = vmul.f32 %v7959_v59, %v4083_v18  ;;  %v4131_v28 = vpop.f32.mrf.mxu3  ;;  %v3626_v47 = vpop.permute.xlu2 %3625  ;;  %v8978_v18 = vld [vmem:[#allocation157_spill] sm:$0xff] }
 0x6d4   : > { %v4195_v6 = vmul.f32 %v7959_v59, %v4131_v28  ;;  %v3624_v40 = vpop.permute.xlu1 %3623 }
 0x6d5   : > { %v4215_v62 = vadd.f32 %v7970_v36, %v4179_v63  ;;  %v3933_v9 = vsel %vm1943_vm7, %v3901_v30, %v3624_v40  ;;  %v3823_v63 = vsel %vm1811_vm5, %v3791_v49, %v8978_v18 }
 0x6d6   : > { %v4231_v32 = vadd.f32 %v7970_v36, %v4195_v6  ;;  %4447 = vmatmul.msk.f32.gmra.mxu1 %vm1985_vm9, %v3933_v9  ;;  %v3402_v15 = vpop.permute.xlu0 %3401  ;;  %v3855_v6 = vsel %vm1844_vm4, %v3823_v63, %v3276_v2 }
 0x6d7   : > { %v4247_v50 = vadd.f32 %v4215_v62, %v8966_v19  ;;  %v3886_v5 = vsel %vm1877_vm6, %v7724_v23, %v3402_v15  ;;  %v3774_v23 = vsel %vm1778_vm3, %v3742_v41, %v8970_v57 }
 0x6d8   : > { %v4263_v8 = vadd.f32 %v4231_v32, %v8967_v29  ;;  %v3918_v27 = vsel %vm1910_vm8, %v3886_v5, %v3530_v0  ;;  %v8971_v0 = vld [vmem:[#allocation103_spill] sm:$0xff]  ;;  %v8979_v5 = vld [vmem:[#allocation8_spill] sm:$0xff] }
 0x6d9   : > { %v4279_v14 = vmax.f32 %v4247_v50, 0.0  ;;  %v3806_v33 = vsel %vm1811_vm5, %v3774_v23, %v8971_v0  ;;  %v8984_v23 = vld [vmem:[#allocation67_spill] sm:$0xff]  ;;  %v8985_v0 = vld [vmem:[#allocation149_spill] sm:$0xff] }
 0x6da   : > { %v4295_v48 = vmax.f32 %v4263_v8, 0.0  ;;  %v3838_v26 = vsel %vm1844_vm4, %v3806_v33, %v8972_v7 }
 0x6db   : > { %4311 = vst.msk [vmem:[%s7988_s16 + $0x10] sm:$0xff] %vm311_vm0, %v4279_v14  ;;  %v3372_v4 = vpop.permute.xlu2 %3371 }
 0x6dc   : > { %4327 = vst.msk [vmem:[%s7988_s16 + $0x90] sm:$0xff] %vm311_vm0, %v4295_v48  ;;  %v3370_v43 = vpop.permute.xlu1 %3369 }
 0x6dd   : > { %v3870_v39 = vsel %vm1877_vm6, %v3838_v26, %v3370_v43 }
 0x6de   : > { %v3658_v1 = vpop.permute.xlu0 %3657 }
 0x6df   : > { %v3950_v31 = vsel %vm1943_vm7, %v3918_v27, %v3658_v1  ;;  %v4553_v1 = vld [vmem:[#allocation3 + $0x90] sm:$0xff]  ;;  %v8980_v27 = vld [vmem:[#allocation74_spill] sm:$0xff] }
 0x6e0   : > { %4464 = vmatmul.msk.f32.gmra.mxu3 %vm1985_vm9, %v3950_v31  ;;  %v3711_v31 = vsel %vm311_vm0, %v4553_v1, %v8980_v27  ;;  %v8990_v1 = vld [vmem:[#allocation26_spill] sm:$0xff] }
 0x6e1   : > { %v3743_v17 = vsel %vm1745_vm2, %v3711_v31, %v8982_v55  ;;  %v8991_v55 = vld [vmem:[#allocation107_spill] sm:$0xff] }
 0x6e2   : > { %v4086_v58 = vpop.f32.mrf.mxu1 }
 0x6e3   : > { %v4180_v37 = vmul.f32 %v7959_v59, %v4086_v58  ;;  %v4134_v44 = vpop.f32.mrf.mxu3  ;;  %v3406_v40 = vpop.permute.xlu2 %3405  ;;  %v8983_v58 = vld [vmem:[#allocation193_spill] sm:$0xff] }
 0x6e4   : > { %v4196_v54 = vmul.f32 %v7959_v59, %v4134_v44  ;;  %v3404_v22 = vpop.permute.xlu1 %3403 }
 0x6e5   : > { %v4216_v53 = vadd.f32 %v7970_v36, %v4180_v37  ;;  %v3887_v30 = vsel %vm1877_vm6, %v3855_v6, %v3404_v22  ;;  %v3775_v37 = vsel %vm1778_vm3, %v3743_v17, %v8984_v23 }
 0x6e6   : > { %v4232_v13 = vadd.f32 %v7970_v36, %v4196_v54  ;;  %v3498_v45 = vpop.permute.xlu0 %3497  ;;  %v3807_v33 = vsel %vm1811_vm5, %v3775_v37, %v8985_v0  ;;  %v4554_v37 = vld [vmem:[#allocation3 + $0x170] sm:$0xff] }
 0x6e7   : > { %v4248_v11 = vadd.f32 %v4216_v53, %v8973_v56  ;;  %v3902_v51 = vsel %vm1910_vm8, %v3870_v39, %v3498_v45  ;;  %v3839_v54 = vsel %vm1844_vm4, %v3807_v33, %v7580_v16  ;;  %v8993_v33 = vld [vmem:[#allocation129_spill] sm:$0xff] }
 0x6e8   : > { %v4264_v46 = vadd.f32 %v4232_v13, %v8974_v35  ;;  %v3934_v38 = vsel %vm1943_vm7, %v3902_v51, %v3626_v47  ;;  %v3871_v26 = vsel %vm1877_vm6, %v3839_v54, %v3372_v4 }
 0x6e9   : > { %v4280_v3 = vmax.f32 %v4248_v11, 0.0  ;;  %4448 = vmatmul.msk.f32.gmra.mxu1 %vm1985_vm9, %v3934_v38 }
 0x6ea   : > { %v4296_v10 = vmax.f32 %v4264_v46, 0.0 }
 0x6eb   : > { %4312 = vst.msk [vmem:[%s7988_s16 + $0x18] sm:$0xff] %vm311_vm0, %v4280_v3  ;;  %v3662_v48 = vpop.permute.xlu2 %3661 }
 0x6ec   : > { %4328 = vst.msk [vmem:[%s7988_s16 + $0x98] sm:$0xff] %vm311_vm0, %v4296_v10  ;;  %v3660_v28 = vpop.permute.xlu1 %3659 }
 0x6ee   : > { %v3532_v62 = vpop.permute.xlu0 %3531 }
 0x6ef   : > { %v3919_v9 = vsel %vm1910_vm8, %v3887_v30, %v3532_v62  ;;  %v8988_v30 = vld [vmem:[#allocation192_spill] sm:$0xff] }
 0x6f0   : > { %v3951_v32 = vsel %vm1943_vm7, %v3919_v9, %v3660_v28 }
 0x6f1   : > { %4465 = vmatmul.msk.f32.gmra.mxu3 %vm1985_vm9, %v3951_v32 }
 0x6f2   : > { %v4089_v15 = vpop.f32.mrf.mxu1 }
 0x6f3   : > { %v4181_v19 = vmul.f32 %v7959_v59, %v4089_v15  ;;  %v4137_v50 = vpop.f32.mrf.mxu3  ;;  %v3502_v16 = vpop.permute.xlu2 %3501 }
 0x6f4   : > { %v4197_v29 = vmul.f32 %v7959_v59, %v4137_v50  ;;  %v3500_v8 = vpop.permute.xlu1 %3499 }
 0x6f5   : > { %v4217_v2 = vadd.f32 %v7970_v36, %v4181_v19  ;;  %v3903_v39 = vsel %vm1910_vm8, %v3871_v26, %v3500_v8 }
 0x6f6   : > { %v4233_v14 = vadd.f32 %v7970_v36, %v4197_v29  ;;  %v3278_v47 = vpop.permute.xlu0 %3277 }
 0x6f7   : > { %v4249_v43 = vadd.f32 %v4217_v2, %v8979_v5  ;;  %v3856_v57 = vsel %vm1844_vm4, %v8983_v58, %v3278_v47 }
 0x6f8   : > { %v4265_v25 = vadd.f32 %v4233_v14, %v8981_v20  ;;  %v3888_v7 = vsel %vm1877_vm6, %v3856_v57, %v3406_v40 }
 0x6f9   : > { %v4281_v41 = vmax.f32 %v4249_v43, 0.0 }
 0x6fa   : > { %v4297_v44 = vmax.f32 %v4265_v25, 0.0 }
 0x6fb   : > { %4313 = vst.msk [vmem:[%s7988_s16 + $0x20] sm:$0xff] %vm311_vm0, %v4281_v41  ;;  %v3536_v18 = vpop.permute.xlu2 %3535 }
 0x6fc   : > { %4329 = vst.msk [vmem:[%s7988_s16 + $0xa0] sm:$0xff] %vm311_vm0, %v4297_v44  ;;  %v3534_v22 = vpop.permute.xlu1 %3533  ;;  %v8992_v44 = vld [vmem:[#allocation62_spill] sm:$0xff] }
 0x6fd   : > { %v3920_v53 = vsel %vm1910_vm8, %v3888_v7, %v3534_v22  ;;  %v3730_v0 = vsel %vm311_vm0, %v4554_v37, %v8992_v44  ;;  %v8994_v7 = vld [vmem:[#allocation102_spill] sm:$0xff] }
 0x6fe   : > { %v3628_v13 = vpop.permute.xlu0 %3627  ;;  %v3952_v45 = vsel %vm1943_vm7, %v3920_v53, %v3662_v48  ;;  %v8989_v48 = vld [vmem:[#allocation9_spill] sm:$0xff]  ;;  %v3762_v54 = vsel %vm1745_vm2, %v3730_v0, %v8993_v33  ;;  %v9002_v44 = vld [vmem:[#allocation14_spill] sm:$0xff]  ;;  %v9003_v33 = vld [vmem:[#allocation31_spill] sm:$0xff] }
 0x6ff   : > { %4466 = vmatmul.msk.f32.gmra.mxu3 %vm1985_vm9, %v3952_v45  ;;  %v3935_v56 = vsel %vm1943_vm7, %v3903_v39, %v3628_v13  ;;  %v3794_v26 = vsel %vm1778_vm3, %v3762_v54, %v8994_v7  ;;  %v8995_v13 = vld [vmem:[#allocation164_spill] sm:$0xff] }
 0x700   : > { %4449 = vmatmul.msk.f32.gmra.mxu1 %vm1985_vm9, %v3935_v56  ;;  %v3826_v45 = vsel %vm1811_vm5, %v3794_v26, %v8995_v13 }
 0x702   : > { %v4092_v11 = vpop.f32.mrf.mxu1 }
 0x703   : > { %v4182_v51 = vmul.f32 %v7959_v59, %v4092_v11  ;;  %v4140_v4 = vpop.f32.mrf.mxu3  ;;  %v3282_v29 = vpop.permute.xlu2 %3281 }
 0x704   : > { %v4198_v35 = vmul.f32 %v7959_v59, %v4140_v4  ;;  %v3280_v46 = vpop.permute.xlu1 %3279 }
 0x705   : > { %v4218_v38 = vadd.f32 %v7970_v36, %v4182_v51  ;;  %v3857_v62 = vsel %vm1844_vm4, %v8988_v30, %v3280_v46 }
 0x706   : > { %v4234_v21 = vadd.f32 %v7970_v36, %v4198_v35  ;;  %v3374_v61 = vpop.permute.xlu0 %3373 }
 0x707   : > { %v4250_v3 = vadd.f32 %v4218_v38, %v8986_v34  ;;  %v3872_v42 = vsel %vm1877_vm6, %v7577_v52, %v3374_v61  ;;  %v8996_v38 = vld [vmem:[#allocation11_spill] sm:$0xff]  ;;  %v8997_v34 = vld [vmem:[#allocation28_spill] sm:$0xff] }
 0x708   : > { %v4266_v24 = vadd.f32 %v4234_v21, %v8987_v12  ;;  %v3904_v28 = vsel %vm1910_vm8, %v3872_v42, %v3502_v16  ;;  %v3858_v16 = vsel %vm1844_vm4, %v3826_v45, %v3282_v29 }
 0x709   : > { %v4282_v10 = vmax.f32 %v4250_v3, 0.0 }
 0x70a   : > { %v4298_v49 = vmax.f32 %v4266_v24, 0.0 }
 0x70b   : > { %4314 = vst.msk [vmem:[%s7988_s16 + $0x28] sm:$0xff] %vm311_vm0, %v4282_v10  ;;  %v3632_v58 = vpop.permute.xlu2 %3631 }
 0x70c   : > { %4330 = vst.msk [vmem:[%s7988_s16 + $0xa8] sm:$0xff] %vm311_vm0, %v4298_v49  ;;  %v3630_v63 = vpop.permute.xlu1 %3629 }
 0x70d   : > { %v3936_v6 = vsel %vm1943_vm7, %v3904_v28, %v3630_v63 }
 0x70e   : > { %4450 = vmatmul.msk.f32.gmra.mxu1 %vm1985_vm9, %v3936_v6  ;;  %v3408_v40 = vpop.permute.xlu0 %3407 }
 0x70f   : > { %v3889_v52 = vsel %vm1877_vm6, %v3857_v62, %v3408_v40 }
 0x710   : > { %v3921_v47 = vsel %vm1910_vm8, %v3889_v52, %v3536_v18 }
 0x712   : > { %v4095_v9 = vpop.f32.mrf.mxu1 }
 0x713   : > { %v4183_v32 = vmul.f32 %v7959_v59, %v4095_v9  ;;  %v4143_v15 = vpop.f32.mrf.mxu3  ;;  %v3378_v42 = vpop.permute.xlu2 %3377 }
 0x714   : > { %v4199_v19 = vmul.f32 %v7959_v59, %v4143_v15  ;;  %v3376_v50 = vpop.permute.xlu1 %3375  ;;  %v3874_v49 = vsel %vm1877_vm6, %v7613_v60, %v3378_v42 }
 0x715   : > { %v4219_v8 = vadd.f32 %v7970_v36, %v4183_v32  ;;  %v3873_v17 = vsel %vm1877_vm6, %v8991_v55, %v3376_v50  ;;  %v8998_v32 = vld [vmem:[#allocation13_spill] sm:$0xff] }
 0x716   : > { %v4235_v2 = vadd.f32 %v7970_v36, %v4199_v19  ;;  %v3664_v14 = vpop.permute.xlu0 %3663  ;;  %v8999_v19 = vld [vmem:[#allocation27_spill] sm:$0xff] }
 0x717   : > { %v4251_v5 = vadd.f32 %v4219_v8, %v8989_v48  ;;  %v3953_v43 = vsel %vm1943_vm7, %v3921_v47, %v3664_v14 }
 0x718   : > { %v4267_v27 = vadd.f32 %v4235_v2, %v8990_v1  ;;  %4467 = vmatmul.msk.f32.gmra.mxu3 %vm1985_vm9, %v3953_v43  ;;  %v9000_v1 = vld [vmem:[#allocation12_spill] sm:$0xff] }
 0x719   : > { %v4283_v31 = vmax.f32 %v4251_v5, 0.0 }
 0x71a   : > { %v4299_v20 = vmax.f32 %v4267_v27, 0.0 }
 0x71b   : > { %4315 = vst.msk [vmem:[%s7988_s16 + $0x30] sm:$0xff] %vm311_vm0, %v4283_v31  ;;  %v9001_v31 = vld [vmem:[#allocation29_spill] sm:$0xff] }
 0x71c   : > { %4331 = vst.msk [vmem:[%s7988_s16 + $0xb0] sm:$0xff] %vm311_vm0, %v4299_v20  ;;  %v3410_v25 = vpop.permute.xlu1 %3409 }
 0x71d   : > { %v3890_v4 = vsel %vm1877_vm6, %v3858_v16, %v3410_v25 }
 0x71e   : > { %v3504_v41 = vpop.permute.xlu0 %3503 }
 0x71f   : > { %v3905_v57 = vsel %vm1910_vm8, %v3873_v17, %v3504_v41 }
 0x720   : > { %v3937_v23 = vsel %vm1943_vm7, %v3905_v57, %v3632_v58 }
 0x721   : > { %4451 = vmatmul.msk.f32.gmra.mxu1 %vm1985_vm9, %v3937_v23 }
 0x722   : > { %v4098_v22 = vpop.f32.mrf.mxu1 }
 0x723   : > { %v4184_v53 = vmul.f32 %v7959_v59, %v4098_v22  ;;  %v4146_v39 = vpop.f32.mrf.mxu3 }
 0x724   : > { %v4200_v56 = vmul.f32 %v7959_v59, %v4146_v39  ;;  %v3666_v51 = vpop.permute.xlu1 %3665 }
 0x725   : > { %v4220_v11 = vadd.f32 %v7970_v36, %v4184_v53 }
 0x726   : > { %v4236_v35 = vadd.f32 %v7970_v36, %v4200_v56  ;;  %v3538_v46 = vpop.permute.xlu0 %3537  ;;  %v9004_v56 = vld [vmem:[#allocation30_spill] sm:$0xff] }
 0x727   : > { %v4252_v21 = vadd.f32 %v4220_v11, %v8996_v38  ;;  %v3922_v61 = vsel %vm1910_vm8, %v3890_v4, %v3538_v46  ;;  %v9005_v4 = vld [vmem:[#allocation16_spill] sm:$0xff] }
 0x728   : > { %v4268_v3 = vadd.f32 %v4236_v35, %v8997_v34  ;;  %v3954_v12 = vsel %vm1943_vm7, %v3922_v61, %v3666_v51  ;;  %v9006_v34 = vld [vmem:[#allocation32_spill] sm:$0xff] }
 0x729   : > { %v4284_v24 = vmax.f32 %v4252_v21, 0.0  ;;  %4468 = vmatmul.msk.f32.gmra.mxu3 %vm1985_vm9, %v3954_v12 }
 0x72a   : > { %v4300_v10 = vmax.f32 %v4268_v3, 0.0 }
 0x72b   : > { %4316 = vst.msk [vmem:[%s7988_s16 + $0x38] sm:$0xff] %vm311_vm0, %v4284_v24 }
 0x72c   : > { %4332 = vst.msk [vmem:[%s7988_s16 + $0xb8] sm:$0xff] %vm311_vm0, %v4300_v10  ;;  %v3634_v63 = vpop.permute.xlu1 %3633 }
 0x72e   : > { %v3506_v18 = vpop.permute.xlu0 %3505 }
 0x72f   : > { %v3906_v28 = vsel %vm1910_vm8, %v3874_v49, %v3506_v18  ;;  %v9007_v49 = vld [vmem:[#allocation15_spill] sm:$0xff] }
 0x730   : > { %v3938_v6 = vsel %vm1943_vm7, %v3906_v28, %v3634_v63 }
 0x731   : > { %4452 = vmatmul.msk.f32.gmra.mxu1 %vm1985_vm9, %v3938_v6 }
 0x733   : > { %v4101_v40 = vpop.f32.mrf.mxu1  ;;  %v4149_v30 = vpop.f32.mrf.mxu3 }
 0x734   : > { %v4185_v62 = vmul.f32 %v7959_v59, %v4101_v40  ;;  %v4201_v9 = vmul.f32 %v7959_v59, %v4149_v30  ;;  %v9008_v30 = vld [vmem:[#allocation33_spill] sm:$0xff] }
 0x736   : > { %v4221_v52 = vadd.f32 %v7970_v36, %v4185_v62  ;;  %v4237_v60 = vadd.f32 %v7970_v36, %v4201_v9 }
 0x738   : > { %v4253_v15 = vadd.f32 %v4221_v52, %v8998_v32  ;;  %v4269_v50 = vadd.f32 %v4237_v60, %v8999_v19 }
 0x73a   : > { %v4285_v29 = vmax.f32 %v4253_v15, 0.0  ;;  %v4301_v8 = vmax.f32 %v4269_v50, 0.0  ;;  %v9009_v15 = vld [vmem:[#allocation17_spill] sm:$0xff] }
 0x73c   : > { %4317 = vst.msk [vmem:[%s7988_s16 + $0x40] sm:$0xff] %vm311_vm0, %v4285_v29 }
 0x73d   : > { %4333 = vst.msk [vmem:[%s7988_s16 + $0xc0] sm:$0xff] %vm311_vm0, %v4301_v8 }
 0x743   : > { %v4104_v2 = vpop.f32.mrf.mxu1  ;;  %v4152_v14 = vpop.f32.mrf.mxu3 }
 0x744   : > { %v4186_v47 = vmul.f32 %v7959_v59, %v4104_v2  ;;  %v4202_v48 = vmul.f32 %v7959_v59, %v4152_v14 }
 0x746   : > { %v4222_v5 = vadd.f32 %v7970_v36, %v4186_v47  ;;  %v4238_v43 = vadd.f32 %v7970_v36, %v4202_v48  ;;  %v9010_v48 = vld [vmem:[#allocation88_spill] sm:$0xff] }
 0x748   : > { %v4254_v27 = vadd.f32 %v4222_v5, %v9000_v1  ;;  %v4270_v20 = vadd.f32 %v4238_v43, %v9001_v31 }
 0x74a   : > { %v4286_v25 = vmax.f32 %v4254_v27, 0.0  ;;  %v4302_v55 = vmax.f32 %v4270_v20, 0.0  ;;  %v9011_v27 = vld [vmem:[#allocation19_spill] sm:$0xff] }
 0x74c   : > { %4318 = vst.msk [vmem:[%s7988_s16 + $0x48] sm:$0xff] %vm311_vm0, %v4286_v25 }
 0x74d   : > { %4334 = vst.msk [vmem:[%s7988_s16 + $0xc8] sm:$0xff] %vm311_vm0, %v4302_v55 }
 0x753   : > { %v4107_v17 = vpop.f32.mrf.mxu1  ;;  %v4155_v41 = vpop.f32.mrf.mxu3 }
 0x754   : > { %v4187_v58 = vmul.f32 %v7959_v59, %v4107_v17  ;;  %v4203_v57 = vmul.f32 %v7959_v59, %v4155_v41 }
 0x756   : > { %v4223_v23 = vadd.f32 %v7970_v36, %v4187_v58  ;;  %v4239_v37 = vadd.f32 %v7970_v36, %v4203_v57  ;;  %v9012_v57 = vld [vmem:[#allocation89_spill] sm:$0xff] }
 0x758   : > { %v4255_v0 = vadd.f32 %v4223_v23, %v9002_v44  ;;  %v4271_v54 = vadd.f32 %v4239_v37, %v9003_v33 }
 0x75a   : > { %v4287_v22 = vmax.f32 %v4255_v0, 0.0  ;;  %v4303_v7 = vmax.f32 %v4271_v54, 0.0  ;;  %v9013_v0 = vld [vmem:[#allocation18_spill] sm:$0xff] }
 0x75c   : > { %4319 = vst.msk [vmem:[%s7988_s16 + $0x50] sm:$0xff] %vm311_vm0, %v4287_v22 }
 0x75d   : > { %4335 = vst.msk [vmem:[%s7988_s16 + $0xd0] sm:$0xff] %vm311_vm0, %v4303_v7 }
 0x763   : > { %v4158_v26 = vpop.f32.mrf.mxu3 }
 0x764   : > { %v4204_v53 = vmul.f32 %v7959_v59, %v4158_v26 }
 0x766   : > { %v4240_v39 = vadd.f32 %v7970_v36, %v4204_v53  ;;  %v4110_v13 = vpop.f32.mrf.mxu1 }
 0x767   : > { %v4188_v45 = vmul.f32 %v7959_v59, %v4110_v13 }
 0x768   : > { %v4272_v16 = vadd.f32 %v4240_v39, %v9004_v56 }
 0x769   : > { %v4224_v11 = vadd.f32 %v7970_v36, %v4188_v45 }
 0x76a   : > { %v4304_v51 = vmax.f32 %v4272_v16, 0.0 }
 0x76b   : > { %v4256_v35 = vadd.f32 %v4224_v11, %v9005_v4 }
 0x76c   : > { %4336 = vst.msk [vmem:[%s7988_s16 + $0xd8] sm:$0xff] %vm311_vm0, %v4304_v51 }
 0x76d   : > { %v4288_v46 = vmax.f32 %v4256_v35, 0.0 }
 0x76f   : > { %4320 = vst.msk [vmem:[%s7988_s16 + $0x58] sm:$0xff] %vm311_vm0, %v4288_v46 }
 0x774   : > { %v4161_v38 = vpop.f32.mrf.mxu3 }
 0x775   : > { %v4205_v21 = vmul.f32 %v7959_v59, %v4161_v38 }
 0x777   : > { %v4241_v61 = vadd.f32 %v7970_v36, %v4205_v21 }
 0x779   : > { %v4273_v3 = vadd.f32 %v4241_v61, %v9006_v34 }
 0x77b   : > { %v4305_v12 = vmax.f32 %v4273_v3, 0.0 }
 0x77d   : > { %4337 = vst.msk [vmem:[%s7988_s16 + $0xe0] sm:$0xff] %vm311_vm0, %v4305_v12  ;;  %v4113_v24 = vpop.f32.mrf.mxu1 }
 0x77e   : > { %v4189_v10 = vmul.f32 %v7959_v59, %v4113_v24 }
 0x780   : > { %v4225_v42 = vadd.f32 %v7970_v36, %v4189_v10 }
 0x782   : > { %v4257_v18 = vadd.f32 %v4225_v42, %v9007_v49  ;;  %v4164_v63 = vpop.f32.mrf.mxu3 }
 0x783   : > { %v4206_v28 = vmul.f32 %v7959_v59, %v4164_v63 }
 0x784   : > { %v4289_v6 = vmax.f32 %v4257_v18, 0.0 }
 0x785   : > { %v4242_v40 = vadd.f32 %v7970_v36, %v4206_v28 }
 0x786   : > { %4321 = vst.msk [vmem:[%s7988_s16 + $0x60] sm:$0xff] %vm311_vm0, %v4289_v6 }
 0x787   : > { %v4274_v62 = vadd.f32 %v4242_v40, %v9008_v30 }
 0x789   : > { %v4306_v9 = vmax.f32 %v4274_v62, 0.0 }
 0x78b   : > { %4338 = vst.msk [vmem:[%s7988_s16 + $0xe8] sm:$0xff] %vm311_vm0, %v4306_v9  ;;  %v4116_v52 = vpop.f32.mrf.mxu1 }
 0x78c   : > { %v4190_v60 = vmul.f32 %v7959_v59, %v4116_v52 }
 0x78e   : > { %v4226_v32 = vadd.f32 %v7970_v36, %v4190_v60 }
 0x790   : > { %v4258_v19 = vadd.f32 %v4226_v32, %v9009_v15 }
 0x792   : > { %v4290_v50 = vmax.f32 %v4258_v19, 0.0 }
 0x794   : > { %4322 = vst.msk [vmem:[%s7988_s16 + $0x68] sm:$0xff] %vm311_vm0, %v4290_v50 }
 0x79b   : > { %v4167_v29 = vpop.f32.mrf.mxu3 }
 0x79c   : > { %v4207_v8 = vmul.f32 %v7959_v59, %v4167_v29 }
 0x79e   : > { %v4243_v2 = vadd.f32 %v7970_v36, %v4207_v8  ;;  %v4119_v14 = vpop.f32.mrf.mxu1 }
 0x79f   : > { %v4191_v47 = vmul.f32 %v7959_v59, %v4119_v14 }
 0x7a0   : > { %v4275_v5 = vadd.f32 %v4243_v2, %v9010_v48 }
 0x7a1   : > { %v4227_v43 = vadd.f32 %v7970_v36, %v4191_v47 }
 0x7a2   : > { %v4307_v1 = vmax.f32 %v4275_v5, 0.0 }
 0x7a3   : > { %v4259_v31 = vadd.f32 %v4227_v43, %v9011_v27 }
 0x7a4   : > { %4339 = vst.msk [vmem:[%s7988_s16 + $0xf0] sm:$0xff] %vm311_vm0, %v4307_v1 }
 0x7a5   : > { %v4291_v20 = vmax.f32 %v4259_v31, 0.0 }
 0x7a7   : > { %4323 = vst.msk [vmem:[%s7988_s16 + $0x70] sm:$0xff] %vm311_vm0, %v4291_v20 }
 0x7ac   : > { %v4170_v25 = vpop.f32.mrf.mxu3 }
 0x7ad   : > { %v4208_v55 = vmul.f32 %v7959_v59, %v4170_v25 }
 0x7ae   : > { %v4122_v17 = vpop.f32.mrf.mxu1 }
 0x7af   : > { %v4244_v41 = vadd.f32 %v7970_v36, %v4208_v55  ;;  %v4192_v58 = vmul.f32 %v7959_v59, %v4122_v17 }
 0x7b1   : > { %v4276_v23 = vadd.f32 %v4244_v41, %v9012_v57  ;;  %v4228_v37 = vadd.f32 %v7970_v36, %v4192_v58 }
 0x7b3   : > { %v4308_v44 = vmax.f32 %v4276_v23, 0.0  ;;  %v4260_v33 = vadd.f32 %v4228_v37, %v9013_v0 }
 0x7b5   : > { %4340 = vst.msk [vmem:[%s7988_s16 + $0xf8] sm:$0xff] %vm311_vm0, %v4308_v44  ;;  %v4292_v54 = vmax.f32 %v4260_v33, 0.0 }
 0x7b7   : > { %4324 = vst.msk [vmem:[%s7988_s16 + $0x78] sm:$0xff] %vm311_vm0, %v4292_v54 }
 0x7b8 PF: > { %s17_s24 = sadd.s32 1, %s4561_s24  }
 0x7b9   : > { %p14_p4 = scmp.ge.s32.totalorder %s17_s24, 4  }
 0x7bb   :  { %16 = sbr.rel (!%p14_p4) target bundleno = 1 (0x1), region = 82 }

</bundles_post_ra>
